<compile_context>
chip_gen: v6e
topology: v6e:2x2x1
jax: 0.10.0
libtpu: 0.0.40
codegen_flags: <defaults>
</compile_context>

<pallas_src>
import functools

import jax
import jax.numpy as jnp
from jax.experimental import pallas as pl
from jax.experimental.pallas import tpu as pltpu

IN_FEATURES = 224 * 224 * 3   # 150528
OUT_FEATURES = 2
LANES = 128
KS = IN_FEATURES // LANES     # 1176 slabs of 128 lanes (150528 = 1176 * 128)


def linear_kernel(x_ref, w_ref, o_ref, acc_ref, *, batch, out_features):
    # x_ref:   [B, KS, 128]   activations, lane-dense slabs
    # w_ref:   [N, KS, 128]   torch-native weight [N, K] reshaped lane-dense
    # o_ref:   [B*N, 1]       per-(b, n) dot products (bias added outside)
    # acc_ref: [B*N, 128]     f32 lane-wise partial sums (VPU only; no MXU)
    for b in range(batch):
        x_b = x_ref[b]                                         # [KS, 128]
        for n in range(out_features):
            # elementwise multiply + sublane reduce on the VPU
            acc_ref[b * out_features + n, :] = jnp.sum(x_b * w_ref[n], axis=0)
    # single cross-lane (XLU) reduction at the very end
    o_ref[...] = jnp.sum(acc_ref[...], axis=-1, keepdims=True)


@jax.jit
def simple_model_forward(x_nchw, w, b):
    """x_nchw: [B, 3, 224, 224] f32; w: [N, K] (torch fc.weight); b: [N] (fc.bias)."""
    B = x_nchw.shape[0]
    N, K = w.shape
    assert K == IN_FEATURES and N == OUT_FEATURES

    x2d = x_nchw.reshape(B, K)              # same row-major flatten as torch .view
    x_slab = x2d.reshape(B, KS, LANES)      # lane-dense: last dim -> lanes
    w_slab = w.reshape(N, KS, LANES)

    kernel = functools.partial(linear_kernel, batch=B, out_features=N)

    out = pl.pallas_call(
        kernel,
        out_shape=jax.ShapeDtypeStruct((B * N, 1), jnp.float32),
        grid_spec=pltpu.PrefetchScalarGridSpec(
            num_scalar_prefetch=0,
            grid=(1,),                                      # single shot: ~2.4 MB total
            in_specs=[
                pl.BlockSpec((B, KS, LANES), lambda i: (0, 0, 0)),   # activations
                pl.BlockSpec((N, KS, LANES), lambda i: (0, 0, 0)),   # weights
            ],
            out_specs=pl.BlockSpec((B * N, 1), lambda i: (0, 0)),
            scratch_shapes=[pltpu.VMEM((B * N, LANES), jnp.float32)],
        ),
        compiler_params=pltpu.CompilerParams(
            dimension_semantics=("arbitrary",),
        ),
    )(x_slab, w_slab)

    # bias: 2 scalars, added in the wrapper (no kernel BlockSpec / DMA needed)
    return out.reshape(B, N) + b[None, :]


if __name__ == "__main__":
    key = jax.random.PRNGKey(0)
    kx, kw, kb = jax.random.split(key, 3)

    B = 2
    # Deterministic synthetic parameters (shapes from nn.Linear(150528, 2)).
    bound = 1.0 / jnp.sqrt(jnp.float32(IN_FEATURES))
    w = jax.random.uniform(kw, (OUT_FEATURES, IN_FEATURES), jnp.float32,
                           minval=-bound, maxval=bound)      # torch weight [N, K]
    b = jax.random.uniform(kb, (OUT_FEATURES,), jnp.float32,
                           minval=-bound, maxval=bound)

    x = jax.random.normal(kx, (B, 3, 224, 224), jnp.float32)

    y = simple_model_forward(x, w, b)
    y = jax.block_until_ready(y)

    # Reference check (plain JAX).
    y_ref = x.reshape(B, -1) @ w.T + b
    assert y.shape == (B, OUT_FEATURES)
    assert jnp.allclose(y, y_ref, atol=1e-3, rtol=1e-3)

    print("KERNEL_OK")
</pallas_src>

<mosaic_0001>
module attributes {stable_mosaic.version = 11 : i64} {
  func.func @linear_kernel(%arg0: i32, %arg1: memref<2x1176x128xf32, #tpu.memory_space<vmem>>, %arg2: memref<2x1176x128xf32, #tpu.memory_space<vmem>>, %arg3: memref<4x1xf32, #tpu.memory_space<vmem>>, %arg4: memref<4x128xf32, #tpu.memory_space<vmem>>) attributes {dimension_semantics = [#tpu.dimension_semantics<arbitrary>], iteration_bounds = array<i64: 1>, scalar_prefetch = 0 : i64, scratch_operands = 1 : i64, tpu.core_type = #tpu.core_type<tc>, window_params = [{pipeline_mode = #tpu.pipeline_mode<synchronous>, transform_indices = @transform_0, window_bounds = array<i64: 2, 1176, 128>}, {pipeline_mode = #tpu.pipeline_mode<synchronous>, transform_indices = @transform_1, window_bounds = array<i64: 2, 1176, 128>}, {pipeline_mode = #tpu.pipeline_mode<synchronous>, transform_indices = @transform_2, window_bounds = array<i64: 4, 1>}]} {
    %c0 = arith.constant 0 : index
    %c0_0 = arith.constant 0 : index
    %c0_1 = arith.constant 0 : index
    %0 = vector.load %arg1[%c0, %c0_0, %c0_1] : memref<2x1176x128xf32, #tpu.memory_space<vmem>>, vector<1x1176x128xf32>
    %1 = vector.shape_cast %0 : vector<1x1176x128xf32> to vector<1176x128xf32>
    %c0_2 = arith.constant 0 : index
    %c0_3 = arith.constant 0 : index
    %c0_4 = arith.constant 0 : index
    %2 = vector.load %arg2[%c0_2, %c0_3, %c0_4] : memref<2x1176x128xf32, #tpu.memory_space<vmem>>, vector<1x1176x128xf32>
    %3 = vector.shape_cast %2 : vector<1x1176x128xf32> to vector<1176x128xf32>
    %4 = arith.mulf %1, %3 : vector<1176x128xf32>
    %cst = arith.constant dense<0.000000e+00> : vector<128xf32>
    %5 = vector.multi_reduction <add>, %4, %cst [0] : vector<1176x128xf32> to vector<128xf32>
    %c0_5 = arith.constant 0 : index
    %c0_6 = arith.constant 0 : index
    %6 = vector.load %arg4[%c0_5, %c0_6] : memref<4x128xf32, #tpu.memory_space<vmem>>, vector<1x128xf32>
    %7 = vector.shape_cast %6 : vector<1x128xf32> to vector<128xf32>
    %8 = vector.shape_cast %5 : vector<128xf32> to vector<1x128xf32>
    tpu.vector_store %arg4[%c0_5, %c0_6], %8 {strides = array<i32>} : memref<4x128xf32, #tpu.memory_space<vmem>>, vector<1x128xf32>,
    %c1 = arith.constant 1 : index
    %c0_7 = arith.constant 0 : index
    %c0_8 = arith.constant 0 : index
    %9 = vector.load %arg2[%c1, %c0_7, %c0_8] : memref<2x1176x128xf32, #tpu.memory_space<vmem>>, vector<1x1176x128xf32>
    %10 = vector.shape_cast %9 : vector<1x1176x128xf32> to vector<1176x128xf32>
    %11 = arith.mulf %1, %10 : vector<1176x128xf32>
    %cst_9 = arith.constant dense<0.000000e+00> : vector<128xf32>
    %12 = vector.multi_reduction <add>, %11, %cst_9 [0] : vector<1176x128xf32> to vector<128xf32>
    %c1_10 = arith.constant 1 : index
    %c0_11 = arith.constant 0 : index
    %13 = vector.load %arg4[%c1_10, %c0_11] : memref<4x128xf32, #tpu.memory_space<vmem>>, vector<1x128xf32>
    %14 = vector.shape_cast %13 : vector<1x128xf32> to vector<128xf32>
    %15 = vector.shape_cast %12 : vector<128xf32> to vector<1x128xf32>
    tpu.vector_store %arg4[%c1_10, %c0_11], %15 {strides = array<i32>} : memref<4x128xf32, #tpu.memory_space<vmem>>, vector<1x128xf32>,
    %c1_12 = arith.constant 1 : index
    %c0_13 = arith.constant 0 : index
    %c0_14 = arith.constant 0 : index
    %16 = vector.load %arg1[%c1_12, %c0_13, %c0_14] : memref<2x1176x128xf32, #tpu.memory_space<vmem>>, vector<1x1176x128xf32>
    %17 = vector.shape_cast %16 : vector<1x1176x128xf32> to vector<1176x128xf32>
    %c0_15 = arith.constant 0 : index
    %c0_16 = arith.constant 0 : index
    %c0_17 = arith.constant 0 : index
    %18 = vector.load %arg2[%c0_15, %c0_16, %c0_17] : memref<2x1176x128xf32, #tpu.memory_space<vmem>>, vector<1x1176x128xf32>
    %19 = vector.shape_cast %18 : vector<1x1176x128xf32> to vector<1176x128xf32>
    %20 = arith.mulf %17, %19 : vector<1176x128xf32>
    %cst_18 = arith.constant dense<0.000000e+00> : vector<128xf32>
    %21 = vector.multi_reduction <add>, %20, %cst_18 [0] : vector<1176x128xf32> to vector<128xf32>
    %c2 = arith.constant 2 : index
    %c0_19 = arith.constant 0 : index
    %22 = vector.load %arg4[%c2, %c0_19] : memref<4x128xf32, #tpu.memory_space<vmem>>, vector<1x128xf32>
    %23 = vector.shape_cast %22 : vector<1x128xf32> to vector<128xf32>
    %24 = vector.shape_cast %21 : vector<128xf32> to vector<1x128xf32>
    tpu.vector_store %arg4[%c2, %c0_19], %24 {strides = array<i32>} : memref<4x128xf32, #tpu.memory_space<vmem>>, vector<1x128xf32>,
    %c1_20 = arith.constant 1 : index
    %c0_21 = arith.constant 0 : index
    %c0_22 = arith.constant 0 : index
    %25 = vector.load %arg2[%c1_20, %c0_21, %c0_22] : memref<2x1176x128xf32, #tpu.memory_space<vmem>>, vector<1x1176x128xf32>
    %26 = vector.shape_cast %25 : vector<1x1176x128xf32> to vector<1176x128xf32>
    %27 = arith.mulf %17, %26 : vector<1176x128xf32>
    %cst_23 = arith.constant dense<0.000000e+00> : vector<128xf32>
    %28 = vector.multi_reduction <add>, %27, %cst_23 [0] : vector<1176x128xf32> to vector<128xf32>
    %c3 = arith.constant 3 : index
    %c0_24 = arith.constant 0 : index
    %29 = vector.load %arg4[%c3, %c0_24] : memref<4x128xf32, #tpu.memory_space<vmem>>, vector<1x128xf32>
    %30 = vector.shape_cast %29 : vector<1x128xf32> to vector<128xf32>
    %31 = vector.shape_cast %28 : vector<128xf32> to vector<1x128xf32>
    tpu.vector_store %arg4[%c3, %c0_24], %31 {strides = array<i32>} : memref<4x128xf32, #tpu.memory_space<vmem>>, vector<1x128xf32>,
    %c0_25 = arith.constant 0 : index
    %c0_26 = arith.constant 0 : index
    %32 = vector.load %arg4[%c0_25, %c0_26] : memref<4x128xf32, #tpu.memory_space<vmem>>, vector<4x128xf32>
    %cst_27 = arith.constant dense<0.000000e+00> : vector<4xf32>
    %33 = vector.multi_reduction <add>, %32, %cst_27 [1] : vector<4x128xf32> to vector<4xf32>
    %34 = vector.shape_cast %33 : vector<4xf32> to vector<4x1xf32>
    %c0_28 = arith.constant 0 : index
    %c0_29 = arith.constant 0 : index
    %35 = vector.load %arg3[%c0_28, %c0_29] : memref<4x1xf32, #tpu.memory_space<vmem>>, vector<4x1xf32>
    tpu.vector_store %arg3[%c0_28, %c0_29], %34 {strides = array<i32>} : memref<4x1xf32, #tpu.memory_space<vmem>>, vector<4x1xf32>,
    return
  }
  func.func @transform_0(%arg0: i32) -> (i32, i32, i32) {
    %c0_i32 = arith.constant 0 : i32
    %c0_i32_0 = arith.constant 0 : i32
    %c0_i32_1 = arith.constant 0 : i32
    %c0_i32_2 = arith.constant 0 : i32
    return %c0_i32, %c0_i32_0, %c0_i32_1 : i32, i32, i32
  }
  func.func @transform_1(%arg0: i32) -> (i32, i32, i32) {
    %c0_i32 = arith.constant 0 : i32
    %c0_i32_0 = arith.constant 0 : i32
    %c0_i32_1 = arith.constant 0 : i32
    %c0_i32_2 = arith.constant 0 : i32
    return %c0_i32, %c0_i32_0, %c0_i32_1 : i32, i32, i32
  }
  func.func @transform_2(%arg0: i32) -> (i32, i32) {
    %c0_i32 = arith.constant 0 : i32
    %c0_i32_0 = arith.constant 0 : i32
    %c0_i32_1 = arith.constant 0 : i32
    return %c0_i32, %c0_i32_0 : i32, i32
  }
}

</mosaic_0001>

<bundles_post_ra>
// kernel: simple_model_forward.1
= control target key start
LH: loop header
LB: loop body
LE: loop exit
PB: predicated region body
PF: predicated region fallthrough
CT: control target
= control target key end

     0   :  { %vm2096_vm0 = vcmask 1043456   ;;  %vm2100_vm1 = vcmask 3072   ;;  %s6393_s0 = inlined_call_operand.vmem [shape: f32[2,1176,128], index: 0, kind: input, shape index: {}]   ;;  %s6394_s1 = inlined_call_operand.vmem [shape: f32[2,1176,128], index: 1, kind: input, shape index: {}]   ;;  %s6395_s2 = inlined_call_operand.vmem [shape: f32[4,1], index: 2, kind: output, shape index: {}]  }
   0x1   :  { %v2642_v0 = vld [vmem:[%s6393_s0] sm:$0xff]  ;;  %v2647_v1 = vld [vmem:[%s6393_s0 + $0x8] sm:$0xff]  ;;  %v2652_v2 = vld [vmem:[%s6393_s0 + $0x10] sm:$0xff] }
   0x2   :  { %v2657_v3 = vld [vmem:[%s6393_s0 + $0x18] sm:$0xff]  ;;  %v158_v4 = vld [vmem:[%s6394_s1] sm:$0xff]  ;;  %v159_v5 = vld [vmem:[%s6394_s1 + $0x8] sm:$0xff] }
   0x3   :  { %v160_v6 = vld [vmem:[%s6394_s1 + $0x10] sm:$0xff]  ;;  %v161_v7 = vld [vmem:[%s6394_s1 + $0x18] sm:$0xff]  ;;  %v305_v8 = vmul.f32 %v158_v4, %v2642_v0  ;;  %v306_v9 = vmul.f32 %v159_v5, %v2647_v1  ;;  %v2677_v11 = vld [vmem:[%s6393_s0 + $0x20] sm:$0xff] }
   0x4   :  { %v307_v10 = vmul.f32 %v160_v6, %v2652_v2  ;;  %v162_v12 = vld [vmem:[%s6394_s1 + $0x20] sm:$0xff]  ;;  %v308_v13 = vmul.f32 %v161_v7, %v2657_v3  ;;  %v2686_v15 = vld [vmem:[%s6393_s0 + $0x28] sm:$0xff]  ;;  %v2695_v19 = vld [vmem:[%s6393_s0 + $0x30] sm:$0xff] }
   0x5   :  { %v452_v14 = vadd.f32 %v306_v9, %v305_v8  ;;  %v163_v16 = vld [vmem:[%s6394_s1 + $0x28] sm:$0xff]  ;;  %v309_v17 = vmul.f32 %v162_v12, %v2677_v11  ;;  %v164_v20 = vld [vmem:[%s6394_s1 + $0x30] sm:$0xff]  ;;  %v2704_v23 = vld [vmem:[%s6393_s0 + $0x38] sm:$0xff] }
   0x6   :  { %v310_v21 = vmul.f32 %v163_v16, %v2686_v15  ;;  %v165_v24 = vld [vmem:[%s6394_s1 + $0x38] sm:$0xff]  ;;  %v311_v25 = vmul.f32 %v164_v20, %v2695_v19  ;;  %v2713_v27 = vld [vmem:[%s6393_s0 + $0x40] sm:$0xff]  ;;  %v2722_v31 = vld [vmem:[%s6393_s0 + $0x48] sm:$0xff] }
   0x7   :  { %v453_v18 = vadd.f32 %v452_v14, %v307_v10  ;;  %v166_v28 = vld [vmem:[%s6394_s1 + $0x40] sm:$0xff]  ;;  %v312_v29 = vmul.f32 %v165_v24, %v2704_v23  ;;  %v167_v32 = vld [vmem:[%s6394_s1 + $0x48] sm:$0xff]  ;;  %v2731_v35 = vld [vmem:[%s6393_s0 + $0x50] sm:$0xff] }
   0x8   :  { %v313_v33 = vmul.f32 %v166_v28, %v2713_v27  ;;  %v168_v36 = vld [vmem:[%s6394_s1 + $0x50] sm:$0xff]  ;;  %v314_v37 = vmul.f32 %v167_v32, %v2722_v31  ;;  %v2740_v39 = vld [vmem:[%s6393_s0 + $0x58] sm:$0xff]  ;;  %v2749_v43 = vld [vmem:[%s6393_s0 + $0x60] sm:$0xff] }
   0x9   :  { %v454_v22 = vadd.f32 %v453_v18, %v308_v13  ;;  %v169_v40 = vld [vmem:[%s6394_s1 + $0x58] sm:$0xff]  ;;  %v315_v41 = vmul.f32 %v168_v36, %v2731_v35  ;;  %v170_v44 = vld [vmem:[%s6394_s1 + $0x60] sm:$0xff]  ;;  %v2758_v47 = vld [vmem:[%s6393_s0 + $0x68] sm:$0xff] }
   0xa   :  { %v316_v45 = vmul.f32 %v169_v40, %v2740_v39  ;;  %v171_v48 = vld [vmem:[%s6394_s1 + $0x68] sm:$0xff]  ;;  %v317_v49 = vmul.f32 %v170_v44, %v2749_v43  ;;  %v2767_v51 = vld [vmem:[%s6393_s0 + $0x70] sm:$0xff]  ;;  %v2776_v55 = vld [vmem:[%s6393_s0 + $0x78] sm:$0xff] }
   0xb   :  { %v455_v26 = vadd.f32 %v454_v22, %v309_v17  ;;  %v172_v52 = vld [vmem:[%s6394_s1 + $0x70] sm:$0xff]  ;;  %v318_v53 = vmul.f32 %v171_v48, %v2758_v47  ;;  %v173_v56 = vld [vmem:[%s6394_s1 + $0x78] sm:$0xff]  ;;  %v2785_v59 = vld [vmem:[%s6393_s0 + $0x80] sm:$0xff] }
   0xc   :  { %v319_v57 = vmul.f32 %v172_v52, %v2767_v51  ;;  %v174_v60 = vld [vmem:[%s6394_s1 + $0x80] sm:$0xff]  ;;  %v320_v61 = vmul.f32 %v173_v56, %v2776_v55  ;;  %v2794_v63 = vld [vmem:[%s6393_s0 + $0x88] sm:$0xff]  ;;  %v2803_v7 = vld [vmem:[%s6393_s0 + $0x90] sm:$0xff] }
   0xd   :  { %v456_v30 = vadd.f32 %v455_v26, %v310_v21  ;;  %v175_v4 = vld [vmem:[%s6394_s1 + $0x88] sm:$0xff]  ;;  %v321_v5 = vmul.f32 %v174_v60, %v2785_v59  ;;  %v176_v8 = vld [vmem:[%s6394_s1 + $0x90] sm:$0xff]  ;;  %v2812_v12 = vld [vmem:[%s6393_s0 + $0x98] sm:$0xff] }
   0xe   :  { %v322_v9 = vmul.f32 %v175_v4, %v2794_v63  ;;  %v177_v13 = vld [vmem:[%s6394_s1 + $0x98] sm:$0xff]  ;;  %v323_v14 = vmul.f32 %v176_v8, %v2803_v7  ;;  %v2821_v17 = vld [vmem:[%s6393_s0 + $0xa0] sm:$0xff]  ;;  %v2830_v22 = vld [vmem:[%s6393_s0 + $0xa8] sm:$0xff] }
   0xf   :  { %v457_v34 = vadd.f32 %v456_v30, %v311_v25  ;;  %v178_v18 = vld [vmem:[%s6394_s1 + $0xa0] sm:$0xff]  ;;  %v324_v20 = vmul.f32 %v177_v13, %v2812_v12  ;;  %v179_v24 = vld [vmem:[%s6394_s1 + $0xa8] sm:$0xff]  ;;  %v2839_v28 = vld [vmem:[%s6393_s0 + $0xb0] sm:$0xff] }
  0x10   :  { %v325_v25 = vmul.f32 %v178_v18, %v2821_v17  ;;  %v326_v30 = vmul.f32 %v179_v24, %v2830_v22  ;;  %v182_v40 = vld [vmem:[%s6394_s1 + $0xc0] sm:$0xff]  ;;  %v2866_v44 = vld [vmem:[%s6393_s0 + $0xc8] sm:$0xff]  ;;  %v185_v56 = vld [vmem:[%s6394_s1 + $0xd8] sm:$0xff] }
  0x11   :  { %v458_v38 = vadd.f32 %v457_v34, %v312_v29  ;;  %v180_v29 = vld [vmem:[%s6394_s1 + $0xb0] sm:$0xff]  ;;  %v181_v34 = vld [vmem:[%s6394_s1 + $0xb8] sm:$0xff]  ;;  %v2902_v4 = vld [vmem:[%s6393_s0 + $0xe0] sm:$0xff] }
  0x12   :  { %v327_v36 = vmul.f32 %v180_v29, %v2839_v28  ;;  %v2106_v60 = vld [vmem:[%s6394_s1 + $0x498] sm:$0xff]  ;;  %v2920_v18 = vld [vmem:[%s6393_s0 + $0xe8] sm:$0xff]  ;;  %v2111_v24 = vld [vmem:[%s6394_s1 + $0x4c0] sm:$0xff] }
  0x13   :  { %v459_v42 = vadd.f32 %v458_v38, %v313_v33  ;;  %v2848_v33 = vld [vmem:[%s6393_s0 + $0xb8] sm:$0xff]  ;;  %v2857_v38 = vld [vmem:[%s6393_s0 + $0xc0] sm:$0xff]  ;;  %v753_v8 = vmul.f32 %v2106_v60, %v2642_v0  ;;  %v187_v0 = vld [vmem:[%s6394_s1 + $0xe8] sm:$0xff] }
  0x15   :  { %v460_v46 = vadd.f32 %v459_v42, %v314_v37 }
  0x17   :  { %v461_v50 = vadd.f32 %v460_v46, %v315_v41  ;;  %v328_v41 = vmul.f32 %v181_v34, %v2848_v33  ;;  %v329_v46 = vmul.f32 %v182_v40, %v2857_v38  ;;  %v2112_v34 = vld [vmem:[%s6394_s1 + $0x4c8] sm:$0xff]  ;;  %v758_v40 = vmul.f32 %v2111_v24, %v2686_v15  ;;  %v3011_v24 = vld [vmem:[%s6393_s0 + $0x120] sm:$0xff] }
  0x19   :  { %v462_v54 = vadd.f32 %v461_v50, %v316_v45  ;;  %v183_v45 = vld [vmem:[%s6394_s1 + $0xc8] sm:$0xff]  ;;  %v184_v50 = vld [vmem:[%s6394_s1 + $0xd0] sm:$0xff] }
  0x1a   :  { %v330_v52 = vmul.f32 %v183_v45, %v2866_v44  ;;  %v2113_v45 = vld [vmem:[%s6394_s1 + $0x4d0] sm:$0xff] }
  0x1b   :  { %v463_v58 = vadd.f32 %v462_v54, %v317_v49  ;;  %v2875_v49 = vld [vmem:[%s6393_s0 + $0xd0] sm:$0xff]  ;;  %v2884_v54 = vld [vmem:[%s6393_s0 + $0xd8] sm:$0xff]  ;;  %v760_v60 = vmul.f32 %v2113_v45, %v2704_v23 }
  0x1c   :  { %v332_v13 = vmul.f32 %v185_v56, %v2884_v54  ;;  %v2114_v56 = vld [vmem:[%s6394_s1 + $0x4d8] sm:$0xff]  ;;  %v3037_v45 = vld [vmem:[%s6393_s0 + $0x130] sm:$0xff] }
  0x1d   :  { %v464_v62 = vadd.f32 %v463_v58, %v318_v53 }
  0x1f   :  { %v465_v6 = vadd.f32 %v464_v62, %v319_v57  ;;  %v331_v57 = vmul.f32 %v184_v50, %v2875_v49  ;;  %v2108_v62 = vld [vmem:[%s6394_s1 + $0x4a8] sm:$0xff]  ;;  %v759_v50 = vmul.f32 %v2112_v34, %v2695_v19 }
  0x20   :  { %v3024_v34 = vld [vmem:[%s6393_s0 + $0x128] sm:$0xff] }
  0x21   :  { %v466_v10 = vadd.f32 %v465_v6, %v320_v61  ;;  %v2107_v61 = vld [vmem:[%s6394_s1 + $0x4a0] sm:$0xff]  ;;  %v2109_v6 = vld [vmem:[%s6394_s1 + $0x4b0] sm:$0xff] }
  0x23   :  { %v467_v16 = vadd.f32 %v466_v10, %v321_v5  ;;  %v186_v5 = vld [vmem:[%s6394_s1 + $0xe0] sm:$0xff]  ;;  %v755_v10 = vmul.f32 %v2108_v62, %v2652_v2 }
  0x24   :  { %v333_v2 = vmul.f32 %v186_v5, %v2902_v4  ;;  %v2115_v5 = vld [vmem:[%s6394_s1 + $0x4e0] sm:$0xff] }
  0x25   :  { %v468_v21 = vadd.f32 %v467_v16, %v322_v9  ;;  %v754_v9 = vmul.f32 %v2107_v61, %v2647_v1  ;;  %v2110_v16 = vld [vmem:[%s6394_s1 + $0x4b8] sm:$0xff]  ;;  %v756_v1 = vmul.f32 %v2109_v6, %v2657_v3  ;;  %v2985_v6 = vld [vmem:[%s6393_s0 + $0x110] sm:$0xff] }
  0x26   :  { %v757_v29 = vmul.f32 %v2110_v16, %v2677_v11  ;;  %v2998_v16 = vld [vmem:[%s6393_s0 + $0x118] sm:$0xff] }
  0x27   :  { %v469_v26 = vadd.f32 %v468_v21, %v323_v14 }
  0x29   :  { %v470_v32 = vadd.f32 %v469_v26, %v324_v20  ;;  %v900_v20 = vadd.f32 %v754_v9, %v753_v8  ;;  %v188_v26 = vld [vmem:[%s6394_s1 + $0xf0] sm:$0xff]  ;;  %v761_v9 = vmul.f32 %v2114_v56, %v2713_v27  ;;  %v3050_v56 = vld [vmem:[%s6393_s0 + $0x138] sm:$0xff] }
  0x2a   :  { %v192_v8 = vld [vmem:[%s6394_s1 + $0x110] sm:$0xff] }
  0x2b   :  { %v471_v37 = vadd.f32 %v470_v32, %v325_v25  ;;  %v2933_v25 = vld [vmem:[%s6393_s0 + $0xf0] sm:$0xff]  ;;  %v901_v3 = vadd.f32 %v900_v20, %v755_v10  ;;  %v339_v20 = vmul.f32 %v192_v8, %v2985_v6  ;;  %v198_v8 = vld [vmem:[%s6394_s1 + $0x140] sm:$0xff] }
  0x2d   :  { %v472_v42 = vadd.f32 %v471_v37, %v326_v30  ;;  %v334_v30 = vmul.f32 %v187_v0, %v2920_v18  ;;  %v189_v37 = vld [vmem:[%s6394_s1 + $0xf8] sm:$0xff]  ;;  %v902_v11 = vadd.f32 %v901_v3, %v756_v1  ;;  %v762_v1 = vmul.f32 %v2115_v5, %v2722_v31  ;;  %v3063_v5 = vld [vmem:[%s6393_s0 + $0x140] sm:$0xff] }
  0x2e   :  { %v193_v0 = vld [vmem:[%s6394_s1 + $0x118] sm:$0xff] }
  0x2f   :  { %v473_v48 = vadd.f32 %v472_v42, %v327_v36  ;;  %v2946_v36 = vld [vmem:[%s6393_s0 + $0xf8] sm:$0xff]  ;;  %v903_v15 = vadd.f32 %v902_v11, %v757_v29  ;;  %v340_v3 = vmul.f32 %v193_v0, %v2998_v16  ;;  %v199_v0 = vld [vmem:[%s6394_s1 + $0x148] sm:$0xff] }
  0x31   :  { %v474_v53 = vadd.f32 %v473_v48, %v328_v41  ;;  %v335_v41 = vmul.f32 %v188_v26, %v2933_v25  ;;  %v190_v48 = vld [vmem:[%s6394_s1 + $0x100] sm:$0xff]  ;;  %v904_v19 = vadd.f32 %v903_v15, %v758_v40 }
  0x32   :  { %v194_v26 = vld [vmem:[%s6394_s1 + $0x120] sm:$0xff] }
  0x33   :  { %v475_v58 = vadd.f32 %v474_v53, %v329_v46  ;;  %v2959_v46 = vld [vmem:[%s6393_s0 + $0x100] sm:$0xff]  ;;  %v905_v23 = vadd.f32 %v904_v19, %v759_v50  ;;  %v341_v11 = vmul.f32 %v194_v26, %v3011_v24  ;;  %v200_v26 = vld [vmem:[%s6394_s1 + $0x150] sm:$0xff] }
  0x34   :  { %v337_v61 = vmul.f32 %v190_v48, %v2959_v46  ;;  %v196_v48 = vld [vmem:[%s6394_s1 + $0x130] sm:$0xff] }
  0x35   :  { %v476_v14 = vadd.f32 %v475_v58, %v330_v52  ;;  %v336_v52 = vmul.f32 %v189_v37, %v2946_v36  ;;  %v191_v58 = vld [vmem:[%s6394_s1 + $0x108] sm:$0xff]  ;;  %v906_v27 = vadd.f32 %v905_v23, %v760_v60  ;;  %v343_v19 = vmul.f32 %v196_v48, %v3037_v45  ;;  %v202_v48 = vld [vmem:[%s6394_s1 + $0x160] sm:$0xff] }
  0x36   :  { %v195_v37 = vld [vmem:[%s6394_s1 + $0x128] sm:$0xff] }
  0x37   :  { %v477_v21 = vadd.f32 %v476_v14, %v331_v57  ;;  %v2972_v57 = vld [vmem:[%s6393_s0 + $0x108] sm:$0xff]  ;;  %v907_v31 = vadd.f32 %v906_v27, %v761_v9  ;;  %v342_v15 = vmul.f32 %v195_v37, %v3024_v34  ;;  %v345_v27 = vmul.f32 %v198_v8, %v3063_v5  ;;  %v201_v37 = vld [vmem:[%s6394_s1 + $0x158] sm:$0xff]  ;;  %v204_v8 = vld [vmem:[%s6394_s1 + $0x170] sm:$0xff] }
  0x38   :  { %v338_v10 = vmul.f32 %v191_v58, %v2972_v57  ;;  %v2116_v14 = vld [vmem:[%s6394_s1 + $0x4e8] sm:$0xff]  ;;  %v197_v58 = vld [vmem:[%s6394_s1 + $0x138] sm:$0xff] }
  0x39   :  { %v478_v32 = vadd.f32 %v477_v21, %v332_v13  ;;  %v2117_v21 = vld [vmem:[%s6394_s1 + $0x4f0] sm:$0xff]  ;;  %v763_v29 = vmul.f32 %v2116_v14, %v2731_v35  ;;  %v908_v35 = vadd.f32 %v907_v31, %v762_v1  ;;  %v344_v23 = vmul.f32 %v197_v58, %v3050_v56  ;;  %v3076_v14 = vld [vmem:[%s6393_s0 + $0x148] sm:$0xff] }
  0x3a   :  { %v764_v40 = vmul.f32 %v2117_v21, %v2740_v39  ;;  %v3089_v21 = vld [vmem:[%s6393_s0 + $0x150] sm:$0xff]  ;;  %v346_v31 = vmul.f32 %v199_v0, %v3076_v14  ;;  %v203_v58 = vld [vmem:[%s6394_s1 + $0x168] sm:$0xff]  ;;  %v205_v0 = vld [vmem:[%s6394_s1 + $0x178] sm:$0xff] }
  0x3b   :  { %v479_v42 = vadd.f32 %v478_v32, %v333_v2  ;;  %v2118_v32 = vld [vmem:[%s6394_s1 + $0x4f8] sm:$0xff]  ;;  %v909_v39 = vadd.f32 %v908_v35, %v763_v29  ;;  %v347_v35 = vmul.f32 %v200_v26, %v3089_v21  ;;  %v206_v26 = vld [vmem:[%s6394_s1 + $0x180] sm:$0xff] }
  0x3c   :  { %v765_v50 = vmul.f32 %v2118_v32, %v2749_v43  ;;  %v3102_v32 = vld [vmem:[%s6393_s0 + $0x158] sm:$0xff] }
  0x3d   :  { %v480_v53 = vadd.f32 %v479_v42, %v334_v30  ;;  %v2119_v42 = vld [vmem:[%s6394_s1 + $0x500] sm:$0xff]  ;;  %v910_v43 = vadd.f32 %v909_v39, %v764_v40  ;;  %v348_v39 = vmul.f32 %v201_v37, %v3102_v32  ;;  %v207_v37 = vld [vmem:[%s6394_s1 + $0x188] sm:$0xff] }
  0x3e   :  { %v766_v60 = vmul.f32 %v2119_v42, %v2758_v47  ;;  %v3115_v42 = vld [vmem:[%s6393_s0 + $0x160] sm:$0xff] }
  0x3f   :  { %v481_v62 = vadd.f32 %v480_v53, %v335_v41  ;;  %v2120_v53 = vld [vmem:[%s6394_s1 + $0x508] sm:$0xff]  ;;  %v911_v47 = vadd.f32 %v910_v43, %v765_v50  ;;  %v349_v43 = vmul.f32 %v202_v48, %v3115_v42  ;;  %v208_v48 = vld [vmem:[%s6394_s1 + $0x190] sm:$0xff] }
  0x40   :  { %v767_v9 = vmul.f32 %v2120_v53, %v2767_v51  ;;  %v3128_v53 = vld [vmem:[%s6393_s0 + $0x168] sm:$0xff] }
  0x41   :  { %v482_v13 = vadd.f32 %v481_v62, %v336_v52  ;;  %v2121_v62 = vld [vmem:[%s6394_s1 + $0x510] sm:$0xff]  ;;  %v912_v51 = vadd.f32 %v911_v47, %v766_v60  ;;  %v350_v47 = vmul.f32 %v203_v58, %v3128_v53  ;;  %v209_v58 = vld [vmem:[%s6394_s1 + $0x198] sm:$0xff] }
  0x42   :  { %v768_v1 = vmul.f32 %v2121_v62, %v2776_v55  ;;  %v3141_v62 = vld [vmem:[%s6393_s0 + $0x170] sm:$0xff] }
  0x43   :  { %v483_v2 = vadd.f32 %v482_v13, %v337_v61  ;;  %v2122_v13 = vld [vmem:[%s6394_s1 + $0x518] sm:$0xff]  ;;  %v913_v55 = vadd.f32 %v912_v51, %v767_v9  ;;  %v351_v51 = vmul.f32 %v204_v8, %v3141_v62  ;;  %v210_v8 = vld [vmem:[%s6394_s1 + $0x1a0] sm:$0xff] }
  0x44   :  { %v769_v29 = vmul.f32 %v2122_v13, %v2785_v59  ;;  %v3154_v13 = vld [vmem:[%s6393_s0 + $0x178] sm:$0xff] }
  0x45   :  { %v484_v30 = vadd.f32 %v483_v2, %v338_v10  ;;  %v2123_v2 = vld [vmem:[%s6394_s1 + $0x520] sm:$0xff]  ;;  %v914_v59 = vadd.f32 %v913_v55, %v768_v1  ;;  %v352_v55 = vmul.f32 %v205_v0, %v3154_v13  ;;  %v211_v0 = vld [vmem:[%s6394_s1 + $0x1a8] sm:$0xff] }
  0x46   :  { %v770_v40 = vmul.f32 %v2123_v2, %v2794_v63  ;;  %v3167_v2 = vld [vmem:[%s6393_s0 + $0x180] sm:$0xff] }
  0x47   :  { %v485_v41 = vadd.f32 %v484_v30, %v339_v20  ;;  %v2124_v30 = vld [vmem:[%s6394_s1 + $0x528] sm:$0xff]  ;;  %v915_v63 = vadd.f32 %v914_v59, %v769_v29  ;;  %v353_v59 = vmul.f32 %v206_v26, %v3167_v2  ;;  %v212_v26 = vld [vmem:[%s6394_s1 + $0x1b0] sm:$0xff] }
  0x48   :  { %v771_v50 = vmul.f32 %v2124_v30, %v2803_v7  ;;  %v3180_v30 = vld [vmem:[%s6393_s0 + $0x188] sm:$0xff] }
  0x49   :  { %v486_v52 = vadd.f32 %v485_v41, %v340_v3  ;;  %v2125_v41 = vld [vmem:[%s6394_s1 + $0x530] sm:$0xff]  ;;  %v916_v7 = vadd.f32 %v915_v63, %v770_v40  ;;  %v354_v63 = vmul.f32 %v207_v37, %v3180_v30  ;;  %v213_v37 = vld [vmem:[%s6394_s1 + $0x1b8] sm:$0xff] }
  0x4a   :  { %v772_v60 = vmul.f32 %v2125_v41, %v2812_v12  ;;  %v3193_v41 = vld [vmem:[%s6393_s0 + $0x190] sm:$0xff] }
  0x4b   :  { %v487_v61 = vadd.f32 %v486_v52, %v341_v11  ;;  %v2126_v52 = vld [vmem:[%s6394_s1 + $0x538] sm:$0xff]  ;;  %v917_v12 = vadd.f32 %v916_v7, %v771_v50  ;;  %v355_v7 = vmul.f32 %v208_v48, %v3193_v41  ;;  %v3276_v48 = vld [vmem:[%s6393_s0 + $0x1c8] sm:$0xff] }
  0x4c   :  { %v773_v9 = vmul.f32 %v2126_v52, %v2821_v17  ;;  %v3206_v52 = vld [vmem:[%s6393_s0 + $0x198] sm:$0xff] }
  0x4d   :  { %v488_v10 = vadd.f32 %v487_v61, %v342_v15  ;;  %v2127_v61 = vld [vmem:[%s6394_s1 + $0x540] sm:$0xff]  ;;  %v918_v17 = vadd.f32 %v917_v12, %v772_v60  ;;  %v356_v12 = vmul.f32 %v209_v58, %v3206_v52 }
  0x4e   :  { %v774_v1 = vmul.f32 %v2127_v61, %v2830_v22  ;;  %v3219_v61 = vld [vmem:[%s6393_s0 + $0x1a0] sm:$0xff] }
  0x4f   :  { %v489_v20 = vadd.f32 %v488_v10, %v343_v19  ;;  %v2128_v10 = vld [vmem:[%s6394_s1 + $0x548] sm:$0xff]  ;;  %v919_v22 = vadd.f32 %v918_v17, %v773_v9  ;;  %v357_v17 = vmul.f32 %v210_v8, %v3219_v61 }
  0x50   :  { %v775_v29 = vmul.f32 %v2128_v10, %v2839_v28  ;;  %v3232_v10 = vld [vmem:[%s6393_s0 + $0x1a8] sm:$0xff] }
  0x51   :  { %v490_v3 = vadd.f32 %v489_v20, %v344_v23  ;;  %v2129_v20 = vld [vmem:[%s6394_s1 + $0x550] sm:$0xff]  ;;  %v920_v28 = vadd.f32 %v919_v22, %v774_v1  ;;  %v358_v22 = vmul.f32 %v211_v0, %v3232_v10  ;;  %v1202_v8 = vld [vmem:[%s6394_s1 + $0x8] sm:$0xff] }
  0x52   :  { %v776_v40 = vmul.f32 %v2129_v20, %v2848_v33  ;;  %v3245_v20 = vld [vmem:[%s6393_s0 + $0x1b0] sm:$0xff] }
  0x53   :  { %v491_v11 = vadd.f32 %v490_v3, %v345_v27  ;;  %v2130_v3 = vld [vmem:[%s6394_s1 + $0x558] sm:$0xff]  ;;  %v921_v33 = vadd.f32 %v920_v28, %v775_v29  ;;  %v3267_v28 = vld [vmem:[%s6393_s0 + $0x1c0] sm:$0xff] }
  0x54   :  { %v777_v50 = vmul.f32 %v2130_v3, %v2857_v38  ;;  %v3258_v3 = vld [vmem:[%s6393_s0 + $0x1b8] sm:$0xff] }
  0x55   :  { %v492_v15 = vadd.f32 %v491_v11, %v346_v31  ;;  %v2131_v11 = vld [vmem:[%s6394_s1 + $0x560] sm:$0xff]  ;;  %v922_v38 = vadd.f32 %v921_v33, %v776_v40  ;;  %v360_v58 = vmul.f32 %v213_v37, %v3258_v3  ;;  %v217_v37 = vld [vmem:[%s6394_s1 + $0x1d8] sm:$0xff] }
  0x56   :  { %v778_v60 = vmul.f32 %v2131_v11, %v2866_v44  ;;  %v2137_v11 = vld [vmem:[%s6394_s1 + $0x590] sm:$0xff] }
  0x57   :  { %v493_v19 = vadd.f32 %v492_v15, %v347_v35  ;;  %v2132_v15 = vld [vmem:[%s6394_s1 + $0x568] sm:$0xff]  ;;  %v923_v44 = vadd.f32 %v922_v38, %v777_v50 }
  0x58   :  { %v779_v9 = vmul.f32 %v2132_v15, %v2875_v49  ;;  %v215_v15 = vld [vmem:[%s6394_s1 + $0x1c8] sm:$0xff] }
  0x59   :  { %v494_v23 = vadd.f32 %v493_v19, %v348_v39  ;;  %v2133_v19 = vld [vmem:[%s6394_s1 + $0x570] sm:$0xff]  ;;  %v924_v49 = vadd.f32 %v923_v44, %v778_v60  ;;  %v2255_v38 = vld [vmem:[%s6393_s0 + $0x4a8] sm:$0xff] }
  0x5a   :  { %v780_v1 = vmul.f32 %v2133_v19, %v2884_v54  ;;  %v1201_v19 = vld [vmem:[%s6394_s1] sm:$0xff] }
  0x5b   :  { %v495_v27 = vadd.f32 %v494_v23, %v349_v43  ;;  %v2134_v23 = vld [vmem:[%s6394_s1 + $0x578] sm:$0xff]  ;;  %v925_v54 = vadd.f32 %v924_v49, %v779_v9  ;;  %v1203_v9 = vld [vmem:[%s6394_s1 + $0x10] sm:$0xff] }
  0x5c   :  { %v781_v29 = vmul.f32 %v2134_v23, %v2902_v4  ;;  %v1204_v23 = vld [vmem:[%s6394_s1 + $0x18] sm:$0xff]  ;;  %v3327_v49 = vld [vmem:[%s6393_s0 + $0x1d0] sm:$0xff] }
  0x5d   :  { %v496_v31 = vadd.f32 %v495_v27, %v350_v47  ;;  %v2135_v27 = vld [vmem:[%s6394_s1 + $0x580] sm:$0xff]  ;;  %v926_v4 = vadd.f32 %v925_v54, %v780_v1 }
  0x5e   :  { %v782_v40 = vmul.f32 %v2135_v27, %v2920_v18  ;;  %v214_v18 = vld [vmem:[%s6394_s1 + $0x1c0] sm:$0xff] }
  0x5f   :  { %v497_v35 = vadd.f32 %v496_v31, %v351_v51  ;;  %v2136_v31 = vld [vmem:[%s6394_s1 + $0x588] sm:$0xff]  ;;  %v927_v33 = vadd.f32 %v926_v4, %v781_v29  ;;  %v361_v44 = vmul.f32 %v214_v18, %v3267_v28  ;;  %v362_v29 = vmul.f32 %v215_v15, %v3276_v48 }
  0x60   :  { %v783_v50 = vmul.f32 %v2136_v31, %v2933_v25  ;;  %v2138_v25 = vld [vmem:[%s6394_s1 + $0x598] sm:$0xff]  ;;  %v1205_v31 = vld [vmem:[%s6394_s1 + $0x20] sm:$0xff]  ;;  %v1206_v15 = vld [vmem:[%s6394_s1 + $0x28] sm:$0xff] }
  0x61   :  { %v498_v39 = vadd.f32 %v497_v35, %v352_v55 }
  0x63   :  { %v499_v43 = vadd.f32 %v498_v39, %v353_v59  ;;  %v359_v59 = vmul.f32 %v212_v26, %v3245_v20  ;;  %v3290_v39 = vld [vmem:[%s6393_s0 + $0x4a0] sm:$0xff]  ;;  %v1350_v26 = vmul.f32 %v2255_v38, %v1203_v9  ;;  %v2259_v9 = vld [vmem:[%s6393_s0 + $0x4c8] sm:$0xff] }
  0x64   :  { %v1349_v1 = vmul.f32 %v3290_v39, %v1202_v8  ;;  %v2142_v8 = vld [vmem:[%s6394_s1 + $0x5b8] sm:$0xff] }
  0x65   :  { %v500_v47 = vadd.f32 %v499_v43, %v354_v63  ;;  %v3285_v63 = vld [vmem:[%s6393_s0 + $0x498] sm:$0xff]  ;;  %v928_v43 = vadd.f32 %v927_v33, %v782_v40  ;;  %v2258_v33 = vld [vmem:[%s6393_s0 + $0x4c0] sm:$0xff] }
  0x66   :  { %v1348_v0 = vmul.f32 %v3285_v63, %v1201_v19 }
  0x67   :  { %v501_v51 = vadd.f32 %v500_v47, %v355_v7  ;;  %v784_v7 = vmul.f32 %v2137_v11, %v2946_v36  ;;  %v2139_v36 = vld [vmem:[%s6394_s1 + $0x5a0] sm:$0xff]  ;;  %v2256_v47 = vld [vmem:[%s6393_s0 + $0x4b0] sm:$0xff]  ;;  %v929_v27 = vadd.f32 %v928_v43, %v783_v50 }
  0x68   :  { %v786_v40 = vmul.f32 %v2139_v36, %v2972_v57  ;;  %v2141_v50 = vld [vmem:[%s6394_s1 + $0x5b0] sm:$0xff]  ;;  %v3365_v57 = vld [vmem:[%s6393_s0 + $0x1e0] sm:$0xff] }
  0x69   :  { %v502_v55 = vadd.f32 %v501_v51, %v356_v12  ;;  %v785_v51 = vmul.f32 %v2138_v25, %v2959_v46  ;;  %v3346_v46 = vld [vmem:[%s6393_s0 + $0x1d8] sm:$0xff]  ;;  %v930_v4 = vadd.f32 %v929_v27, %v784_v7  ;;  %v788_v36 = vmul.f32 %v2141_v50, %v2998_v16  ;;  %v2260_v27 = vld [vmem:[%s6393_s0 + $0x4d0] sm:$0xff] }
  0x6a   :  { %v364_v43 = vmul.f32 %v217_v37, %v3346_v46  ;;  %v3403_v16 = vld [vmem:[%s6393_s0 + $0x1f0] sm:$0xff] }
  0x6b   :  { %v503_v35 = vadd.f32 %v502_v55, %v357_v17  ;;  %v216_v17 = vld [vmem:[%s6394_s1 + $0x1d0] sm:$0xff]  ;;  %v2257_v55 = vld [vmem:[%s6393_s0 + $0x4b8] sm:$0xff]  ;;  %v931_v25 = vadd.f32 %v930_v4, %v785_v51  ;;  %v2143_v51 = vld [vmem:[%s6394_s1 + $0x5c0] sm:$0xff] }
  0x6c   :  { %v363_v11 = vmul.f32 %v216_v17, %v3327_v49  ;;  %v1352_v38 = vmul.f32 %v2257_v55, %v1205_v31  ;;  %v2144_v4 = vld [vmem:[%s6394_s1 + $0x5c8] sm:$0xff] }
  0x6d   :  { %v504_v60 = vadd.f32 %v503_v35, %v358_v22  ;;  %v2140_v22 = vld [vmem:[%s6394_s1 + $0x5a8] sm:$0xff]  ;;  %v1495_v35 = vadd.f32 %v1349_v1, %v1348_v0 }
  0x6f   :  { %v505_v12 = vadd.f32 %v504_v60, %v359_v59  ;;  %v1351_v59 = vmul.f32 %v2256_v47, %v1204_v23  ;;  %v787_v60 = vmul.f32 %v2140_v22, %v2985_v6  ;;  %v1496_v7 = vadd.f32 %v1495_v35, %v1350_v26  ;;  %v3384_v6 = vld [vmem:[%s6393_s0 + $0x1e8] sm:$0xff]  ;;  %v1208_v26 = vld [vmem:[%s6394_s1 + $0x38] sm:$0xff]  ;;  %v1209_v35 = vld [vmem:[%s6394_s1 + $0x40] sm:$0xff] }
  0x70   :  { %v932_v47 = vadd.f32 %v931_v25, %v786_v40  ;;  %v1353_v23 = vmul.f32 %v2258_v33, %v1206_v15  ;;  %v1355_v33 = vmul.f32 %v2260_v27, %v1208_v26  ;;  %v2145_v25 = vld [vmem:[%s6394_s1 + $0x5d0] sm:$0xff] }
  0x71   :  { %v506_v54 = vadd.f32 %v505_v12, %v360_v58  ;;  %v218_v58 = vld [vmem:[%s6394_s1 + $0x1e0] sm:$0xff]  ;;  %v219_v12 = vld [vmem:[%s6394_s1 + $0x1e8] sm:$0xff]  ;;  %v1497_v0 = vadd.f32 %v1496_v7, %v1351_v59  ;;  %v2261_v59 = vld [vmem:[%s6393_s0 + $0x4d8] sm:$0xff] }
  0x72   :  { %v365_v1 = vmul.f32 %v218_v58, %v3365_v57  ;;  %v933_v22 = vadd.f32 %v932_v47, %v787_v60  ;;  %v366_v37 = vmul.f32 %v219_v12, %v3384_v6  ;;  %v1210_v7 = vld [vmem:[%s6394_s1 + $0x48] sm:$0xff]  ;;  %v2146_v47 = vld [vmem:[%s6394_s1 + $0x5d8] sm:$0xff] }
  0x73   :  { %v507_v18 = vadd.f32 %v506_v54, %v361_v44  ;;  %v1207_v44 = vld [vmem:[%s6394_s1 + $0x30] sm:$0xff]  ;;  %v789_v54 = vmul.f32 %v2142_v8, %v3011_v24  ;;  %v1498_v31 = vadd.f32 %v1497_v0, %v1352_v38  ;;  %v3422_v24 = vld [vmem:[%s6393_s0 + $0x1f8] sm:$0xff]  ;;  %v2262_v38 = vld [vmem:[%s6393_s0 + $0x4e0] sm:$0xff] }
  0x74   :  { %v1354_v55 = vmul.f32 %v2259_v9, %v1207_v44  ;;  %v934_v50 = vadd.f32 %v933_v22, %v788_v36  ;;  %v1356_v9 = vmul.f32 %v2261_v59, %v1209_v35  ;;  %v1211_v0 = vld [vmem:[%s6394_s1 + $0x50] sm:$0xff]  ;;  %v1357_v27 = vmul.f32 %v2262_v38, %v1210_v7  ;;  %v2147_v22 = vld [vmem:[%s6394_s1 + $0x5e0] sm:$0xff] }
  0x75   :  { %v508_v19 = vadd.f32 %v507_v18, %v362_v29  ;;  %v220_v29 = vld [vmem:[%s6394_s1 + $0x1f0] sm:$0xff]  ;;  %v790_v18 = vmul.f32 %v2143_v51, %v3024_v34  ;;  %v1499_v15 = vadd.f32 %v1498_v31, %v1353_v23  ;;  %v3441_v34 = vld [vmem:[%s6393_s0 + $0x200] sm:$0xff]  ;;  %v2263_v23 = vld [vmem:[%s6393_s0 + $0x4e8] sm:$0xff] }
  0x76   :  { %v367_v58 = vmul.f32 %v220_v29, %v3403_v16  ;;  %v935_v8 = vadd.f32 %v934_v50, %v789_v54  ;;  %v1212_v31 = vld [vmem:[%s6394_s1 + $0x58] sm:$0xff]  ;;  %v1358_v59 = vmul.f32 %v2263_v23, %v1211_v0  ;;  %v2148_v50 = vld [vmem:[%s6394_s1 + $0x5e8] sm:$0xff] }
  0x77   :  { %v509_v17 = vadd.f32 %v508_v19, %v363_v11  ;;  %v221_v11 = vld [vmem:[%s6394_s1 + $0x1f8] sm:$0xff]  ;;  %v791_v19 = vmul.f32 %v2144_v4, %v3037_v45  ;;  %v1500_v44 = vadd.f32 %v1499_v15, %v1354_v55  ;;  %v3460_v45 = vld [vmem:[%s6393_s0 + $0x208] sm:$0xff]  ;;  %v2264_v55 = vld [vmem:[%s6393_s0 + $0x4f0] sm:$0xff] }
  0x78   :  { %v368_v12 = vmul.f32 %v221_v11, %v3422_v24  ;;  %v936_v51 = vadd.f32 %v935_v8, %v790_v18  ;;  %v1213_v15 = vld [vmem:[%s6394_s1 + $0x60] sm:$0xff]  ;;  %v1359_v38 = vmul.f32 %v2264_v55, %v1212_v31  ;;  %v2149_v8 = vld [vmem:[%s6394_s1 + $0x5f0] sm:$0xff] }
  0x79   :  { %v510_v40 = vadd.f32 %v509_v17, %v364_v43  ;;  %v222_v43 = vld [vmem:[%s6394_s1 + $0x200] sm:$0xff]  ;;  %v792_v17 = vmul.f32 %v2145_v25, %v3050_v56  ;;  %v1501_v26 = vadd.f32 %v1500_v44, %v1355_v33  ;;  %v3479_v56 = vld [vmem:[%s6393_s0 + $0x210] sm:$0xff]  ;;  %v2265_v33 = vld [vmem:[%s6393_s0 + $0x4f8] sm:$0xff] }
  0x7a   :  { %v369_v29 = vmul.f32 %v222_v43, %v3441_v34  ;;  %v937_v4 = vadd.f32 %v936_v51, %v791_v19  ;;  %v1214_v44 = vld [vmem:[%s6394_s1 + $0x68] sm:$0xff]  ;;  %v1360_v23 = vmul.f32 %v2265_v33, %v1213_v15  ;;  %v2150_v51 = vld [vmem:[%s6394_s1 + $0x5f8] sm:$0xff] }
  0x7b   :  { %v511_v60 = vadd.f32 %v510_v40, %v365_v1  ;;  %v223_v1 = vld [vmem:[%s6394_s1 + $0x208] sm:$0xff]  ;;  %v793_v40 = vmul.f32 %v2146_v47, %v3063_v5  ;;  %v1502_v35 = vadd.f32 %v1501_v26, %v1356_v9  ;;  %v3498_v5 = vld [vmem:[%s6393_s0 + $0x218] sm:$0xff]  ;;  %v2266_v9 = vld [vmem:[%s6393_s0 + $0x500] sm:$0xff] }
  0x7c   :  { %v370_v11 = vmul.f32 %v223_v1, %v3460_v45  ;;  %v938_v25 = vadd.f32 %v937_v4, %v792_v17  ;;  %v1215_v26 = vld [vmem:[%s6394_s1 + $0x70] sm:$0xff]  ;;  %v1361_v55 = vmul.f32 %v2266_v9, %v1214_v44  ;;  %v2151_v4 = vld [vmem:[%s6394_s1 + $0x600] sm:$0xff] }
  0x7d   :  { %v512_v36 = vadd.f32 %v511_v60, %v366_v37  ;;  %v224_v37 = vld [vmem:[%s6394_s1 + $0x210] sm:$0xff]  ;;  %v794_v60 = vmul.f32 %v2147_v22, %v3076_v14  ;;  %v1503_v7 = vadd.f32 %v1502_v35, %v1357_v27  ;;  %v3517_v14 = vld [vmem:[%s6393_s0 + $0x220] sm:$0xff]  ;;  %v2267_v27 = vld [vmem:[%s6393_s0 + $0x508] sm:$0xff] }
  0x7e   :  { %v371_v43 = vmul.f32 %v224_v37, %v3479_v56  ;;  %v939_v47 = vadd.f32 %v938_v25, %v793_v40  ;;  %v1216_v35 = vld [vmem:[%s6394_s1 + $0x78] sm:$0xff]  ;;  %v1362_v33 = vmul.f32 %v2267_v27, %v1215_v26  ;;  %v2152_v25 = vld [vmem:[%s6394_s1 + $0x608] sm:$0xff] }
  0x7f   :  { %v513_v54 = vadd.f32 %v512_v36, %v367_v58  ;;  %v225_v58 = vld [vmem:[%s6394_s1 + $0x218] sm:$0xff]  ;;  %v795_v36 = vmul.f32 %v2148_v50, %v3089_v21  ;;  %v1504_v0 = vadd.f32 %v1503_v7, %v1358_v59  ;;  %v3536_v21 = vld [vmem:[%s6393_s0 + $0x228] sm:$0xff]  ;;  %v2268_v59 = vld [vmem:[%s6393_s0 + $0x510] sm:$0xff] }
  0x80   :  { %v372_v1 = vmul.f32 %v225_v58, %v3498_v5  ;;  %v940_v22 = vadd.f32 %v939_v47, %v794_v60  ;;  %v1217_v7 = vld [vmem:[%s6394_s1 + $0x80] sm:$0xff]  ;;  %v1363_v9 = vmul.f32 %v2268_v59, %v1216_v35  ;;  %v2153_v47 = vld [vmem:[%s6394_s1 + $0x610] sm:$0xff] }
  0x81   :  { %v514_v18 = vadd.f32 %v513_v54, %v368_v12  ;;  %v226_v12 = vld [vmem:[%s6394_s1 + $0x220] sm:$0xff]  ;;  %v796_v54 = vmul.f32 %v2149_v8, %v3102_v32  ;;  %v1505_v31 = vadd.f32 %v1504_v0, %v1359_v38  ;;  %v3555_v32 = vld [vmem:[%s6393_s0 + $0x230] sm:$0xff]  ;;  %v2269_v38 = vld [vmem:[%s6393_s0 + $0x518] sm:$0xff] }
  0x82   :  { %v373_v37 = vmul.f32 %v226_v12, %v3517_v14  ;;  %v941_v50 = vadd.f32 %v940_v22, %v795_v36  ;;  %v1218_v0 = vld [vmem:[%s6394_s1 + $0x88] sm:$0xff]  ;;  %v1364_v27 = vmul.f32 %v2269_v38, %v1217_v7  ;;  %v2154_v22 = vld [vmem:[%s6394_s1 + $0x618] sm:$0xff] }
  0x83   :  { %v515_v19 = vadd.f32 %v514_v18, %v369_v29  ;;  %v227_v29 = vld [vmem:[%s6394_s1 + $0x228] sm:$0xff]  ;;  %v797_v18 = vmul.f32 %v2150_v51, %v3115_v42  ;;  %v1506_v15 = vadd.f32 %v1505_v31, %v1360_v23  ;;  %v3574_v42 = vld [vmem:[%s6393_s0 + $0x238] sm:$0xff]  ;;  %v2270_v23 = vld [vmem:[%s6393_s0 + $0x520] sm:$0xff] }
  0x84   :  { %v374_v58 = vmul.f32 %v227_v29, %v3536_v21  ;;  %v942_v8 = vadd.f32 %v941_v50, %v796_v54  ;;  %v1219_v31 = vld [vmem:[%s6394_s1 + $0x90] sm:$0xff]  ;;  %v1365_v59 = vmul.f32 %v2270_v23, %v1218_v0  ;;  %v2155_v50 = vld [vmem:[%s6394_s1 + $0x620] sm:$0xff] }
  0x85   :  { %v516_v17 = vadd.f32 %v515_v19, %v370_v11  ;;  %v228_v11 = vld [vmem:[%s6394_s1 + $0x230] sm:$0xff]  ;;  %v798_v19 = vmul.f32 %v2151_v4, %v3128_v53  ;;  %v1507_v44 = vadd.f32 %v1506_v15, %v1361_v55  ;;  %v3593_v53 = vld [vmem:[%s6393_s0 + $0x240] sm:$0xff]  ;;  %v2271_v55 = vld [vmem:[%s6393_s0 + $0x528] sm:$0xff] }
  0x86   :  { %v375_v12 = vmul.f32 %v228_v11, %v3555_v32  ;;  %v943_v51 = vadd.f32 %v942_v8, %v797_v18  ;;  %v1220_v15 = vld [vmem:[%s6394_s1 + $0x98] sm:$0xff]  ;;  %v1366_v38 = vmul.f32 %v2271_v55, %v1219_v31  ;;  %v2156_v8 = vld [vmem:[%s6394_s1 + $0x628] sm:$0xff] }
  0x87   :  { %v517_v40 = vadd.f32 %v516_v17, %v371_v43  ;;  %v229_v43 = vld [vmem:[%s6394_s1 + $0x238] sm:$0xff]  ;;  %v799_v17 = vmul.f32 %v2152_v25, %v3141_v62  ;;  %v1508_v26 = vadd.f32 %v1507_v44, %v1362_v33  ;;  %v3612_v62 = vld [vmem:[%s6393_s0 + $0x248] sm:$0xff]  ;;  %v2272_v33 = vld [vmem:[%s6393_s0 + $0x530] sm:$0xff] }
  0x88   :  { %v376_v29 = vmul.f32 %v229_v43, %v3574_v42  ;;  %v944_v4 = vadd.f32 %v943_v51, %v798_v19  ;;  %v1221_v44 = vld [vmem:[%s6394_s1 + $0xa0] sm:$0xff]  ;;  %v1367_v23 = vmul.f32 %v2272_v33, %v1220_v15  ;;  %v2157_v51 = vld [vmem:[%s6394_s1 + $0x630] sm:$0xff] }
  0x89   :  { %v518_v60 = vadd.f32 %v517_v40, %v372_v1  ;;  %v230_v1 = vld [vmem:[%s6394_s1 + $0x240] sm:$0xff]  ;;  %v800_v40 = vmul.f32 %v2153_v47, %v3154_v13  ;;  %v1509_v35 = vadd.f32 %v1508_v26, %v1363_v9  ;;  %v3631_v13 = vld [vmem:[%s6393_s0 + $0x250] sm:$0xff]  ;;  %v2273_v9 = vld [vmem:[%s6393_s0 + $0x538] sm:$0xff] }
  0x8a   :  { %v377_v11 = vmul.f32 %v230_v1, %v3593_v53  ;;  %v945_v25 = vadd.f32 %v944_v4, %v799_v17  ;;  %v1222_v26 = vld [vmem:[%s6394_s1 + $0xa8] sm:$0xff]  ;;  %v1368_v55 = vmul.f32 %v2273_v9, %v1221_v44  ;;  %v2158_v4 = vld [vmem:[%s6394_s1 + $0x638] sm:$0xff] }
  0x8b   :  { %v519_v36 = vadd.f32 %v518_v60, %v373_v37  ;;  %v231_v37 = vld [vmem:[%s6394_s1 + $0x248] sm:$0xff]  ;;  %v801_v60 = vmul.f32 %v2154_v22, %v3167_v2  ;;  %v1510_v7 = vadd.f32 %v1509_v35, %v1364_v27  ;;  %v3650_v2 = vld [vmem:[%s6393_s0 + $0x258] sm:$0xff]  ;;  %v2274_v27 = vld [vmem:[%s6393_s0 + $0x540] sm:$0xff] }
  0x8c   :  { %v378_v43 = vmul.f32 %v231_v37, %v3612_v62  ;;  %v946_v47 = vadd.f32 %v945_v25, %v800_v40  ;;  %v1223_v35 = vld [vmem:[%s6394_s1 + $0xb0] sm:$0xff]  ;;  %v1369_v33 = vmul.f32 %v2274_v27, %v1222_v26  ;;  %v2159_v25 = vld [vmem:[%s6394_s1 + $0x640] sm:$0xff] }
  0x8d   :  { %v520_v54 = vadd.f32 %v519_v36, %v374_v58  ;;  %v232_v58 = vld [vmem:[%s6394_s1 + $0x250] sm:$0xff]  ;;  %v802_v36 = vmul.f32 %v2155_v50, %v3180_v30  ;;  %v1511_v0 = vadd.f32 %v1510_v7, %v1365_v59  ;;  %v3669_v30 = vld [vmem:[%s6393_s0 + $0x260] sm:$0xff]  ;;  %v2275_v59 = vld [vmem:[%s6393_s0 + $0x548] sm:$0xff] }
  0x8e   :  { %v379_v1 = vmul.f32 %v232_v58, %v3631_v13  ;;  %v947_v22 = vadd.f32 %v946_v47, %v801_v60  ;;  %v1224_v7 = vld [vmem:[%s6394_s1 + $0xb8] sm:$0xff]  ;;  %v1370_v9 = vmul.f32 %v2275_v59, %v1223_v35  ;;  %v2160_v47 = vld [vmem:[%s6394_s1 + $0x648] sm:$0xff] }
  0x8f   :  { %v521_v18 = vadd.f32 %v520_v54, %v375_v12  ;;  %v233_v12 = vld [vmem:[%s6394_s1 + $0x258] sm:$0xff]  ;;  %v803_v54 = vmul.f32 %v2156_v8, %v3193_v41  ;;  %v1512_v31 = vadd.f32 %v1511_v0, %v1366_v38  ;;  %v3688_v41 = vld [vmem:[%s6393_s0 + $0x268] sm:$0xff]  ;;  %v2276_v38 = vld [vmem:[%s6393_s0 + $0x550] sm:$0xff] }
  0x90   :  { %v380_v37 = vmul.f32 %v233_v12, %v3650_v2  ;;  %v948_v50 = vadd.f32 %v947_v22, %v802_v36  ;;  %v1225_v0 = vld [vmem:[%s6394_s1 + $0xc0] sm:$0xff]  ;;  %v1371_v27 = vmul.f32 %v2276_v38, %v1224_v7  ;;  %v2161_v22 = vld [vmem:[%s6394_s1 + $0x650] sm:$0xff] }
  0x91   :  { %v522_v19 = vadd.f32 %v521_v18, %v376_v29  ;;  %v234_v29 = vld [vmem:[%s6394_s1 + $0x260] sm:$0xff]  ;;  %v804_v18 = vmul.f32 %v2157_v51, %v3206_v52  ;;  %v1513_v15 = vadd.f32 %v1512_v31, %v1367_v23  ;;  %v3707_v52 = vld [vmem:[%s6393_s0 + $0x270] sm:$0xff]  ;;  %v2277_v23 = vld [vmem:[%s6393_s0 + $0x558] sm:$0xff] }
  0x92   :  { %v381_v58 = vmul.f32 %v234_v29, %v3669_v30  ;;  %v949_v8 = vadd.f32 %v948_v50, %v803_v54  ;;  %v1226_v31 = vld [vmem:[%s6394_s1 + $0xc8] sm:$0xff]  ;;  %v1372_v59 = vmul.f32 %v2277_v23, %v1225_v0  ;;  %v2162_v50 = vld [vmem:[%s6394_s1 + $0x658] sm:$0xff] }
  0x93   :  { %v523_v17 = vadd.f32 %v522_v19, %v377_v11  ;;  %v235_v11 = vld [vmem:[%s6394_s1 + $0x268] sm:$0xff]  ;;  %v805_v19 = vmul.f32 %v2158_v4, %v3219_v61  ;;  %v1514_v44 = vadd.f32 %v1513_v15, %v1368_v55  ;;  %v3726_v61 = vld [vmem:[%s6393_s0 + $0x278] sm:$0xff]  ;;  %v2278_v55 = vld [vmem:[%s6393_s0 + $0x560] sm:$0xff] }
  0x94   :  { %v382_v12 = vmul.f32 %v235_v11, %v3688_v41  ;;  %v950_v51 = vadd.f32 %v949_v8, %v804_v18  ;;  %v1227_v15 = vld [vmem:[%s6394_s1 + $0xd0] sm:$0xff]  ;;  %v1373_v38 = vmul.f32 %v2278_v55, %v1226_v31  ;;  %v2163_v8 = vld [vmem:[%s6394_s1 + $0x660] sm:$0xff] }
  0x95   :  { %v524_v40 = vadd.f32 %v523_v17, %v378_v43  ;;  %v236_v43 = vld [vmem:[%s6394_s1 + $0x270] sm:$0xff]  ;;  %v806_v17 = vmul.f32 %v2159_v25, %v3232_v10  ;;  %v1515_v26 = vadd.f32 %v1514_v44, %v1369_v33  ;;  %v3745_v10 = vld [vmem:[%s6393_s0 + $0x280] sm:$0xff]  ;;  %v2279_v33 = vld [vmem:[%s6393_s0 + $0x568] sm:$0xff] }
  0x96   :  { %v383_v29 = vmul.f32 %v236_v43, %v3707_v52  ;;  %v951_v4 = vadd.f32 %v950_v51, %v805_v19  ;;  %v1228_v44 = vld [vmem:[%s6394_s1 + $0xd8] sm:$0xff]  ;;  %v1374_v23 = vmul.f32 %v2279_v33, %v1227_v15  ;;  %v2164_v51 = vld [vmem:[%s6394_s1 + $0x668] sm:$0xff] }
  0x97   :  { %v525_v60 = vadd.f32 %v524_v40, %v379_v1  ;;  %v237_v1 = vld [vmem:[%s6394_s1 + $0x278] sm:$0xff]  ;;  %v807_v40 = vmul.f32 %v2160_v47, %v3245_v20  ;;  %v1516_v35 = vadd.f32 %v1515_v26, %v1370_v9  ;;  %v3764_v20 = vld [vmem:[%s6393_s0 + $0x288] sm:$0xff]  ;;  %v2280_v9 = vld [vmem:[%s6393_s0 + $0x570] sm:$0xff] }
  0x98   :  { %v384_v11 = vmul.f32 %v237_v1, %v3726_v61  ;;  %v952_v25 = vadd.f32 %v951_v4, %v806_v17  ;;  %v1229_v26 = vld [vmem:[%s6394_s1 + $0xe0] sm:$0xff]  ;;  %v1375_v55 = vmul.f32 %v2280_v9, %v1228_v44  ;;  %v2165_v4 = vld [vmem:[%s6394_s1 + $0x670] sm:$0xff] }
  0x99   :  { %v526_v36 = vadd.f32 %v525_v60, %v380_v37  ;;  %v238_v37 = vld [vmem:[%s6394_s1 + $0x280] sm:$0xff]  ;;  %v808_v60 = vmul.f32 %v2161_v22, %v3258_v3  ;;  %v1517_v7 = vadd.f32 %v1516_v35, %v1371_v27  ;;  %v3783_v3 = vld [vmem:[%s6393_s0 + $0x290] sm:$0xff]  ;;  %v2281_v27 = vld [vmem:[%s6393_s0 + $0x578] sm:$0xff] }
  0x9a   :  { %v385_v43 = vmul.f32 %v238_v37, %v3745_v10  ;;  %v953_v47 = vadd.f32 %v952_v25, %v807_v40  ;;  %v1230_v35 = vld [vmem:[%s6394_s1 + $0xe8] sm:$0xff]  ;;  %v1376_v33 = vmul.f32 %v2281_v27, %v1229_v26  ;;  %v2166_v25 = vld [vmem:[%s6394_s1 + $0x678] sm:$0xff] }
  0x9b   :  { %v527_v54 = vadd.f32 %v526_v36, %v381_v58  ;;  %v239_v58 = vld [vmem:[%s6394_s1 + $0x288] sm:$0xff]  ;;  %v809_v36 = vmul.f32 %v2162_v50, %v3267_v28  ;;  %v1518_v0 = vadd.f32 %v1517_v7, %v1372_v59  ;;  %v3802_v28 = vld [vmem:[%s6393_s0 + $0x298] sm:$0xff]  ;;  %v2282_v59 = vld [vmem:[%s6393_s0 + $0x580] sm:$0xff] }
  0x9c   :  { %v386_v1 = vmul.f32 %v239_v58, %v3764_v20  ;;  %v954_v22 = vadd.f32 %v953_v47, %v808_v60  ;;  %v1231_v7 = vld [vmem:[%s6394_s1 + $0xf0] sm:$0xff]  ;;  %v1377_v9 = vmul.f32 %v2282_v59, %v1230_v35  ;;  %v2167_v47 = vld [vmem:[%s6394_s1 + $0x680] sm:$0xff] }
  0x9d   :  { %v528_v18 = vadd.f32 %v527_v54, %v382_v12  ;;  %v240_v12 = vld [vmem:[%s6394_s1 + $0x290] sm:$0xff]  ;;  %v810_v54 = vmul.f32 %v2163_v8, %v3276_v48  ;;  %v1519_v31 = vadd.f32 %v1518_v0, %v1373_v38  ;;  %v3821_v48 = vld [vmem:[%s6393_s0 + $0x2a0] sm:$0xff]  ;;  %v2283_v38 = vld [vmem:[%s6393_s0 + $0x588] sm:$0xff] }
  0x9e   :  { %v387_v37 = vmul.f32 %v240_v12, %v3783_v3  ;;  %v955_v50 = vadd.f32 %v954_v22, %v809_v36  ;;  %v1232_v0 = vld [vmem:[%s6394_s1 + $0xf8] sm:$0xff]  ;;  %v1378_v27 = vmul.f32 %v2283_v38, %v1231_v7  ;;  %v2168_v22 = vld [vmem:[%s6394_s1 + $0x688] sm:$0xff] }
  0x9f   :  { %v529_v19 = vadd.f32 %v528_v18, %v383_v29  ;;  %v241_v29 = vld [vmem:[%s6394_s1 + $0x298] sm:$0xff]  ;;  %v811_v18 = vmul.f32 %v2164_v51, %v3327_v49  ;;  %v1520_v15 = vadd.f32 %v1519_v31, %v1374_v23  ;;  %v3840_v49 = vld [vmem:[%s6393_s0 + $0x2a8] sm:$0xff]  ;;  %v2284_v23 = vld [vmem:[%s6393_s0 + $0x590] sm:$0xff] }
  0xa0   :  { %v388_v58 = vmul.f32 %v241_v29, %v3802_v28  ;;  %v956_v8 = vadd.f32 %v955_v50, %v810_v54  ;;  %v1233_v31 = vld [vmem:[%s6394_s1 + $0x100] sm:$0xff]  ;;  %v1379_v59 = vmul.f32 %v2284_v23, %v1232_v0 }
  0xa1   :  { %v530_v17 = vadd.f32 %v529_v19, %v384_v11  ;;  %v242_v11 = vld [vmem:[%s6394_s1 + $0x2a0] sm:$0xff]  ;;  %v812_v19 = vmul.f32 %v2165_v4, %v3346_v46  ;;  %v1521_v44 = vadd.f32 %v1520_v15, %v1375_v55  ;;  %v3859_v46 = vld [vmem:[%s6393_s0 + $0x2b0] sm:$0xff]  ;;  %v2285_v55 = vld [vmem:[%s6393_s0 + $0x598] sm:$0xff] }
  0xa2   :  { %v389_v12 = vmul.f32 %v242_v11, %v3821_v48  ;;  %v957_v51 = vadd.f32 %v956_v8, %v811_v18  ;;  %v3887_v11 = vld [vmem:[%s6393_s0 + $0x2c0] sm:$0xff]  ;;  %v1380_v38 = vmul.f32 %v2285_v55, %v1233_v31  ;;  %v2170_v8 = vld [vmem:[%s6394_s1 + $0x698] sm:$0xff]  ;;  %v2172_v31 = vld [vmem:[%s6394_s1 + $0x6a8] sm:$0xff] }
  0xa3   :  { %v531_v40 = vadd.f32 %v530_v17, %v385_v43  ;;  %v243_v43 = vld [vmem:[%s6394_s1 + $0x2a8] sm:$0xff]  ;;  %v813_v17 = vmul.f32 %v2166_v25, %v3365_v57  ;;  %v1522_v26 = vadd.f32 %v1521_v44, %v1376_v33  ;;  %v3878_v57 = vld [vmem:[%s6393_s0 + $0x2b8] sm:$0xff]  ;;  %v2169_v33 = vld [vmem:[%s6394_s1 + $0x690] sm:$0xff] }
  0xa4   :  { %v390_v29 = vmul.f32 %v243_v43, %v3840_v49  ;;  %v958_v4 = vadd.f32 %v957_v51, %v812_v19  ;;  %v246_v15 = vld [vmem:[%s6394_s1 + $0x2c0] sm:$0xff]  ;;  %v1234_v25 = vld [vmem:[%s6394_s1 + $0x108] sm:$0xff]  ;;  %v816_v44 = vmul.f32 %v2169_v33, %v3422_v24  ;;  %v248_v51 = vld [vmem:[%s6394_s1 + $0x2d0] sm:$0xff]  ;;  %v817_v24 = vmul.f32 %v2170_v8, %v3441_v34 }
  0xa5   :  { %v532_v60 = vadd.f32 %v531_v40, %v386_v1  ;;  %v244_v1 = vld [vmem:[%s6394_s1 + $0x2b0] sm:$0xff]  ;;  %v814_v40 = vmul.f32 %v2167_v47, %v3384_v6  ;;  %v1523_v35 = vadd.f32 %v1522_v26, %v1377_v9  ;;  %v815_v6 = vmul.f32 %v2168_v22, %v3403_v16  ;;  %v3910_v16 = vld [vmem:[%s6393_s0 + $0x2c8] sm:$0xff]  ;;  %v3942_v34 = vld [vmem:[%s6393_s0 + $0x2d8] sm:$0xff] }
  0xa6   :  { %v391_v18 = vmul.f32 %v244_v1, %v3859_v46  ;;  %v247_v9 = vld [vmem:[%s6394_s1 + $0x2c8] sm:$0xff]  ;;  %v3919_v47 = vld [vmem:[%s6393_s0 + $0x2d0] sm:$0xff]  ;;  %v393_v23 = vmul.f32 %v246_v15, %v3887_v11  ;;  %v2171_v1 = vld [vmem:[%s6394_s1 + $0x6a0] sm:$0xff] }
  0xa7   :  { %v533_v36 = vadd.f32 %v532_v60, %v387_v37  ;;  %v245_v37 = vld [vmem:[%s6394_s1 + $0x2b8] sm:$0xff]  ;;  %v2286_v60 = vld [vmem:[%s6393_s0 + $0x5a0] sm:$0xff]  ;;  %v1524_v7 = vadd.f32 %v1523_v35, %v1378_v27  ;;  %v2287_v26 = vld [vmem:[%s6393_s0 + $0x5a8] sm:$0xff]  ;;  %v394_v22 = vmul.f32 %v247_v9, %v3910_v16  ;;  %v395_v35 = vmul.f32 %v248_v51, %v3919_v47 }
  0xa8   :  { %v392_v43 = vmul.f32 %v245_v37, %v3878_v57  ;;  %v249_v37 = vld [vmem:[%s6394_s1 + $0x2d8] sm:$0xff]  ;;  %v3980_v8 = vld [vmem:[%s6393_s0 + $0x2e8] sm:$0xff] }
  0xa9   :  { %v534_v54 = vadd.f32 %v533_v36, %v388_v58  ;;  %v959_v58 = vadd.f32 %v958_v4, %v813_v17  ;;  %v1525_v36 = vadd.f32 %v1524_v7, %v1379_v59  ;;  %v1381_v17 = vmul.f32 %v2286_v60, %v1234_v25  ;;  %v3951_v59 = vld [vmem:[%s6393_s0 + $0x2e0] sm:$0xff]  ;;  %v2288_v60 = vld [vmem:[%s6393_s0 + $0x5b0] sm:$0xff]  ;;  %v1236_v25 = vld [vmem:[%s6394_s1 + $0x118] sm:$0xff] }
  0xaa   :  { %v251_v9 = vld [vmem:[%s6394_s1 + $0x2e8] sm:$0xff]  ;;  %v1383_v51 = vmul.f32 %v2288_v60, %v1236_v25  ;;  %v254_v60 = vld [vmem:[%s6394_s1 + $0x300] sm:$0xff] }
  0xab   :  { %v535_v50 = vadd.f32 %v534_v54, %v389_v12  ;;  %v960_v12 = vadd.f32 %v959_v58, %v814_v40  ;;  %v1526_v54 = vadd.f32 %v1525_v36, %v1380_v38  ;;  %v818_v40 = vmul.f32 %v2171_v1, %v3460_v45  ;;  %v2289_v1 = vld [vmem:[%s6393_s0 + $0x5b8] sm:$0xff] }
  0xac   :  { %v819_v45 = vmul.f32 %v2172_v31, %v3479_v56  ;;  %v396_v38 = vmul.f32 %v249_v37, %v3942_v34  ;;  %v2400_v56 = vld [vmem:[%s6394_s1 + $0x498] sm:$0xff]  ;;  %v2176_v37 = vld [vmem:[%s6394_s1 + $0x6c8] sm:$0xff] }
  0xad   :  { %v536_v19 = vadd.f32 %v535_v50, %v390_v29  ;;  %v961_v27 = vadd.f32 %v960_v12, %v815_v6  ;;  %v1235_v29 = vld [vmem:[%s6394_s1 + $0x110] sm:$0xff]  ;;  %v1527_v15 = vadd.f32 %v1526_v54, %v1381_v17  ;;  %v250_v6 = vld [vmem:[%s6394_s1 + $0x2e0] sm:$0xff]  ;;  %v1795_v54 = vmul.f32 %v2400_v56, %v3285_v63  ;;  %v4020_v63 = vld [vmem:[%s6393_s0 + $0x2f8] sm:$0xff] }
  0xae   :  { %v2173_v50 = vld [vmem:[%s6394_s1 + $0x6b0] sm:$0xff]  ;;  %v1382_v33 = vmul.f32 %v2287_v26, %v1235_v29  ;;  %v397_v36 = vmul.f32 %v250_v6, %v3951_v59  ;;  %v1237_v17 = vld [vmem:[%s6394_s1 + $0x120] sm:$0xff]  ;;  %v2291_v6 = vld [vmem:[%s6393_s0 + $0x5c8] sm:$0xff]  ;;  %v823_v25 = vmul.f32 %v2176_v37, %v3555_v32 }
  0xaf   :  { %v537_v0 = vadd.f32 %v536_v19, %v391_v18  ;;  %v962_v4 = vadd.f32 %v961_v27, %v816_v44  ;;  %v2401_v19 = vld [vmem:[%s6394_s1 + $0x4a0] sm:$0xff]  ;;  %v820_v44 = vmul.f32 %v2173_v50, %v3498_v5  ;;  %v3999_v5 = vld [vmem:[%s6393_s0 + $0x2f0] sm:$0xff]  ;;  %v4060_v32 = vld [vmem:[%s6393_s0 + $0x308] sm:$0xff] }
  0xb0   :  { %v252_v27 = vld [vmem:[%s6394_s1 + $0x2f0] sm:$0xff] }
  0xb1   :  { %v538_v55 = vadd.f32 %v537_v0, %v392_v43  ;;  %v963_v58 = vadd.f32 %v962_v4, %v817_v24  ;;  %v2174_v43 = vld [vmem:[%s6394_s1 + $0x6b8] sm:$0xff]  ;;  %v2175_v0 = vld [vmem:[%s6394_s1 + $0x6c0] sm:$0xff]  ;;  %v1528_v24 = vadd.f32 %v1527_v15, %v1382_v33  ;;  %v399_v50 = vmul.f32 %v252_v27, %v3999_v5  ;;  %v2177_v15 = vld [vmem:[%s6394_s1 + $0x6d0] sm:$0xff] }
  0xb2   :  { %v821_v26 = vmul.f32 %v2174_v43, %v3517_v14  ;;  %v1238_v14 = vld [vmem:[%s6394_s1 + $0x128] sm:$0xff]  ;;  %v822_v4 = vmul.f32 %v2175_v0, %v3536_v21  ;;  %v4039_v21 = vld [vmem:[%s6393_s0 + $0x300] sm:$0xff] }
  0xb3   :  { %v539_v18 = vadd.f32 %v538_v55, %v393_v23  ;;  %v964_v12 = vadd.f32 %v963_v58, %v818_v40  ;;  %v398_v55 = vmul.f32 %v251_v9, %v3980_v8  ;;  %v2290_v40 = vld [vmem:[%s6393_s0 + $0x5c0] sm:$0xff]  ;;  %v1529_v58 = vadd.f32 %v1528_v24, %v1383_v51  ;;  %v2178_v9 = vld [vmem:[%s6394_s1 + $0x6d8] sm:$0xff] }
  0xb4   :  { %v401_v51 = vmul.f32 %v254_v60, %v4039_v21  ;;  %v2179_v27 = vld [vmem:[%s6394_s1 + $0x6e0] sm:$0xff]  ;;  %v2181_v60 = vld [vmem:[%s6394_s1 + $0x6f0] sm:$0xff] }
  0xb5   :  { %v540_v7 = vadd.f32 %v539_v18, %v394_v22  ;;  %v965_v29 = vadd.f32 %v964_v12, %v819_v45  ;;  %v1796_v22 = vmul.f32 %v2401_v19, %v3290_v39  ;;  %v253_v39 = vld [vmem:[%s6394_s1 + $0x2f8] sm:$0xff]  ;;  %v1384_v18 = vmul.f32 %v2289_v1, %v1237_v17  ;;  %v1239_v45 = vld [vmem:[%s6394_s1 + $0x130] sm:$0xff] }
  0xb6   :  { %v400_v56 = vmul.f32 %v253_v39, %v4020_v63  ;;  %v1240_v12 = vld [vmem:[%s6394_s1 + $0x138] sm:$0xff]  ;;  %v1386_v1 = vmul.f32 %v2291_v6, %v1239_v45  ;;  %v2180_v39 = vld [vmem:[%s6394_s1 + $0x6e8] sm:$0xff] }
  0xb7   :  { %v541_v23 = vadd.f32 %v540_v7, %v395_v35  ;;  %v966_v35 = vadd.f32 %v965_v29, %v820_v44  ;;  %v1385_v7 = vmul.f32 %v2290_v40, %v1238_v14  ;;  %v4045_v43 = vadd.f32 %v1796_v22, %v1795_v54  ;;  %v2292_v44 = vld [vmem:[%s6393_s0 + $0x5d0] sm:$0xff]  ;;  %v1241_v29 = vld [vmem:[%s6394_s1 + $0x140] sm:$0xff] }
  0xb8   :  { %v1530_v17 = vadd.f32 %v1529_v58, %v1384_v18  ;;  %v256_v54 = vld [vmem:[%s6394_s1 + $0x310] sm:$0xff]  ;;  %v825_v22 = vmul.f32 %v2178_v9, %v3593_v53  ;;  %v4098_v53 = vld [vmem:[%s6393_s0 + $0x318] sm:$0xff] }
  0xb9   :  { %v542_v31 = vadd.f32 %v541_v23, %v396_v38  ;;  %v967_v38 = vadd.f32 %v966_v35, %v821_v26  ;;  %v824_v23 = vmul.f32 %v2177_v15, %v3574_v42  ;;  %v2293_v26 = vld [vmem:[%s6393_s0 + $0x5d8] sm:$0xff]  ;;  %v4079_v42 = vld [vmem:[%s6393_s0 + $0x310] sm:$0xff]  ;;  %v1242_v35 = vld [vmem:[%s6394_s1 + $0x148] sm:$0xff] }
  0xba   :  { %v1531_v37 = vadd.f32 %v1530_v17, %v1385_v7  ;;  %v257_v18 = vld [vmem:[%s6394_s1 + $0x318] sm:$0xff]  ;;  %v1388_v15 = vmul.f32 %v2293_v26, %v1241_v29  ;;  %v403_v45 = vmul.f32 %v256_v54, %v4079_v42  ;;  %v258_v7 = vld [vmem:[%s6394_s1 + $0x320] sm:$0xff]  ;;  %v259_v17 = vld [vmem:[%s6394_s1 + $0x328] sm:$0xff] }
  0xbb   :  { %v543_v33 = vadd.f32 %v542_v31, %v397_v36  ;;  %v255_v36 = vld [vmem:[%s6394_s1 + $0x308] sm:$0xff]  ;;  %v968_v0 = vadd.f32 %v967_v38, %v822_v4  ;;  %v1387_v31 = vmul.f32 %v2292_v44, %v1240_v12  ;;  %v2294_v4 = vld [vmem:[%s6393_s0 + $0x5e0] sm:$0xff]  ;;  %v1243_v38 = vld [vmem:[%s6394_s1 + $0x150] sm:$0xff]  ;;  %v404_v12 = vmul.f32 %v257_v18, %v4098_v53 }
  0xbc   :  { %v402_v40 = vmul.f32 %v255_v36, %v4060_v32  ;;  %v1532_v6 = vadd.f32 %v1531_v37, %v1386_v1  ;;  %v1389_v9 = vmul.f32 %v2294_v4, %v1242_v35  ;;  %v1244_v1 = vld [vmem:[%s6394_s1 + $0x158] sm:$0xff]  ;;  %v260_v37 = vld [vmem:[%s6394_s1 + $0x330] sm:$0xff] }
  0xbd   :  { %v544_v19 = vadd.f32 %v543_v33, %v398_v55  ;;  %v969_v55 = vadd.f32 %v968_v0, %v823_v25  ;;  %v2295_v25 = vld [vmem:[%s6393_s0 + $0x5e8] sm:$0xff]  ;;  %v2296_v0 = vld [vmem:[%s6393_s0 + $0x5f0] sm:$0xff] }
  0xbe   :  { %v1533_v44 = vadd.f32 %v1532_v6, %v1387_v31  ;;  %v1245_v31 = vld [vmem:[%s6394_s1 + $0x160] sm:$0xff]  ;;  %v261_v6 = vld [vmem:[%s6394_s1 + $0x338] sm:$0xff] }
  0xbf   :  { %v545_v24 = vadd.f32 %v544_v19, %v399_v50  ;;  %v826_v50 = vmul.f32 %v2179_v27, %v3612_v62  ;;  %v970_v33 = vadd.f32 %v969_v55, %v824_v23  ;;  %v4117_v62 = vld [vmem:[%s6393_s0 + $0x320] sm:$0xff]  ;;  %v2182_v23 = vld [vmem:[%s6394_s1 + $0x6f8] sm:$0xff]  ;;  %v1390_v27 = vmul.f32 %v2295_v25, %v1243_v38 }
  0xc0   :  { %v1534_v26 = vadd.f32 %v1533_v44, %v1388_v15  ;;  %v405_v29 = vmul.f32 %v258_v7, %v4117_v62  ;;  %v2297_v55 = vld [vmem:[%s6393_s0 + $0x5f8] sm:$0xff]  ;;  %v1246_v15 = vld [vmem:[%s6394_s1 + $0x168] sm:$0xff]  ;;  %v262_v44 = vld [vmem:[%s6394_s1 + $0x340] sm:$0xff] }
  0xc1   :  { %v546_v14 = vadd.f32 %v545_v24, %v400_v56  ;;  %v827_v56 = vmul.f32 %v2180_v39, %v3631_v13  ;;  %v971_v19 = vadd.f32 %v970_v33, %v825_v22  ;;  %v4136_v13 = vld [vmem:[%s6393_s0 + $0x328] sm:$0xff]  ;;  %v2183_v22 = vld [vmem:[%s6394_s1 + $0x700] sm:$0xff]  ;;  %v1391_v39 = vmul.f32 %v2296_v0, %v1244_v1 }
  0xc2   :  { %v1535_v4 = vadd.f32 %v1534_v26, %v1389_v9  ;;  %v406_v35 = vmul.f32 %v259_v17, %v4136_v13  ;;  %v2298_v33 = vld [vmem:[%s6393_s0 + $0x600] sm:$0xff]  ;;  %v1247_v9 = vld [vmem:[%s6394_s1 + $0x170] sm:$0xff]  ;;  %v263_v26 = vld [vmem:[%s6394_s1 + $0x348] sm:$0xff] }
  0xc3   :  { %v547_v58 = vadd.f32 %v546_v14, %v401_v51  ;;  %v828_v51 = vmul.f32 %v2181_v60, %v3650_v2  ;;  %v972_v24 = vadd.f32 %v971_v19, %v826_v50  ;;  %v4155_v2 = vld [vmem:[%s6393_s0 + $0x330] sm:$0xff]  ;;  %v2184_v50 = vld [vmem:[%s6394_s1 + $0x708] sm:$0xff]  ;;  %v1392_v60 = vmul.f32 %v2297_v55, %v1245_v31 }
  0xc4   :  { %v1536_v25 = vadd.f32 %v1535_v4, %v1390_v27  ;;  %v407_v38 = vmul.f32 %v260_v37, %v4155_v2  ;;  %v2299_v19 = vld [vmem:[%s6393_s0 + $0x608] sm:$0xff]  ;;  %v1248_v27 = vld [vmem:[%s6394_s1 + $0x178] sm:$0xff] }
  0xc5   :  { %v548_v36 = vadd.f32 %v547_v58, %v402_v40  ;;  %v829_v40 = vmul.f32 %v2182_v23, %v3669_v30  ;;  %v973_v14 = vadd.f32 %v972_v24, %v827_v56  ;;  %v4174_v30 = vld [vmem:[%s6393_s0 + $0x338] sm:$0xff]  ;;  %v2185_v56 = vld [vmem:[%s6394_s1 + $0x710] sm:$0xff]  ;;  %v1393_v23 = vmul.f32 %v2298_v33, %v1246_v15 }
  0xc6   :  { %v1537_v0 = vadd.f32 %v1536_v25, %v1391_v39  ;;  %v408_v1 = vmul.f32 %v261_v6, %v4174_v30  ;;  %v2300_v24 = vld [vmem:[%s6393_s0 + $0x610] sm:$0xff]  ;;  %v1249_v39 = vld [vmem:[%s6394_s1 + $0x180] sm:$0xff]  ;;  %v4236_v4 = vld [vmem:[%s6393_s0 + $0x358] sm:$0xff] }
  0xc7   :  { %v549_v54 = vadd.f32 %v548_v36, %v403_v45  ;;  %v830_v45 = vmul.f32 %v2183_v22, %v3688_v41  ;;  %v974_v58 = vadd.f32 %v973_v14, %v828_v51  ;;  %v4193_v41 = vld [vmem:[%s6393_s0 + $0x340] sm:$0xff]  ;;  %v2186_v51 = vld [vmem:[%s6394_s1 + $0x718] sm:$0xff]  ;;  %v1394_v22 = vmul.f32 %v2299_v19, %v1247_v9  ;;  %v1250_v25 = vld [vmem:[%s6394_s1 + $0x188] sm:$0xff] }
  0xc8   :  { %v1538_v55 = vadd.f32 %v1537_v0, %v1392_v60  ;;  %v409_v31 = vmul.f32 %v262_v44, %v4193_v41  ;;  %v2301_v14 = vld [vmem:[%s6393_s0 + $0x618] sm:$0xff]  ;;  %v1395_v33 = vmul.f32 %v2300_v24, %v1248_v27  ;;  %v2302_v60 = vld [vmem:[%s6393_s0 + $0x620] sm:$0xff]  ;;  %v1251_v0 = vld [vmem:[%s6394_s1 + $0x190] sm:$0xff] }
  0xc9   :  { %v550_v18 = vadd.f32 %v549_v54, %v404_v12  ;;  %v831_v12 = vmul.f32 %v2184_v50, %v3707_v52  ;;  %v975_v36 = vadd.f32 %v974_v58, %v829_v40  ;;  %v4212_v52 = vld [vmem:[%s6393_s0 + $0x348] sm:$0xff]  ;;  %v2187_v40 = vld [vmem:[%s6394_s1 + $0x720] sm:$0xff]  ;;  %v1396_v9 = vmul.f32 %v2301_v14, %v1249_v39  ;;  %v2190_v24 = vld [vmem:[%s6394_s1 + $0x738] sm:$0xff] }
  0xca   :  { %v1539_v15 = vadd.f32 %v1538_v55, %v1393_v23  ;;  %v410_v6 = vmul.f32 %v263_v26, %v4212_v52  ;;  %v2188_v58 = vld [vmem:[%s6394_s1 + $0x728] sm:$0xff]  ;;  %v2191_v14 = vld [vmem:[%s6394_s1 + $0x740] sm:$0xff] }
  0xcb   :  { %v551_v7 = vadd.f32 %v550_v18, %v405_v29  ;;  %v832_v29 = vmul.f32 %v2185_v56, %v3726_v61  ;;  %v976_v54 = vadd.f32 %v975_v36, %v830_v45  ;;  %v4231_v61 = vld [vmem:[%s6393_s0 + $0x350] sm:$0xff]  ;;  %v833_v18 = vmul.f32 %v2186_v51, %v3745_v10  ;;  %v4255_v10 = vld [vmem:[%s6393_s0 + $0x360] sm:$0xff]  ;;  %v2303_v23 = vld [vmem:[%s6393_s0 + $0x628] sm:$0xff] }
  0xcc   :  { %v834_v56 = vmul.f32 %v2187_v40, %v3764_v20  ;;  %v1540_v44 = vadd.f32 %v1539_v15, %v1394_v22  ;;  %v4277_v20 = vld [vmem:[%s6393_s0 + $0x368] sm:$0xff]  ;;  %v835_v27 = vmul.f32 %v2188_v58, %v3783_v3  ;;  %v1252_v40 = vld [vmem:[%s6394_s1 + $0x198] sm:$0xff]  ;;  %v2403_v3 = vld [vmem:[%s6394_s1 + $0x4b0] sm:$0xff] }
  0xcd   :  { %v552_v17 = vadd.f32 %v551_v7, %v406_v35  ;;  %v264_v35 = vld [vmem:[%s6394_s1 + $0x350] sm:$0xff]  ;;  %v977_v50 = vadd.f32 %v976_v54, %v831_v12  ;;  %v267_v51 = vld [vmem:[%s6394_s1 + $0x368] sm:$0xff] }
  0xce   :  { %v2189_v7 = vld [vmem:[%s6394_s1 + $0x730] sm:$0xff]  ;;  %v411_v12 = vmul.f32 %v264_v35, %v4231_v61  ;;  %v1541_v54 = vadd.f32 %v1540_v44, %v1395_v33  ;;  %v1253_v35 = vld [vmem:[%s6394_s1 + $0x1a0] sm:$0xff]  ;;  %v2547_v33 = vld [vmem:[%s6393_s0 + $0x4a8] sm:$0xff] }
  0xcf   :  { %v553_v37 = vadd.f32 %v552_v17, %v407_v38  ;;  %v265_v38 = vld [vmem:[%s6394_s1 + $0x358] sm:$0xff]  ;;  %v978_v19 = vadd.f32 %v977_v50, %v832_v29  ;;  %v266_v17 = vld [vmem:[%s6394_s1 + $0x360] sm:$0xff]  ;;  %v1397_v29 = vmul.f32 %v2302_v60, %v1250_v25  ;;  %v837_v25 = vmul.f32 %v2190_v24, %v3821_v48  ;;  %v2548_v48 = vld [vmem:[%s6393_s0 + $0x4b0] sm:$0xff] }
  0xd0   :  { %v412_v22 = vmul.f32 %v265_v38, %v4236_v4  ;;  %v1542_v50 = vadd.f32 %v1541_v54, %v1396_v9  ;;  %v413_v58 = vmul.f32 %v266_v17, %v4255_v10  ;;  %v2404_v38 = vld [vmem:[%s6394_s1 + $0x4b8] sm:$0xff]  ;;  %v1254_v9 = vld [vmem:[%s6394_s1 + $0x1a8] sm:$0xff]  ;;  %v838_v24 = vmul.f32 %v2191_v14, %v3840_v49 }
  0xd1   :  { %v554_v45 = vadd.f32 %v553_v37, %v408_v1  ;;  %v2402_v1 = vld [vmem:[%s6394_s1 + $0x4a8] sm:$0xff]  ;;  %v979_v26 = vadd.f32 %v978_v19, %v833_v18  ;;  %v2304_v37 = vld [vmem:[%s6393_s0 + $0x630] sm:$0xff]  ;;  %v1398_v18 = vmul.f32 %v2303_v23, %v1251_v0  ;;  %v2306_v19 = vld [vmem:[%s6393_s0 + $0x640] sm:$0xff] }
  0xd2   :  { %v1797_v15 = vmul.f32 %v2547_v33, %v2402_v1  ;;  %v1399_v44 = vmul.f32 %v2304_v37, %v1252_v40  ;;  %v4340_v23 = vld [vmem:[%s6393_s0 + $0x378] sm:$0xff]  ;;  %v414_v1 = vmul.f32 %v267_v51, %v4277_v20  ;;  %v1255_v51 = vld [vmem:[%s6394_s1 + $0x1b0] sm:$0xff] }
  0xd3   :  { %v555_v36 = vadd.f32 %v554_v45, %v409_v31  ;;  %v836_v31 = vmul.f32 %v2189_v7, %v3802_v28  ;;  %v980_v39 = vadd.f32 %v979_v26, %v834_v56  ;;  %v2305_v28 = vld [vmem:[%s6393_s0 + $0x638] sm:$0xff]  ;;  %v268_v45 = vld [vmem:[%s6394_s1 + $0x370] sm:$0xff]  ;;  %v2192_v7 = vld [vmem:[%s6394_s1 + $0x748] sm:$0xff] }
  0xd4   :  { %v269_v0 = vld [vmem:[%s6394_s1 + $0x378] sm:$0xff]  ;;  %v2405_v26 = vld [vmem:[%s6394_s1 + $0x4c0] sm:$0xff]  ;;  %v1943_v40 = vadd.f32 %v4045_v43, %v1797_v15  ;;  %v2308_v33 = vld [vmem:[%s6393_s0 + $0x650] sm:$0xff] }
  0xd5   :  { %v556_v55 = vadd.f32 %v555_v36, %v410_v6  ;;  %v4315_v6 = vld [vmem:[%s6393_s0 + $0x370] sm:$0xff]  ;;  %v981_v56 = vadd.f32 %v980_v39, %v835_v27  ;;  %v1798_v36 = vmul.f32 %v2548_v48, %v2403_v3  ;;  %v1400_v27 = vmul.f32 %v2305_v28, %v1253_v35  ;;  %v2549_v49 = vld [vmem:[%s6393_s0 + $0x4b8] sm:$0xff]  ;;  %v270_v3 = vld [vmem:[%s6394_s1 + $0x380] sm:$0xff] }
  0xd6   :  { %v1799_v37 = vmul.f32 %v2549_v49, %v2404_v38  ;;  %v415_v14 = vmul.f32 %v268_v45, %v4315_v6  ;;  %v839_v28 = vmul.f32 %v2192_v7, %v3859_v46  ;;  %v1401_v35 = vmul.f32 %v2306_v19, %v1254_v9  ;;  %v2194_v43 = vld [vmem:[%s6394_s1 + $0x758] sm:$0xff]  ;;  %v2550_v46 = vld [vmem:[%s6393_s0 + $0x4c0] sm:$0xff]  ;;  %v2407_v19 = vld [vmem:[%s6394_s1 + $0x4d0] sm:$0xff] }
  0xd7   :  { %v557_v60 = vadd.f32 %v556_v55, %v411_v12  ;;  %v1543_v12 = vadd.f32 %v1542_v50, %v1397_v29  ;;  %v2193_v29 = vld [vmem:[%s6394_s1 + $0x750] sm:$0xff]  ;;  %v982_v54 = vadd.f32 %v981_v56, %v836_v31  ;;  %v2307_v55 = vld [vmem:[%s6393_s0 + $0x648] sm:$0xff]  ;;  %v4366_v31 = vld [vmem:[%s6393_s0 + $0x380] sm:$0xff]  ;;  %v416_v38 = vmul.f32 %v269_v0, %v4340_v23 }
  0xd8   :  { %v1256_v15 = vld [vmem:[%s6394_s1 + $0x1b8] sm:$0xff]  ;;  %v1402_v56 = vmul.f32 %v2307_v55, %v1255_v51  ;;  %v4396_v9 = vld [vmem:[%s6393_s0 + $0x388] sm:$0xff] }
  0xd9   :  { %v558_v17 = vadd.f32 %v557_v60, %v412_v22  ;;  %v1544_v22 = vadd.f32 %v1543_v12, %v1398_v18  ;;  %v2406_v18 = vld [vmem:[%s6394_s1 + $0x4c8] sm:$0xff]  ;;  %v983_v50 = vadd.f32 %v982_v54, %v837_v25  ;;  %v1944_v60 = vadd.f32 %v1943_v40, %v1798_v36  ;;  %v2195_v12 = vld [vmem:[%s6394_s1 + $0x760] sm:$0xff]  ;;  %v2408_v55 = vld [vmem:[%s6394_s1 + $0x4d8] sm:$0xff] }
  0xda   :  { %v840_v25 = vmul.f32 %v2193_v29, %v3878_v57  ;;  %v2551_v36 = vld [vmem:[%s6393_s0 + $0x4c8] sm:$0xff]  ;;  %v417_v29 = vmul.f32 %v270_v3, %v4366_v31  ;;  %v2309_v49 = vld [vmem:[%s6393_s0 + $0x658] sm:$0xff] }
  0xdb   :  { %v559_v39 = vadd.f32 %v558_v17, %v413_v58  ;;  %v1545_v45 = vadd.f32 %v1544_v22, %v1399_v44  ;;  %v1800_v58 = vmul.f32 %v2550_v46, %v2405_v26  ;;  %v271_v44 = vld [vmem:[%s6394_s1 + $0x388] sm:$0xff]  ;;  %v984_v48 = vadd.f32 %v983_v50, %v838_v24  ;;  %v4410_v17 = vld [vmem:[%s6393_s0 + $0x390] sm:$0xff]  ;;  %v4440_v50 = vld [vmem:[%s6393_s0 + $0x398] sm:$0xff] }
  0xdc   :  { %v1801_v0 = vmul.f32 %v2551_v36, %v2406_v18  ;;  %v272_v26 = vld [vmem:[%s6394_s1 + $0x390] sm:$0xff]  ;;  %v841_v24 = vmul.f32 %v2194_v43, %v3887_v11  ;;  %v2196_v51 = vld [vmem:[%s6394_s1 + $0x768] sm:$0xff]  ;;  %v2409_v43 = vld [vmem:[%s6394_s1 + $0x4e0] sm:$0xff] }
  0xdd   :  { %v560_v7 = vadd.f32 %v559_v39, %v414_v1  ;;  %v1546_v57 = vadd.f32 %v1545_v45, %v1400_v27  ;;  %v1945_v1 = vadd.f32 %v1944_v60, %v1799_v37  ;;  %v1403_v27 = vmul.f32 %v2308_v33, %v1256_v15  ;;  %v1257_v37 = vld [vmem:[%s6394_s1 + $0x1c0] sm:$0xff]  ;;  %v2552_v11 = vld [vmem:[%s6393_s0 + $0x4d0] sm:$0xff]  ;;  %v2553_v45 = vld [vmem:[%s6393_s0 + $0x4d8] sm:$0xff] }
  0xde   :  { %v985_v22 = vadd.f32 %v984_v48, %v839_v28  ;;  %v1802_v3 = vmul.f32 %v2552_v11, %v2407_v19  ;;  %v418_v39 = vmul.f32 %v271_v44, %v4396_v9  ;;  %v842_v28 = vmul.f32 %v2195_v12, %v3910_v16  ;;  %v2198_v44 = vld [vmem:[%s6394_s1 + $0x778] sm:$0xff]  ;;  %v4491_v11 = vld [vmem:[%s6393_s0 + $0x3b0] sm:$0xff] }
  0xdf   :  { %v561_v54 = vadd.f32 %v560_v7, %v415_v14  ;;  %v1547_v40 = vadd.f32 %v1546_v57, %v1401_v35  ;;  %v1946_v14 = vadd.f32 %v1945_v1, %v1800_v58  ;;  %v273_v35 = vld [vmem:[%s6394_s1 + $0x398] sm:$0xff]  ;;  %v1803_v16 = vmul.f32 %v2553_v45, %v2408_v55  ;;  %v4516_v45 = vld [vmem:[%s6393_s0 + $0x3c0] sm:$0xff] }
  0xe0   :  { %v986_v33 = vadd.f32 %v985_v22, %v840_v25  ;;  %v419_v58 = vmul.f32 %v272_v26, %v4410_v17  ;;  %v843_v7 = vmul.f32 %v2196_v51, %v3919_v47  ;;  %v1404_v19 = vmul.f32 %v2309_v49, %v1257_v37  ;;  %v4456_v25 = vld [vmem:[%s6393_s0 + $0x3a0] sm:$0xff] }
  0xe1   :  { %v562_v18 = vadd.f32 %v561_v54, %v416_v38  ;;  %v1548_v15 = vadd.f32 %v1547_v40, %v1402_v56  ;;  %v1947_v46 = vadd.f32 %v1946_v14, %v1801_v0  ;;  %v2197_v38 = vld [vmem:[%s6394_s1 + $0x770] sm:$0xff]  ;;  %v274_v56 = vld [vmem:[%s6394_s1 + $0x3a0] sm:$0xff]  ;;  %v420_v0 = vmul.f32 %v273_v35, %v4440_v50  ;;  %v4477_v54 = vld [vmem:[%s6393_s0 + $0x3a8] sm:$0xff] }
  0xe2   :  { %v987_v12 = vadd.f32 %v986_v33, %v841_v24  ;;  %v2554_v47 = vld [vmem:[%s6393_s0 + $0x4e0] sm:$0xff]  ;;  %v275_v24 = vld [vmem:[%s6394_s1 + $0x3a8] sm:$0xff]  ;;  %v421_v22 = vmul.f32 %v274_v56, %v4456_v25  ;;  %v845_v40 = vmul.f32 %v2198_v44, %v3951_v59  ;;  %v1260_v56 = vld [vmem:[%s6394_s1 + $0x1d8] sm:$0xff] }
  0xe3   :  { %v563_v60 = vadd.f32 %v562_v18, %v417_v29  ;;  %v1549_v48 = vadd.f32 %v1548_v15, %v1403_v27  ;;  %v1804_v57 = vmul.f32 %v2554_v47, %v2409_v43  ;;  %v1948_v36 = vadd.f32 %v1947_v46, %v1802_v3  ;;  %v2310_v26 = vld [vmem:[%s6393_s0 + $0x660] sm:$0xff]  ;;  %v1258_v29 = vld [vmem:[%s6394_s1 + $0x1c8] sm:$0xff]  ;;  %v276_v3 = vld [vmem:[%s6394_s1 + $0x3b0] sm:$0xff] }
  0xe4   :  { %v844_v27 = vmul.f32 %v2197_v38, %v3942_v34  ;;  %v988_v55 = vadd.f32 %v987_v12, %v842_v28  ;;  %v2199_v37 = vld [vmem:[%s6394_s1 + $0x780] sm:$0xff]  ;;  %v4496_v34 = vld [vmem:[%s6393_s0 + $0x3b8] sm:$0xff]  ;;  %v422_v59 = vmul.f32 %v275_v24, %v4477_v54  ;;  %v2200_v35 = vld [vmem:[%s6394_s1 + $0x788] sm:$0xff]  ;;  %v423_v38 = vmul.f32 %v276_v3, %v4491_v11 }
  0xe5   :  { %v564_v1 = vadd.f32 %v563_v60, %v418_v39  ;;  %v1949_v51 = vadd.f32 %v1948_v36, %v1803_v16  ;;  %v1405_v39 = vmul.f32 %v2310_v26, %v1258_v29  ;;  %v1550_v18 = vadd.f32 %v1549_v48, %v1404_v19  ;;  %v2311_v33 = vld [vmem:[%s6393_s0 + $0x668] sm:$0xff]  ;;  %v1259_v15 = vld [vmem:[%s6394_s1 + $0x1d0] sm:$0xff]  ;;  %v277_v16 = vld [vmem:[%s6394_s1 + $0x3b8] sm:$0xff] }
  0xe6   :  { %v989_v14 = vadd.f32 %v988_v55, %v843_v7  ;;  %v846_v46 = vmul.f32 %v2199_v37, %v3980_v8  ;;  %v2312_v60 = vld [vmem:[%s6393_s0 + $0x670] sm:$0xff]  ;;  %v2410_v8 = vld [vmem:[%s6394_s1 + $0x4e8] sm:$0xff]  ;;  %v278_v12 = vld [vmem:[%s6394_s1 + $0x3c0] sm:$0xff]  ;;  %v424_v26 = vmul.f32 %v277_v16, %v4496_v34 }
  0xe7   :  { %v565_v49 = vadd.f32 %v564_v1, %v419_v58  ;;  %v4501_v28 = vadd.f32 %v1949_v51, %v1804_v57  ;;  %v2201_v19 = vld [vmem:[%s6394_s1 + $0x790] sm:$0xff]  ;;  %v4538_v44 = vld [vmem:[%s6393_s0 + $0x3c8] sm:$0xff]  ;;  %v2202_v47 = vld [vmem:[%s6394_s1 + $0x798] sm:$0xff]  ;;  %v847_v57 = vmul.f32 %v2200_v35, %v3999_v5  ;;  %v1551_v1 = vadd.f32 %v1550_v18, %v1405_v39 }
  0xe8   :  { %v990_v58 = vadd.f32 %v989_v14, %v844_v27  ;;  %v279_v48 = vld [vmem:[%s6394_s1 + $0x3c8] sm:$0xff]  ;;  %v2313_v24 = vld [vmem:[%s6393_s0 + $0x678] sm:$0xff]  ;;  %v1261_v27 = vld [vmem:[%s6394_s1 + $0x1e0] sm:$0xff]  ;;  %v848_v51 = vmul.f32 %v2201_v19, %v4020_v63  ;;  %v425_v18 = vmul.f32 %v278_v12, %v4516_v45 }
  0xe9   :  { %v566_v43 = vadd.f32 %v565_v49, %v420_v0  ;;  %v1406_v0 = vmul.f32 %v2311_v33, %v1259_v15  ;;  %v2411_v55 = vld [vmem:[%s6394_s1 + $0x4f0] sm:$0xff]  ;;  %v2203_v5 = vld [vmem:[%s6394_s1 + $0x7a0] sm:$0xff]  ;;  %v1262_v37 = vld [vmem:[%s6394_s1 + $0x1e8] sm:$0xff] }
  0xea   :  { %v991_v36 = vadd.f32 %v990_v58, %v845_v40  ;;  %v2314_v49 = vld [vmem:[%s6393_s0 + $0x680] sm:$0xff]  ;;  %v1407_v40 = vmul.f32 %v2312_v60, %v1260_v56  ;;  %v2555_v3 = vld [vmem:[%s6393_s0 + $0x4e8] sm:$0xff]  ;;  %v4576_v39 = vld [vmem:[%s6393_s0 + $0x3d0] sm:$0xff]  ;;  %v1408_v58 = vmul.f32 %v2313_v24, %v1261_v27  ;;  %v426_v56 = vmul.f32 %v279_v48, %v4538_v44 }
  0xeb   :  { %v567_v7 = vadd.f32 %v566_v43, %v421_v22  ;;  %v1805_v14 = vmul.f32 %v2555_v3, %v2410_v8  ;;  %v280_v63 = vld [vmem:[%s6394_s1 + $0x3d0] sm:$0xff]  ;;  %v849_v43 = vmul.f32 %v2202_v47, %v4039_v21  ;;  %v2412_v35 = vld [vmem:[%s6394_s1 + $0x4f8] sm:$0xff]  ;;  %v2204_v33 = vld [vmem:[%s6394_s1 + $0x7a8] sm:$0xff]  ;;  %v1552_v60 = vadd.f32 %v1551_v1, %v1406_v0 }
  0xec   :  { %v992_v22 = vadd.f32 %v991_v36, %v846_v46  ;;  %v2315_v16 = vld [vmem:[%s6393_s0 + $0x688] sm:$0xff]  ;;  %v1263_v46 = vld [vmem:[%s6394_s1 + $0x1f0] sm:$0xff]  ;;  %v281_v19 = vld [vmem:[%s6394_s1 + $0x3d8] sm:$0xff]  ;;  %v850_v12 = vmul.f32 %v2203_v5, %v4060_v32  ;;  %v1409_v47 = vmul.f32 %v2314_v49, %v1262_v37  ;;  %v427_v5 = vmul.f32 %v280_v63, %v4576_v39 }
  0xed   :  { %v568_v29 = vadd.f32 %v567_v7, %v422_v59  ;;  %v2556_v21 = vld [vmem:[%s6393_s0 + $0x4f0] sm:$0xff]  ;;  %v4601_v7 = vld [vmem:[%s6393_s0 + $0x3d8] sm:$0xff]  ;;  %v1951_v24 = vadd.f32 %v4501_v28, %v1805_v14  ;;  %v4627_v27 = vld [vmem:[%s6393_s0 + $0x3e0] sm:$0xff]  ;;  %v1410_v49 = vmul.f32 %v2315_v16, %v1263_v46 }
  0xee   :  { %v993_v15 = vadd.f32 %v992_v22, %v847_v57  ;;  %v2413_v57 = vld [vmem:[%s6394_s1 + $0x500] sm:$0xff]  ;;  %v2205_v36 = vld [vmem:[%s6394_s1 + $0x7b0] sm:$0xff]  ;;  %v1264_v48 = vld [vmem:[%s6394_s1 + $0x1f8] sm:$0xff]  ;;  %v851_v22 = vmul.f32 %v2204_v33, %v4079_v42  ;;  %v428_v33 = vmul.f32 %v281_v19, %v4601_v7 }
  0xef   :  { %v569_v59 = vadd.f32 %v568_v29, %v423_v38  ;;  %v1806_v38 = vmul.f32 %v2556_v21, %v2411_v55  ;;  %v2316_v1 = vld [vmem:[%s6393_s0 + $0x690] sm:$0xff]  ;;  %v2557_v32 = vld [vmem:[%s6393_s0 + $0x4f8] sm:$0xff]  ;;  %v282_v55 = vld [vmem:[%s6394_s1 + $0x3e0] sm:$0xff]  ;;  %v852_v16 = vmul.f32 %v2205_v36, %v4098_v53 }
  0xf0   :  { %v994_v0 = vadd.f32 %v993_v15, %v848_v51  ;;  %v1807_v29 = vmul.f32 %v2557_v32, %v2412_v35  ;;  %v2414_v37 = vld [vmem:[%s6394_s1 + $0x508] sm:$0xff]  ;;  %v2206_v28 = vld [vmem:[%s6394_s1 + $0x7b8] sm:$0xff]  ;;  %v1265_v14 = vld [vmem:[%s6394_s1 + $0x200] sm:$0xff]  ;;  %v1411_v46 = vmul.f32 %v2316_v1, %v1264_v48 }
  0xf1   :  { %v570_v8 = vadd.f32 %v569_v59, %v424_v26  ;;  %v1553_v26 = vadd.f32 %v1552_v60, %v1407_v40  ;;  %v2317_v3 = vld [vmem:[%s6393_s0 + $0x698] sm:$0xff]  ;;  %v2558_v42 = vld [vmem:[%s6393_s0 + $0x500] sm:$0xff]  ;;  %v1952_v59 = vadd.f32 %v1951_v24, %v1806_v38  ;;  %v4652_v35 = vld [vmem:[%s6393_s0 + $0x3e8] sm:$0xff] }
  0xf2   :  { %v995_v40 = vadd.f32 %v994_v0, %v849_v43  ;;  %v283_v43 = vld [vmem:[%s6394_s1 + $0x3e8] sm:$0xff]  ;;  %v2207_v60 = vld [vmem:[%s6394_s1 + $0x7c0] sm:$0xff]  ;;  %v4677_v36 = vld [vmem:[%s6393_s0 + $0x3f0] sm:$0xff]  ;;  %v429_v0 = vmul.f32 %v282_v55, %v4627_v27  ;;  %v1412_v48 = vmul.f32 %v2317_v3, %v1265_v14 }
  0xf3   :  { %v571_v51 = vadd.f32 %v570_v8, %v425_v18  ;;  %v1554_v63 = vadd.f32 %v1553_v26, %v1408_v58  ;;  %v1808_v18 = vmul.f32 %v2558_v42, %v2413_v57  ;;  %v2415_v58 = vld [vmem:[%s6394_s1 + $0x510] sm:$0xff]  ;;  %v2318_v38 = vld [vmem:[%s6393_s0 + $0x6a0] sm:$0xff]  ;;  %v1266_v19 = vld [vmem:[%s6394_s1 + $0x208] sm:$0xff]  ;;  %v1953_v57 = vadd.f32 %v1952_v59, %v1807_v29 }
  0xf4   :  { %v996_v21 = vadd.f32 %v995_v40, %v850_v12  ;;  %v2559_v53 = vld [vmem:[%s6393_s0 + $0x508] sm:$0xff]  ;;  %v284_v12 = vld [vmem:[%s6394_s1 + $0x3f0] sm:$0xff]  ;;  %v2416_v26 = vld [vmem:[%s6394_s1 + $0x518] sm:$0xff]  ;;  %v430_v40 = vmul.f32 %v283_v43, %v4652_v35  ;;  %v1413_v14 = vmul.f32 %v2318_v38, %v1266_v19 }
  0xf5   :  { %v572_v15 = vadd.f32 %v571_v51, %v426_v56  ;;  %v1555_v56 = vadd.f32 %v1554_v63, %v1409_v47  ;;  %v1809_v8 = vmul.f32 %v2559_v53, %v2414_v37  ;;  %v853_v47 = vmul.f32 %v2206_v28, %v4117_v62  ;;  %v2208_v32 = vld [vmem:[%s6394_s1 + $0x7c8] sm:$0xff]  ;;  %v1267_v55 = vld [vmem:[%s6394_s1 + $0x210] sm:$0xff]  ;;  %v4702_v28 = vld [vmem:[%s6393_s0 + $0x3f8] sm:$0xff] }
  0xf6   :  { %v997_v29 = vadd.f32 %v996_v21, %v851_v22  ;;  %v2319_v24 = vld [vmem:[%s6393_s0 + $0x6a8] sm:$0xff]  ;;  %v2560_v62 = vld [vmem:[%s6393_s0 + $0x510] sm:$0xff]  ;;  %v1954_v37 = vadd.f32 %v1953_v57, %v1808_v18  ;;  %v285_v22 = vld [vmem:[%s6394_s1 + $0x3f8] sm:$0xff]  ;;  %v431_v21 = vmul.f32 %v284_v12, %v4677_v36 }
  0xf7   :  { %v573_v1 = vadd.f32 %v572_v15, %v427_v5  ;;  %v1556_v5 = vadd.f32 %v1555_v56, %v1410_v49  ;;  %v1810_v51 = vmul.f32 %v2560_v62, %v2415_v58  ;;  %v854_v49 = vmul.f32 %v2207_v60, %v4136_v13  ;;  %v2417_v63 = vld [vmem:[%s6394_s1 + $0x520] sm:$0xff]  ;;  %v2209_v42 = vld [vmem:[%s6394_s1 + $0x7d0] sm:$0xff]  ;;  %v1268_v43 = vld [vmem:[%s6394_s1 + $0x218] sm:$0xff] }
  0xf8   :  { %v998_v18 = vadd.f32 %v997_v29, %v852_v16  ;;  %v2320_v59 = vld [vmem:[%s6393_s0 + $0x6b0] sm:$0xff]  ;;  %v2561_v13 = vld [vmem:[%s6393_s0 + $0x518] sm:$0xff]  ;;  %v1955_v58 = vadd.f32 %v1954_v37, %v1809_v8  ;;  %v4727_v60 = vld [vmem:[%s6393_s0 + $0x400] sm:$0xff]  ;;  %v1414_v19 = vmul.f32 %v2319_v24, %v1267_v55  ;;  %v432_v29 = vmul.f32 %v285_v22, %v4702_v28 }
  0xf9   :  { %v574_v3 = vadd.f32 %v573_v1, %v428_v33  ;;  %v1557_v33 = vadd.f32 %v1556_v5, %v1411_v46  ;;  %v1811_v15 = vmul.f32 %v2561_v13, %v2416_v26  ;;  %v286_v16 = vld [vmem:[%s6394_s1 + $0x400] sm:$0xff]  ;;  %v855_v46 = vmul.f32 %v2208_v32, %v4155_v2  ;;  %v2418_v56 = vld [vmem:[%s6394_s1 + $0x528] sm:$0xff]  ;;  %v2210_v53 = vld [vmem:[%s6394_s1 + $0x7d8] sm:$0xff] }
  0xfa   :  { %v999_v8 = vadd.f32 %v998_v18, %v853_v47  ;;  %v2321_v57 = vld [vmem:[%s6393_s0 + $0x6b8] sm:$0xff]  ;;  %v1269_v12 = vld [vmem:[%s6394_s1 + $0x220] sm:$0xff]  ;;  %v1956_v26 = vadd.f32 %v1955_v58, %v1810_v51  ;;  %v4752_v32 = vld [vmem:[%s6393_s0 + $0x408] sm:$0xff]  ;;  %v1415_v55 = vmul.f32 %v2320_v59, %v1268_v43  ;;  %v433_v18 = vmul.f32 %v286_v16, %v4727_v60 }
  0xfb   :  { %v575_v38 = vadd.f32 %v574_v3, %v429_v0  ;;  %v1558_v0 = vadd.f32 %v1557_v33, %v1412_v48  ;;  %v2562_v2 = vld [vmem:[%s6393_s0 + $0x520] sm:$0xff]  ;;  %v287_v47 = vld [vmem:[%s6394_s1 + $0x408] sm:$0xff]  ;;  %v856_v48 = vmul.f32 %v2209_v42, %v4174_v30  ;;  %v2419_v5 = vld [vmem:[%s6394_s1 + $0x530] sm:$0xff]  ;;  %v1416_v43 = vmul.f32 %v2321_v57, %v1269_v12 }
  0xfc   :  { %v1812_v1 = vmul.f32 %v2562_v2, %v2417_v63  ;;  %v2211_v62 = vld [vmem:[%s6394_s1 + $0x7e0] sm:$0xff]  ;;  %v1000_v51 = vadd.f32 %v999_v8, %v854_v49  ;;  %v1270_v22 = vld [vmem:[%s6394_s1 + $0x228] sm:$0xff]  ;;  %v1957_v63 = vadd.f32 %v1956_v26, %v1811_v15  ;;  %v4777_v42 = vld [vmem:[%s6393_s0 + $0x410] sm:$0xff]  ;;  %v434_v8 = vmul.f32 %v287_v47, %v4752_v32 }
  0xfd   :  { %v576_v24 = vadd.f32 %v575_v38, %v430_v40  ;;  %v2322_v37 = vld [vmem:[%s6393_s0 + $0x6c0] sm:$0xff]  ;;  %v1559_v40 = vadd.f32 %v1558_v0, %v1413_v14  ;;  %v2563_v30 = vld [vmem:[%s6393_s0 + $0x528] sm:$0xff]  ;;  %v288_v49 = vld [vmem:[%s6394_s1 + $0x410] sm:$0xff]  ;;  %v857_v14 = vmul.f32 %v2210_v53, %v4193_v41 }
  0xfe   :  { %v1813_v3 = vmul.f32 %v2563_v30, %v2418_v56  ;;  %v2420_v33 = vld [vmem:[%s6394_s1 + $0x538] sm:$0xff]  ;;  %v2212_v13 = vld [vmem:[%s6394_s1 + $0x7e8] sm:$0xff]  ;;  %v1001_v15 = vadd.f32 %v1000_v51, %v855_v46  ;;  %v1271_v16 = vld [vmem:[%s6394_s1 + $0x230] sm:$0xff]  ;;  %v1958_v56 = vadd.f32 %v1957_v63, %v1812_v1  ;;  %v1417_v12 = vmul.f32 %v2322_v37, %v1270_v22 }
  0xff   :  { %v577_v59 = vadd.f32 %v576_v24, %v431_v21  ;;  %v2323_v58 = vld [vmem:[%s6393_s0 + $0x6c8] sm:$0xff]  ;;  %v1560_v21 = vadd.f32 %v1559_v40, %v1414_v19  ;;  %v2564_v41 = vld [vmem:[%s6393_s0 + $0x530] sm:$0xff]  ;;  %v4802_v53 = vld [vmem:[%s6393_s0 + $0x418] sm:$0xff]  ;;  %v858_v19 = vmul.f32 %v2211_v62, %v4212_v52  ;;  %v435_v51 = vmul.f32 %v288_v49, %v4777_v42 }
 0x100   :  { %v1814_v38 = vmul.f32 %v2564_v41, %v2419_v5  ;;  %v289_v46 = vld [vmem:[%s6394_s1 + $0x418] sm:$0xff]  ;;  %v2421_v0 = vld [vmem:[%s6394_s1 + $0x540] sm:$0xff]  ;;  %v2213_v2 = vld [vmem:[%s6394_s1 + $0x7f0] sm:$0xff]  ;;  %v1002_v1 = vadd.f32 %v1001_v15, %v856_v48  ;;  %v1959_v5 = vadd.f32 %v1958_v56, %v1813_v3  ;;  %v1418_v22 = vmul.f32 %v2323_v58, %v1271_v16 }
 0x101   :  { %v578_v57 = vadd.f32 %v577_v59, %v432_v29  ;;  %v2324_v26 = vld [vmem:[%s6393_s0 + $0x6d0] sm:$0xff]  ;;  %v1272_v47 = vld [vmem:[%s6394_s1 + $0x238] sm:$0xff]  ;;  %v1561_v29 = vadd.f32 %v1560_v21, %v1415_v55  ;;  %v4827_v62 = vld [vmem:[%s6393_s0 + $0x420] sm:$0xff]  ;;  %v859_v55 = vmul.f32 %v2212_v13, %v4231_v61  ;;  %v436_v15 = vmul.f32 %v289_v46, %v4802_v53 }
 0x102   :  { %v2565_v52 = vld [vmem:[%s6393_s0 + $0x538] sm:$0xff]  ;;  %v290_v48 = vld [vmem:[%s6394_s1 + $0x420] sm:$0xff]  ;;  %v2422_v40 = vld [vmem:[%s6394_s1 + $0x548] sm:$0xff]  ;;  %v1003_v3 = vadd.f32 %v1002_v1, %v857_v14  ;;  %v1419_v16 = vmul.f32 %v2324_v26, %v1272_v47 }
 0x103   :  { %v1815_v24 = vmul.f32 %v2565_v52, %v2420_v33  ;;  %v579_v37 = vadd.f32 %v578_v57, %v433_v18  ;;  %v2214_v30 = vld [vmem:[%s6394_s1 + $0x7f8] sm:$0xff]  ;;  %v1273_v49 = vld [vmem:[%s6394_s1 + $0x240] sm:$0xff]  ;;  %v1562_v18 = vadd.f32 %v1561_v29, %v1416_v43  ;;  %v1960_v33 = vadd.f32 %v1959_v5, %v1814_v38  ;;  %v4852_v13 = vld [vmem:[%s6393_s0 + $0x428] sm:$0xff] }
 0x104   :  { %v2325_v63 = vld [vmem:[%s6393_s0 + $0x6d8] sm:$0xff]  ;;  %v2566_v61 = vld [vmem:[%s6393_s0 + $0x540] sm:$0xff]  ;;  %v291_v14 = vld [vmem:[%s6394_s1 + $0x428] sm:$0xff]  ;;  %v860_v43 = vmul.f32 %v2213_v2, %v4236_v4  ;;  %v1004_v38 = vadd.f32 %v1003_v3, %v858_v19  ;;  %v437_v1 = vmul.f32 %v290_v48, %v4827_v62 }
 0x105   :  { %v1816_v59 = vmul.f32 %v2566_v61, %v2421_v0  ;;  %v580_v58 = vadd.f32 %v579_v37, %v434_v8  ;;  %v2423_v21 = vld [vmem:[%s6394_s1 + $0x550] sm:$0xff]  ;;  %v2215_v41 = vld [vmem:[%s6394_s1 + $0x800] sm:$0xff]  ;;  %v1274_v46 = vld [vmem:[%s6394_s1 + $0x248] sm:$0xff]  ;;  %v1563_v8 = vadd.f32 %v1562_v18, %v1417_v12  ;;  %v1961_v0 = vadd.f32 %v1960_v33, %v1815_v24 }
 0x106   :  { %v2326_v56 = vld [vmem:[%s6393_s0 + $0x6e0] sm:$0xff]  ;;  %v2567_v4 = vld [vmem:[%s6393_s0 + $0x548] sm:$0xff]  ;;  %v4877_v2 = vld [vmem:[%s6393_s0 + $0x430] sm:$0xff]  ;;  %v861_v12 = vmul.f32 %v2214_v30, %v4255_v10  ;;  %v1420_v47 = vmul.f32 %v2325_v63, %v1273_v49  ;;  %v1005_v24 = vadd.f32 %v1004_v38, %v859_v55  ;;  %v438_v3 = vmul.f32 %v291_v14, %v4852_v13 }
 0x107   :  { %v1817_v57 = vmul.f32 %v2567_v4, %v2422_v40  ;;  %v292_v19 = vld [vmem:[%s6394_s1 + $0x430] sm:$0xff]  ;;  %v581_v26 = vadd.f32 %v580_v58, %v435_v51  ;;  %v2424_v29 = vld [vmem:[%s6394_s1 + $0x558] sm:$0xff]  ;;  %v2216_v52 = vld [vmem:[%s6394_s1 + $0x808] sm:$0xff]  ;;  %v1564_v51 = vadd.f32 %v1563_v8, %v1418_v22  ;;  %v1962_v40 = vadd.f32 %v1961_v0, %v1816_v59 }
 0x108   :  { %v2327_v5 = vld [vmem:[%s6393_s0 + $0x6e8] sm:$0xff]  ;;  %v1275_v48 = vld [vmem:[%s6394_s1 + $0x250] sm:$0xff]  ;;  %v4902_v30 = vld [vmem:[%s6393_s0 + $0x438] sm:$0xff]  ;;  %v862_v22 = vmul.f32 %v2215_v41, %v4277_v20  ;;  %v1421_v49 = vmul.f32 %v2326_v56, %v1274_v46  ;;  %v1006_v59 = vadd.f32 %v1005_v24, %v860_v43  ;;  %v439_v38 = vmul.f32 %v292_v19, %v4877_v2 }
 0x109   :  { %v2568_v10 = vld [vmem:[%s6393_s0 + $0x550] sm:$0xff]  ;;  %v293_v55 = vld [vmem:[%s6394_s1 + $0x438] sm:$0xff]  ;;  %v582_v63 = vadd.f32 %v581_v26, %v436_v15  ;;  %v2425_v18 = vld [vmem:[%s6394_s1 + $0x560] sm:$0xff]  ;;  %v1565_v15 = vadd.f32 %v1564_v51, %v1419_v16  ;;  %v863_v16 = vmul.f32 %v2216_v52, %v4315_v6  ;;  %v1422_v46 = vmul.f32 %v2327_v5, %v1275_v48 }
 0x10a   :  { %v1818_v37 = vmul.f32 %v2568_v10, %v2423_v21  ;;  %v2217_v61 = vld [vmem:[%s6394_s1 + $0x810] sm:$0xff]  ;;  %v1276_v14 = vld [vmem:[%s6394_s1 + $0x258] sm:$0xff]  ;;  %v1963_v21 = vadd.f32 %v1962_v40, %v1817_v57  ;;  %v4927_v41 = vld [vmem:[%s6393_s0 + $0x440] sm:$0xff]  ;;  %v1007_v57 = vadd.f32 %v1006_v59, %v861_v12  ;;  %v440_v24 = vmul.f32 %v293_v55, %v4902_v30 }
 0x10b   :  { %v2328_v33 = vld [vmem:[%s6393_s0 + $0x6f0] sm:$0xff]  ;;  %v2569_v20 = vld [vmem:[%s6393_s0 + $0x558] sm:$0xff]  ;;  %v294_v43 = vld [vmem:[%s6394_s1 + $0x440] sm:$0xff]  ;;  %v583_v56 = vadd.f32 %v582_v63, %v437_v1  ;;  %v1566_v1 = vadd.f32 %v1565_v15, %v1420_v47  ;;  %v864_v47 = vmul.f32 %v2217_v61, %v4340_v23 }
 0x10c   :  { %v1819_v58 = vmul.f32 %v2569_v20, %v2424_v29  ;;  %v2426_v8 = vld [vmem:[%s6394_s1 + $0x568] sm:$0xff]  ;;  %v2218_v4 = vld [vmem:[%s6394_s1 + $0x818] sm:$0xff]  ;;  %v1277_v19 = vld [vmem:[%s6394_s1 + $0x260] sm:$0xff]  ;;  %v1964_v29 = vadd.f32 %v1963_v21, %v1818_v37  ;;  %v1423_v48 = vmul.f32 %v2328_v33, %v1276_v14  ;;  %v1008_v37 = vadd.f32 %v1007_v57, %v862_v22 }
 0x10d   :  { %v2329_v0 = vld [vmem:[%s6393_s0 + $0x6f8] sm:$0xff]  ;;  %v2570_v6 = vld [vmem:[%s6393_s0 + $0x560] sm:$0xff]  ;;  %v4952_v52 = vld [vmem:[%s6393_s0 + $0x448] sm:$0xff]  ;;  %v584_v5 = vadd.f32 %v583_v56, %v438_v3  ;;  %v1567_v3 = vadd.f32 %v1566_v1, %v1421_v49  ;;  %v441_v59 = vmul.f32 %v294_v43, %v4927_v41  ;;  %v865_v49 = vmul.f32 %v2218_v4, %v4366_v31 }
 0x10e   :  { %v1820_v26 = vmul.f32 %v2570_v6, %v2425_v18  ;;  %v295_v12 = vld [vmem:[%s6394_s1 + $0x448] sm:$0xff]  ;;  %v2427_v51 = vld [vmem:[%s6394_s1 + $0x570] sm:$0xff]  ;;  %v2219_v10 = vld [vmem:[%s6394_s1 + $0x820] sm:$0xff]  ;;  %v1965_v18 = vadd.f32 %v1964_v29, %v1819_v58  ;;  %v1424_v14 = vmul.f32 %v2329_v0, %v1277_v19  ;;  %v1009_v58 = vadd.f32 %v1008_v37, %v863_v16 }
 0x10f   :  { %v2330_v40 = vld [vmem:[%s6393_s0 + $0x700] sm:$0xff]  ;;  %v1278_v55 = vld [vmem:[%s6394_s1 + $0x268] sm:$0xff]  ;;  %v4977_v61 = vld [vmem:[%s6393_s0 + $0x450] sm:$0xff]  ;;  %v585_v33 = vadd.f32 %v584_v5, %v439_v38  ;;  %v1568_v38 = vadd.f32 %v1567_v3, %v1422_v46  ;;  %v442_v57 = vmul.f32 %v295_v12, %v4952_v52  ;;  %v866_v46 = vmul.f32 %v2219_v10, %v4396_v9 }
 0x110   :  { %v2571_v23 = vld [vmem:[%s6393_s0 + $0x568] sm:$0xff]  ;;  %v296_v22 = vld [vmem:[%s6394_s1 + $0x450] sm:$0xff]  ;;  %v2428_v15 = vld [vmem:[%s6394_s1 + $0x578] sm:$0xff]  ;;  %v1425_v19 = vmul.f32 %v2330_v40, %v1278_v55 }
 0x111   :  { %v1821_v63 = vmul.f32 %v2571_v23, %v2426_v8  ;;  %v2220_v20 = vld [vmem:[%s6394_s1 + $0x828] sm:$0xff]  ;;  %v1279_v43 = vld [vmem:[%s6394_s1 + $0x270] sm:$0xff]  ;;  %v1966_v8 = vadd.f32 %v1965_v18, %v1820_v26  ;;  %v5002_v4 = vld [vmem:[%s6393_s0 + $0x458] sm:$0xff]  ;;  %v586_v0 = vadd.f32 %v585_v33, %v440_v24  ;;  %v1010_v26 = vadd.f32 %v1009_v58, %v864_v47 }
 0x112   :  { %v2331_v21 = vld [vmem:[%s6393_s0 + $0x708] sm:$0xff]  ;;  %v2572_v31 = vld [vmem:[%s6393_s0 + $0x570] sm:$0xff]  ;;  %v297_v16 = vld [vmem:[%s6394_s1 + $0x458] sm:$0xff]  ;;  %v1569_v9 = vadd.f32 %v1568_v38, %v1423_v48  ;;  %v443_v37 = vmul.f32 %v296_v22, %v4977_v61  ;;  %v867_v48 = vmul.f32 %v2220_v20, %v4410_v17 }
 0x113   :  { %v1822_v56 = vmul.f32 %v2572_v31, %v2427_v51  ;;  %v2429_v1 = vld [vmem:[%s6394_s1 + $0x580] sm:$0xff]  ;;  %v2221_v6 = vld [vmem:[%s6394_s1 + $0x830] sm:$0xff]  ;;  %v1280_v12 = vld [vmem:[%s6394_s1 + $0x278] sm:$0xff]  ;;  %v1967_v51 = vadd.f32 %v1966_v8, %v1821_v63  ;;  %v587_v40 = vadd.f32 %v586_v0, %v441_v59  ;;  %v1426_v55 = vmul.f32 %v2331_v21, %v1279_v43 }
 0x114   :  { %v5018_v29 = vld [vmem:[%s6393_s0 + $0x710] sm:$0xff]  ;;  %v2573_v24 = vld [vmem:[%s6393_s0 + $0x578] sm:$0xff]  ;;  %v5029_v47 = vld [vmem:[%s6393_s0 + $0x460] sm:$0xff]  ;;  %v1011_v63 = vadd.f32 %v1010_v26, %v865_v49  ;;  %v1570_v17 = vadd.f32 %v1569_v9, %v1424_v14  ;;  %v444_v58 = vmul.f32 %v297_v16, %v5002_v4  ;;  %v868_v14 = vmul.f32 %v2221_v6, %v4440_v50 }
 0x115   :  { %v1823_v5 = vmul.f32 %v2573_v24, %v2428_v15  ;;  %v298_v10 = vld [vmem:[%s6394_s1 + $0x460] sm:$0xff]  ;;  %v2430_v3 = vld [vmem:[%s6394_s1 + $0x588] sm:$0xff]  ;;  %v2222_v23 = vld [vmem:[%s6394_s1 + $0x838] sm:$0xff]  ;;  %v1968_v15 = vadd.f32 %v1967_v51, %v1822_v56  ;;  %v588_v21 = vadd.f32 %v587_v40, %v442_v57  ;;  %v1427_v43 = vmul.f32 %v5018_v29, %v1280_v12 }
 0x116   :  { %v5045_v18 = vld [vmem:[%s6393_s0 + $0x718] sm:$0xff]  ;;  %v1281_v22 = vld [vmem:[%s6394_s1 + $0x280] sm:$0xff]  ;;  %v5056_v49 = vld [vmem:[%s6393_s0 + $0x468] sm:$0xff]  ;;  %v1012_v56 = vadd.f32 %v1011_v63, %v866_v46  ;;  %v1571_v16 = vadd.f32 %v1570_v17, %v1425_v19  ;;  %v445_v26 = vmul.f32 %v298_v10, %v5029_v47  ;;  %v869_v19 = vmul.f32 %v2222_v23, %v4456_v25 }
 0x117   :  { %v2574_v59 = vld [vmem:[%s6393_s0 + $0x580] sm:$0xff]  ;;  %v299_v20 = vld [vmem:[%s6394_s1 + $0x468] sm:$0xff]  ;;  %v2431_v38 = vld [vmem:[%s6394_s1 + $0x590] sm:$0xff]  ;;  %v589_v12 = vadd.f32 %v588_v21, %v443_v37  ;;  %v1428_v9 = vmul.f32 %v5045_v18, %v1281_v22 }
 0x118   :  { %v1824_v33 = vmul.f32 %v2574_v59, %v2429_v1  ;;  %v2223_v31 = vld [vmem:[%s6394_s1 + $0x840] sm:$0xff]  ;;  %v1282_v50 = vld [vmem:[%s6394_s1 + $0x288] sm:$0xff]  ;;  %v1969_v1 = vadd.f32 %v1968_v15, %v1823_v5  ;;  %v5084_v46 = vld [vmem:[%s6393_s0 + $0x470] sm:$0xff]  ;;  %v1013_v51 = vadd.f32 %v1012_v56, %v867_v48  ;;  %v1572_v10 = vadd.f32 %v1571_v16, %v1426_v55 }
 0x119   :  { %v5073_v8 = vld [vmem:[%s6393_s0 + $0x720] sm:$0xff]  ;;  %v2575_v57 = vld [vmem:[%s6393_s0 + $0x588] sm:$0xff]  ;;  %v300_v6 = vld [vmem:[%s6394_s1 + $0x470] sm:$0xff]  ;;  %v446_v22 = vmul.f32 %v299_v20, %v5056_v49  ;;  %v590_v17 = vadd.f32 %v589_v12, %v444_v58  ;;  %v870_v55 = vmul.f32 %v2223_v31, %v4477_v54 }
 0x11a   :  { %v1825_v0 = vmul.f32 %v2575_v57, %v2430_v3  ;;  %v2432_v24 = vld [vmem:[%s6394_s1 + $0x598] sm:$0xff]  ;;  %v2224_v5 = vld [vmem:[%s6394_s1 + $0x848] sm:$0xff]  ;;  %v1283_v25 = vld [vmem:[%s6394_s1 + $0x290] sm:$0xff]  ;;  %v1970_v23 = vadd.f32 %v1969_v1, %v1824_v33  ;;  %v1429_v59 = vmul.f32 %v5073_v8, %v1282_v50  ;;  %v1014_v21 = vadd.f32 %v1013_v51, %v868_v14 }
 0x11b   :  { %v5101_v40 = vld [vmem:[%s6393_s0 + $0x728] sm:$0xff]  ;;  %v2576_v37 = vld [vmem:[%s6393_s0 + $0x590] sm:$0xff]  ;;  %v5112_v48 = vld [vmem:[%s6393_s0 + $0x478] sm:$0xff]  ;;  %v1573_v20 = vadd.f32 %v1572_v10, %v1427_v43  ;;  %v447_v16 = vmul.f32 %v300_v6, %v5084_v46  ;;  %v591_v57 = vadd.f32 %v590_v17, %v445_v26  ;;  %v871_v43 = vmul.f32 %v2224_v5, %v4491_v11 }
 0x11c   :  { %v1826_v3 = vmul.f32 %v2576_v37, %v2431_v38  ;;  %v301_v63 = vld [vmem:[%s6394_s1 + $0x478] sm:$0xff]  ;;  %v2433_v33 = vld [vmem:[%s6394_s1 + $0x5a0] sm:$0xff]  ;;  %v2225_v15 = vld [vmem:[%s6394_s1 + $0x850] sm:$0xff]  ;;  %v1971_v56 = vadd.f32 %v1970_v23, %v1825_v0  ;;  %v1430_v1 = vmul.f32 %v5101_v40, %v1283_v25 }
 0x11d   :  { %v5129_v38 = vld [vmem:[%s6393_s0 + $0x730] sm:$0xff]  ;;  %v1284_v54 = vld [vmem:[%s6394_s1 + $0x298] sm:$0xff]  ;;  %v5140_v14 = vld [vmem:[%s6393_s0 + $0x480] sm:$0xff]  ;;  %v1574_v6 = vadd.f32 %v1573_v20, %v1428_v9  ;;  %v448_v37 = vmul.f32 %v301_v63, %v5112_v48  ;;  %v592_v23 = vadd.f32 %v591_v57, %v446_v22  ;;  %v872_v9 = vmul.f32 %v2225_v15, %v4496_v34 }
 0x11e   :  { %v2577_v58 = vld [vmem:[%s6393_s0 + $0x598] sm:$0xff]  ;;  %v302_v50 = vld [vmem:[%s6394_s1 + $0x480] sm:$0xff]  ;;  %v2434_v0 = vld [vmem:[%s6394_s1 + $0x5a8] sm:$0xff]  ;;  %v1972_v25 = vadd.f32 %v1971_v56, %v1826_v3  ;;  %v1431_v17 = vmul.f32 %v5129_v38, %v1284_v54 }
 0x11f   :  { %v1827_v31 = vmul.f32 %v2577_v58, %v2432_v24  ;;  %v2226_v12 = vld [vmem:[%s6394_s1 + $0x858] sm:$0xff]  ;;  %v1015_v24 = vadd.f32 %v1014_v21, %v869_v19  ;;  %v1285_v11 = vld [vmem:[%s6394_s1 + $0x2a0] sm:$0xff]  ;;  %v5168_v19 = vld [vmem:[%s6393_s0 + $0x488] sm:$0xff]  ;;  %v1575_v63 = vadd.f32 %v1574_v6, %v1429_v59  ;;  %v449_v56 = vmul.f32 %v302_v50, %v5140_v14 }
 0x120   :  { %v5157_v51 = vld [vmem:[%s6393_s0 + $0x738] sm:$0xff]  ;;  %v2578_v26 = vld [vmem:[%s6393_s0 + $0x5a0] sm:$0xff]  ;;  %v303_v10 = vld [vmem:[%s6394_s1 + $0x488] sm:$0xff]  ;;  %v593_v57 = vadd.f32 %v592_v23, %v447_v16  ;;  %v873_v59 = vmul.f32 %v2226_v12, %v4516_v45 }
 0x121   :  { %v1828_v5 = vmul.f32 %v2578_v26, %v2433_v33  ;;  %v2435_v3 = vld [vmem:[%s6394_s1 + $0x5b0] sm:$0xff]  ;;  %v2227_v33 = vld [vmem:[%s6394_s1 + $0x860] sm:$0xff]  ;;  %v1016_v21 = vadd.f32 %v1015_v24, %v870_v55  ;;  %v1286_v34 = vld [vmem:[%s6394_s1 + $0x2a8] sm:$0xff]  ;;  %v1973_v54 = vadd.f32 %v1972_v25, %v1827_v31  ;;  %v1432_v24 = vmul.f32 %v5157_v51, %v1285_v11 }
 0x122   :  { %v5185_v20 = vld [vmem:[%s6393_s0 + $0x740] sm:$0xff]  ;;  %v2579_v22 = vld [vmem:[%s6393_s0 + $0x5a8] sm:$0xff]  ;;  %v5196_v55 = vld [vmem:[%s6393_s0 + $0x490] sm:$0xff]  ;;  %v1576_v50 = vadd.f32 %v1575_v63, %v1430_v1  ;;  %v450_v25 = vmul.f32 %v303_v10, %v5168_v19  ;;  %v594_v23 = vadd.f32 %v593_v57, %v448_v37 }
 0x123   :  { %v1829_v15 = vmul.f32 %v2579_v22, %v2434_v0  ;;  %v304_v58 = vld [vmem:[%s6394_s1 + $0x490] sm:$0xff]  ;;  %v2436_v31 = vld [vmem:[%s6394_s1 + $0x5b8] sm:$0xff]  ;;  %v2228_v0 = vld [vmem:[%s6394_s1 + $0x868] sm:$0xff]  ;;  %v1017_v6 = vadd.f32 %v1016_v21, %v871_v43  ;;  %v1974_v11 = vadd.f32 %v1973_v54, %v1828_v5  ;;  %v874_v43 = vmul.f32 %v2227_v33, %v4538_v44 }
 0x124   :  { %v5213_v26 = vld [vmem:[%s6393_s0 + $0x748] sm:$0xff]  ;;  %v1287_v45 = vld [vmem:[%s6394_s1 + $0x2b0] sm:$0xff]  ;;  %v1433_v21 = vmul.f32 %v5185_v20, %v1286_v34  ;;  %v2437_v22 = vld [vmem:[%s6394_s1 + $0x5c0] sm:$0xff]  ;;  %v1577_v10 = vadd.f32 %v1576_v50, %v1431_v17  ;;  %v451_v34 = vmul.f32 %v304_v58, %v5196_v55  ;;  %v595_v54 = vadd.f32 %v594_v23, %v449_v56 }
 0x125   :  { %v2580_v16 = vld [vmem:[%s6393_s0 + $0x5b0] sm:$0xff]  ;;  %v1018_v63 = vadd.f32 %v1017_v6, %v872_v9  ;;  %v1288_v44 = vld [vmem:[%s6394_s1 + $0x2b8] sm:$0xff]  ;;  %v1975_v33 = vadd.f32 %v1974_v11, %v1829_v15  ;;  %v875_v9 = vmul.f32 %v2228_v0, %v4576_v39  ;;  %v1434_v57 = vmul.f32 %v5213_v26, %v1287_v45  ;;  %v2438_v6 = vld [vmem:[%s6394_s1 + $0x5c8] sm:$0xff] }
 0x126   :  { %v1830_v12 = vmul.f32 %v2580_v16, %v2435_v3  ;;  %v2229_v1 = vld [vmem:[%s6394_s1 + $0x870] sm:$0xff]  ;;  %v2581_v37 = vld [vmem:[%s6393_s0 + $0x5b8] sm:$0xff]  ;;  %v1289_v39 = vld [vmem:[%s6394_s1 + $0x2c0] sm:$0xff]  ;;  %v1578_v58 = vadd.f32 %v1577_v10, %v1432_v24  ;;  %v596_v45 = vadd.f32 %v595_v54, %v450_v25 }
 0x127   :  { %v5233_v5 = vld [vmem:[%s6393_s0 + $0x750] sm:$0xff]  ;;  %v1831_v3 = vmul.f32 %v2581_v37, %v2436_v31  ;;  %v2230_v17 = vld [vmem:[%s6394_s1 + $0x878] sm:$0xff]  ;;  %v1019_v50 = vadd.f32 %v1018_v63, %v873_v59  ;;  %v2582_v56 = vld [vmem:[%s6393_s0 + $0x5c0] sm:$0xff]  ;;  %v876_v16 = vmul.f32 %v2229_v1, %v4601_v7 }
 0x128   :  { %v5253_v15 = vld [vmem:[%s6393_s0 + $0x758] sm:$0xff]  ;;  %v1832_v31 = vmul.f32 %v2582_v56, %v2437_v22  ;;  %v1976_v0 = vadd.f32 %v1975_v33, %v1830_v12  ;;  %v1435_v59 = vmul.f32 %v5233_v5, %v1288_v44  ;;  %v2439_v11 = vld [vmem:[%s6394_s1 + $0x5d0] sm:$0xff]  ;;  %v2231_v23 = vld [vmem:[%s6394_s1 + $0x880] sm:$0xff]  ;;  %v1579_v12 = vadd.f32 %v1578_v58, %v1433_v21 }
 0x129   :  { %v1020_v24 = vadd.f32 %v1019_v50, %v874_v43  ;;  %v5272_v63 = vld [vmem:[%s6393_s0 + $0x760] sm:$0xff]  ;;  %v1290_v7 = vld [vmem:[%s6394_s1 + $0x2c8] sm:$0xff]  ;;  %v597_v44 = vadd.f32 %v596_v45, %v451_v34  ;;  %v877_v10 = vmul.f32 %v2230_v17, %v4627_v27  ;;  %v1436_v43 = vmul.f32 %v5253_v15, %v1289_v39  ;;  %v2440_v37 = vld [vmem:[%s6394_s1 + $0x5d8] sm:$0xff] }
 0x12a   :  { %v2583_v25 = vld [vmem:[%s6393_s0 + $0x5c8] sm:$0xff]  ;;  %v1977_v1 = vadd.f32 %v1976_v0, %v1831_v3  ;;  %v1291_v54 = vld [vmem:[%s6394_s1 + $0x2d0] sm:$0xff]  ;;  %v1580_v3 = vadd.f32 %v1579_v12, %v1434_v57  ;;  %v878_v50 = vmul.f32 %v2231_v23, %v4652_v35  ;;  %v1437_v39 = vmul.f32 %v5272_v63, %v1290_v7  ;;  %v2585_v35 = vld [vmem:[%s6393_s0 + $0x5d8] sm:$0xff] }
 0x12b   :  { %v1833_v22 = vmul.f32 %v2583_v25, %v2438_v6  ;;  %v1021_v33 = vadd.f32 %v1020_v24, %v875_v9  ;;  %v5288_v21 = vld [vmem:[%s6393_s0 + $0x768] sm:$0xff]  ;;  %v2584_v27 = vld [vmem:[%s6393_s0 + $0x5d0] sm:$0xff]  ;;  %v598_v17 = vrot.slane %v597_v44, 4  ;;  %v1835_v45 = vmul.f32 %v2585_v35, %v2440_v37  ;;  %v1293_v25 = vld [vmem:[%s6394_s1 + $0x2e0] sm:$0xff] }
 0x12c   :  { %v1834_v34 = vmul.f32 %v2584_v27, %v2439_v11  ;;  %v1978_v6 = vadd.f32 %v1977_v1, %v1832_v31  ;;  %v2232_v9 = vld [vmem:[%s6394_s1 + $0x888] sm:$0xff]  ;;  %v2233_v58 = vld [vmem:[%s6394_s1 + $0x890] sm:$0xff]  ;;  %v1292_v31 = vld [vmem:[%s6394_s1 + $0x2d8] sm:$0xff]  ;;  %v1581_v0 = vadd.f32 %v1580_v3, %v1435_v59  ;;  %v1438_v24 = vmul.f32 %v5288_v21, %v1291_v54 }
 0x12d   :  { %v1022_v57 = vadd.f32 %v1021_v33, %v876_v16  ;;  %v5307_v56 = vld [vmem:[%s6393_s0 + $0x770] sm:$0xff]  ;;  %v599_v23 = vadd.f32 %v598_v17, %v597_v44  ;;  %v2441_v16 = vld [vmem:[%s6394_s1 + $0x5e0] sm:$0xff]  ;;  %v879_v7 = vmul.f32 %v2232_v9, %v4677_v36  ;;  %v5323_v59 = vld [vmem:[%s6393_s0 + $0x778] sm:$0xff]  ;;  %v880_v33 = vmul.f32 %v2233_v58, %v4702_v28 }
 0x12e   :  { %v1979_v11 = vadd.f32 %v1978_v6, %v1833_v22  ;;  %v1582_v22 = vadd.f32 %v1581_v0, %v1436_v43  ;;  %v2234_v37 = vld [vmem:[%s6394_s1 + $0x898] sm:$0xff]  ;;  %v1439_v36 = vmul.f32 %v5307_v56, %v1292_v31  ;;  %v2235_v54 = vld [vmem:[%s6394_s1 + $0x8a0] sm:$0xff]  ;;  %v1294_v28 = vld [vmem:[%s6394_s1 + $0x2e8] sm:$0xff]  ;;  %v1440_v58 = vmul.f32 %v5323_v59, %v1293_v25 }
 0x12f   :  { %v1023_v12 = vadd.f32 %v1022_v57, %v877_v10  ;;  %v600_v44 = vrot.slane %v599_v23, 2  ;;  %v2442_v10 = vld [vmem:[%s6394_s1 + $0x5e8] sm:$0xff]  ;;  %v5342_v43 = vld [vmem:[%s6393_s0 + $0x780] sm:$0xff]  ;;  %v881_v31 = vmul.f32 %v2234_v37, %v4727_v60  ;;  %v1295_v35 = vld [vmem:[%s6394_s1 + $0x2f0] sm:$0xff] }
 0x130   :  { %v1980_v1 = vadd.f32 %v1979_v11, %v1834_v34  ;;  %v1583_v27 = vadd.f32 %v1582_v22, %v1437_v39  ;;  %v2586_v34 = vld [vmem:[%s6393_s0 + $0x5e0] sm:$0xff]  ;;  %v2236_v57 = vld [vmem:[%s6394_s1 + $0x8a8] sm:$0xff]  ;;  %v1441_v60 = vmul.f32 %v5342_v43, %v1294_v28  ;;  %v2237_v25 = vld [vmem:[%s6394_s1 + $0x8b0] sm:$0xff] }
 0x131   :  { %v1024_v3 = vadd.f32 %v1023_v12, %v878_v50  ;;  %v1836_v6 = vmul.f32 %v2586_v34, %v2441_v16  ;;  %v601_v9 = vadd.f32 %v600_v44, %v599_v23  ;;  %v2443_v50 = vld [vmem:[%s6394_s1 + $0x5f0] sm:$0xff]  ;;  %v5361_v0 = vld [vmem:[%s6393_s0 + $0x788] sm:$0xff]  ;;  %v882_v12 = vmul.f32 %v2235_v54, %v4752_v32  ;;  %v1296_v32 = vld [vmem:[%s6394_s1 + $0x2f8] sm:$0xff] }
 0x132   :  { %v1981_v17 = vadd.f32 %v1980_v1, %v1835_v45  ;;  %v1584_v45 = vadd.f32 %v1583_v27, %v1438_v24  ;;  %v2587_v11 = vld [vmem:[%s6393_s0 + $0x5e8] sm:$0xff]  ;;  %v5380_v24 = vld [vmem:[%s6393_s0 + $0x790] sm:$0xff]  ;;  %v2445_v28 = vld [vmem:[%s6394_s1 + $0x600] sm:$0xff] }
 0x133   :  { %v1025_v39 = vadd.f32 %v1024_v3, %v879_v7  ;;  %v1837_v23 = vmul.f32 %v2587_v11, %v2442_v10  ;;  %v602_v16 = vrot.slane %v601_v9, 1  ;;  %v2444_v7 = vld [vmem:[%s6394_s1 + $0x5f8] sm:$0xff]  ;;  %v2588_v44 = vld [vmem:[%s6393_s0 + $0x5f0] sm:$0xff]  ;;  %v883_v3 = vmul.f32 %v2236_v57, %v4777_v42  ;;  %v1297_v42 = vld [vmem:[%s6394_s1 + $0x300] sm:$0xff] }
 0x134   :  { %v1585_v1 = vadd.f32 %v1584_v45, %v1439_v36  ;;  %v1838_v37 = vmul.f32 %v2588_v44, %v2443_v50  ;;  %v1982_v10 = vadd.f32 %v1981_v17, %v1836_v6  ;;  %v2238_v27 = vld [vmem:[%s6394_s1 + $0x8b8] sm:$0xff]  ;;  %v884_v57 = vmul.f32 %v2237_v25, %v4802_v53  ;;  %v5418_v45 = vld [vmem:[%s6393_s0 + $0x7a0] sm:$0xff]  ;;  %v1298_v53 = vld [vmem:[%s6394_s1 + $0x308] sm:$0xff] }
 0x135   :  { %v1026_v22 = vadd.f32 %v1025_v39, %v880_v33  ;;  %v603_v54 = vadd.f32 %v602_v16, %v601_v9  ;;  %v1442_v33 = vmul.f32 %v5361_v0, %v1295_v35  ;;  %v5399_v34 = vld [vmem:[%s6393_s0 + $0x798] sm:$0xff]  ;;  %v2446_v39 = vld [vmem:[%s6394_s1 + $0x608] sm:$0xff]  ;;  %v2239_v35 = vld [vmem:[%s6394_s1 + $0x8c0] sm:$0xff]  ;;  %v885_v25 = vmul.f32 %v2238_v27, %v4827_v62 }
 0x136   :  { %v1586_v6 = vadd.f32 %v1585_v1, %v1440_v58  ;;  %v2589_v17 = vld [vmem:[%s6393_s0 + $0x5f8] sm:$0xff]  ;;  %v1983_v50 = vadd.f32 %v1982_v10, %v1837_v23  ;;  %v2590_v23 = vld [vmem:[%s6393_s0 + $0x600] sm:$0xff]  ;;  %v1299_v62 = vld [vmem:[%s6394_s1 + $0x310] sm:$0xff] }
 0x137   :  { %v1027_v36 = vadd.f32 %v1026_v22, %v881_v31  ;;  %v1839_v9 = vmul.f32 %v2589_v17, %v2444_v7  ;;  %604 = vst [vmem:[#allocation2] sm:$0x1] %v603_v54  ;;  %v1443_v31 = vmul.f32 %v5380_v24, %v1296_v32  ;;  %v1840_v16 = vmul.f32 %v2590_v23, %v2445_v28  ;;  %v2447_v22 = vld [vmem:[%s6394_s1 + $0x610] sm:$0xff]  ;;  %v2240_v32 = vld [vmem:[%s6394_s1 + $0x8c8] sm:$0xff]  ;;  %v2448_v27 = vld [vmem:[%s6394_s1 + $0x618] sm:$0xff] }
 0x138   :  { %v1587_v11 = vadd.f32 %v1586_v6, %v1441_v60  ;;  %v1984_v7 = vadd.f32 %v1983_v50, %v1838_v37  ;;  %v5437_v60 = vld [vmem:[%s6393_s0 + $0x7a8] sm:$0xff]  ;;  %v886_v28 = vmul.f32 %v2239_v35, %v4852_v13  ;;  %v1300_v13 = vld [vmem:[%s6394_s1 + $0x318] sm:$0xff]  ;;  %v2592_v17 = vld [vmem:[%s6393_s0 + $0x610] sm:$0xff] }
 0x139   :  { %v1028_v58 = vadd.f32 %v1027_v36, %v882_v12  ;;  %v1444_v12 = vmul.f32 %v5399_v34, %v1297_v42  ;;  %v2591_v37 = vld [vmem:[%s6393_s0 + $0x608] sm:$0xff]  ;;  %v2241_v36 = vld [vmem:[%s6394_s1 + $0x8d0] sm:$0xff]  ;;  %v2449_v35 = vld [vmem:[%s6394_s1 + $0x620] sm:$0xff] }
 0x13a   :  { %v1588_v44 = vadd.f32 %v1587_v11, %v1442_v33  ;;  %v1841_v10 = vmul.f32 %v2591_v37, %v2446_v39  ;;  %v1985_v54 = vadd.f32 %v1984_v7, %v1839_v9  ;;  %v5456_v33 = vld [vmem:[%s6393_s0 + $0x7b0] sm:$0xff]  ;;  %v1842_v9 = vmul.f32 %v2592_v17, %v2447_v22  ;;  %v2593_v23 = vld [vmem:[%s6393_s0 + $0x618] sm:$0xff]  ;;  %v2594_v37 = vld [vmem:[%s6393_s0 + $0x620] sm:$0xff] }
 0x13b   :  { %v1029_v1 = vadd.f32 %v1028_v58, %v883_v3  ;;  %v1445_v3 = vmul.f32 %v5418_v45, %v1298_v53  ;;  %v887_v39 = vmul.f32 %v2240_v32, %v4877_v2  ;;  %v2242_v58 = vld [vmem:[%s6394_s1 + $0x8d8] sm:$0xff]  ;;  %v1301_v2 = vld [vmem:[%s6394_s1 + $0x320] sm:$0xff]  ;;  %v888_v22 = vmul.f32 %v2241_v36, %v4902_v30  ;;  %v2450_v32 = vld [vmem:[%s6394_s1 + $0x628] sm:$0xff] }
 0x13c   :  { %v1589_v6 = vadd.f32 %v1588_v44, %v1443_v31  ;;  %v1986_v50 = vadd.f32 %v1985_v54, %v1840_v16  ;;  %v5475_v31 = vld [vmem:[%s6393_s0 + $0x7b8] sm:$0xff]  ;;  %v1843_v16 = vmul.f32 %v2593_v23, %v2448_v27  ;;  %v1302_v30 = vld [vmem:[%s6394_s1 + $0x328] sm:$0xff]  ;;  %v889_v27 = vmul.f32 %v2242_v58, %v4927_v41  ;;  %v2451_v36 = vld [vmem:[%s6394_s1 + $0x630] sm:$0xff] }
 0x13d   :  { %v1030_v42 = vadd.f32 %v1029_v1, %v884_v57  ;;  %v1446_v57 = vmul.f32 %v5437_v60, %v1299_v62  ;;  %v2243_v1 = vld [vmem:[%s6394_s1 + $0x8e0] sm:$0xff]  ;;  %v1303_v41 = vld [vmem:[%s6394_s1 + $0x330] sm:$0xff]  ;;  %v2595_v17 = vld [vmem:[%s6393_s0 + $0x628] sm:$0xff] }
 0x13e   :  { %v1590_v11 = vadd.f32 %v1589_v6, %v1444_v12  ;;  %v1987_v7 = vadd.f32 %v1986_v50, %v1841_v10  ;;  %v5494_v12 = vld [vmem:[%s6393_s0 + $0x7c0] sm:$0xff]  ;;  %v1844_v10 = vmul.f32 %v2594_v37, %v2449_v35  ;;  %v890_v35 = vmul.f32 %v2243_v1, %v4952_v52  ;;  %v2452_v58 = vld [vmem:[%s6394_s1 + $0x638] sm:$0xff]  ;;  %v2596_v23 = vld [vmem:[%s6393_s0 + $0x630] sm:$0xff] }
 0x13f   :  { %v1031_v53 = vadd.f32 %v1030_v42, %v885_v25  ;;  %v1447_v25 = vmul.f32 %v5456_v33, %v1300_v13  ;;  %v2244_v42 = vld [vmem:[%s6394_s1 + $0x8e8] sm:$0xff]  ;;  %v1304_v52 = vld [vmem:[%s6394_s1 + $0x338] sm:$0xff]  ;;  %v2453_v1 = vld [vmem:[%s6394_s1 + $0x640] sm:$0xff] }
 0x140   :  { %v1591_v44 = vadd.f32 %v1590_v11, %v1445_v3  ;;  %v1988_v54 = vadd.f32 %v1987_v7, %v1842_v9  ;;  %v5513_v3 = vld [vmem:[%s6393_s0 + $0x7c8] sm:$0xff]  ;;  %v1845_v9 = vmul.f32 %v2595_v17, %v2450_v32  ;;  %v891_v32 = vmul.f32 %v2244_v42, %v4977_v61  ;;  %v1305_v61 = vld [vmem:[%s6394_s1 + $0x340] sm:$0xff]  ;;  %v2597_v37 = vld [vmem:[%s6393_s0 + $0x638] sm:$0xff] }
 0x141   :  { %v1032_v62 = vadd.f32 %v1031_v53, %v886_v28  ;;  %v1448_v28 = vmul.f32 %v5475_v31, %v1301_v2  ;;  %v2245_v53 = vld [vmem:[%s6394_s1 + $0x8f0] sm:$0xff]  ;;  %v2454_v42 = vld [vmem:[%s6394_s1 + $0x648] sm:$0xff]  ;;  %v2598_v17 = vld [vmem:[%s6393_s0 + $0x640] sm:$0xff] }
 0x142   :  { %v1592_v6 = vadd.f32 %v1591_v44, %v1446_v57  ;;  %v1989_v50 = vadd.f32 %v1988_v54, %v1843_v16  ;;  %v5532_v57 = vld [vmem:[%s6393_s0 + $0x7d0] sm:$0xff]  ;;  %v1846_v16 = vmul.f32 %v2596_v23, %v2451_v36  ;;  %v892_v36 = vmul.f32 %v2245_v53, %v5002_v4  ;;  %v1306_v4 = vld [vmem:[%s6394_s1 + $0x348] sm:$0xff] }
 0x143   :  { %v1033_v13 = vadd.f32 %v1032_v62, %v887_v39  ;;  %v1449_v39 = vmul.f32 %v5494_v12, %v1302_v30  ;;  %v2246_v62 = vld [vmem:[%s6394_s1 + $0x8f8] sm:$0xff]  ;;  %v2455_v53 = vld [vmem:[%s6394_s1 + $0x650] sm:$0xff]  ;;  %v2599_v23 = vld [vmem:[%s6393_s0 + $0x648] sm:$0xff] }
 0x144   :  { %v1593_v11 = vadd.f32 %v1592_v6, %v1447_v25  ;;  %v1990_v7 = vadd.f32 %v1989_v50, %v1844_v10  ;;  %v5551_v25 = vld [vmem:[%s6393_s0 + $0x7d8] sm:$0xff]  ;;  %v1847_v10 = vmul.f32 %v2597_v37, %v2452_v58  ;;  %v893_v58 = vmul.f32 %v2246_v62, %v5029_v47  ;;  %v1307_v47 = vld [vmem:[%s6394_s1 + $0x350] sm:$0xff] }
 0x145   :  { %v1034_v2 = vadd.f32 %v1033_v13, %v888_v22  ;;  %v1450_v22 = vmul.f32 %v5513_v3, %v1303_v41  ;;  %v2247_v13 = vld [vmem:[%s6394_s1 + $0x900] sm:$0xff]  ;;  %v2456_v62 = vld [vmem:[%s6394_s1 + $0x658] sm:$0xff]  ;;  %v2600_v37 = vld [vmem:[%s6393_s0 + $0x650] sm:$0xff] }
 0x146   :  { %v1594_v44 = vadd.f32 %v1593_v11, %v1448_v28  ;;  %v1991_v54 = vadd.f32 %v1990_v7, %v1845_v9  ;;  %v5570_v28 = vld [vmem:[%s6393_s0 + $0x7e0] sm:$0xff]  ;;  %v1848_v9 = vmul.f32 %v2598_v17, %v2453_v1  ;;  %v894_v1 = vmul.f32 %v2247_v13, %v5056_v49  ;;  %v1308_v49 = vld [vmem:[%s6394_s1 + $0x358] sm:$0xff] }
 0x147   :  { %v1035_v30 = vadd.f32 %v1034_v2, %v889_v27  ;;  %v1451_v27 = vmul.f32 %v5532_v57, %v1304_v52  ;;  %v2248_v2 = vld [vmem:[%s6394_s1 + $0x908] sm:$0xff]  ;;  %v2457_v13 = vld [vmem:[%s6394_s1 + $0x660] sm:$0xff]  ;;  %v2601_v17 = vld [vmem:[%s6393_s0 + $0x658] sm:$0xff] }
 0x148   :  { %v1595_v6 = vadd.f32 %v1594_v44, %v1449_v39  ;;  %v1992_v50 = vadd.f32 %v1991_v54, %v1846_v16  ;;  %v5589_v39 = vld [vmem:[%s6393_s0 + $0x7e8] sm:$0xff]  ;;  %v1849_v16 = vmul.f32 %v2599_v23, %v2454_v42  ;;  %v895_v42 = vmul.f32 %v2248_v2, %v5084_v46  ;;  %v1309_v46 = vld [vmem:[%s6394_s1 + $0x360] sm:$0xff] }
 0x149   :  { %v1036_v41 = vadd.f32 %v1035_v30, %v890_v35  ;;  %v1452_v35 = vmul.f32 %v5551_v25, %v1305_v61  ;;  %v2249_v30 = vld [vmem:[%s6394_s1 + $0x910] sm:$0xff]  ;;  %v2458_v2 = vld [vmem:[%s6394_s1 + $0x668] sm:$0xff]  ;;  %v2602_v23 = vld [vmem:[%s6393_s0 + $0x660] sm:$0xff] }
 0x14a   :  { %v1596_v11 = vadd.f32 %v1595_v6, %v1450_v22  ;;  %v1993_v7 = vadd.f32 %v1992_v50, %v1847_v10  ;;  %v5608_v22 = vld [vmem:[%s6393_s0 + $0x7f0] sm:$0xff]  ;;  %v1850_v10 = vmul.f32 %v2600_v37, %v2455_v53  ;;  %v896_v53 = vmul.f32 %v2249_v30, %v5112_v48  ;;  %v1310_v48 = vld [vmem:[%s6394_s1 + $0x368] sm:$0xff] }
 0x14b   :  { %v1037_v52 = vadd.f32 %v1036_v41, %v891_v32  ;;  %v1453_v32 = vmul.f32 %v5570_v28, %v1306_v4  ;;  %v2250_v41 = vld [vmem:[%s6394_s1 + $0x918] sm:$0xff]  ;;  %v2459_v30 = vld [vmem:[%s6394_s1 + $0x670] sm:$0xff] }
 0x14c   :  { %v1597_v44 = vadd.f32 %v1596_v11, %v1451_v27  ;;  %v1994_v54 = vadd.f32 %v1993_v7, %v1848_v9  ;;  %v5627_v27 = vld [vmem:[%s6393_s0 + $0x7f8] sm:$0xff]  ;;  %v1851_v9 = vmul.f32 %v2601_v17, %v2456_v62  ;;  %v897_v62 = vmul.f32 %v2250_v41, %v5140_v14  ;;  %v2603_v14 = vld [vmem:[%s6393_s0 + $0x668] sm:$0xff] }
 0x14d   :  { %v1038_v61 = vadd.f32 %v1037_v52, %v892_v36  ;;  %v1454_v36 = vmul.f32 %v5589_v39, %v1307_v47  ;;  %v2251_v52 = vld [vmem:[%s6394_s1 + $0x920] sm:$0xff]  ;;  %v1853_v37 = vmul.f32 %v2603_v14, %v2458_v2  ;;  %v1314_v14 = vld [vmem:[%s6394_s1 + $0x388] sm:$0xff] }
 0x14e   :  { %v1598_v6 = vadd.f32 %v1597_v44, %v1452_v35  ;;  %v1995_v50 = vadd.f32 %v1994_v54, %v1849_v16  ;;  %v5646_v35 = vld [vmem:[%s6393_s0 + $0x800] sm:$0xff]  ;;  %v1852_v16 = vmul.f32 %v2602_v23, %v2457_v13  ;;  %v2460_v44 = vld [vmem:[%s6394_s1 + $0x678] sm:$0xff]  ;;  %v898_v54 = vmul.f32 %v2251_v52, %v5168_v19  ;;  %v5672_v13 = vld [vmem:[%s6393_s0 + $0x808] sm:$0xff] }
 0x14f   :  { %v1039_v4 = vadd.f32 %v1038_v61, %v893_v58  ;;  %v1455_v58 = vmul.f32 %v5608_v22, %v1308_v49  ;;  %v2252_v61 = vld [vmem:[%s6394_s1 + $0x928] sm:$0xff]  ;;  %v2604_v19 = vld [vmem:[%s6393_s0 + $0x670] sm:$0xff]  ;;  %v5703_v23 = vld [vmem:[%s6393_s0 + $0x818] sm:$0xff] }
 0x150   :  { %v1599_v11 = vadd.f32 %v1598_v6, %v1453_v32  ;;  %v1996_v7 = vadd.f32 %v1995_v50, %v1850_v10  ;;  %v1854_v6 = vmul.f32 %v2604_v19, %v2459_v30  ;;  %v5688_v50 = vld [vmem:[%s6393_s0 + $0x810] sm:$0xff] }
 0x151   :  { %v1040_v47 = vadd.f32 %v1039_v4, %v894_v1  ;;  %v1456_v1 = vmul.f32 %v5627_v27, %v1309_v46  ;;  %v2461_v46 = vld [vmem:[%s6394_s1 + $0x680] sm:$0xff]  ;;  %v1315_v19 = vld [vmem:[%s6394_s1 + $0x390] sm:$0xff] }
 0x152   :  { %v1600_v32 = vadd.f32 %v1599_v11, %v1454_v36  ;;  %v1997_v10 = vadd.f32 %v1996_v7, %v1851_v9  ;;  %v1457_v36 = vmul.f32 %v5646_v35, %v1310_v48  ;;  %v899_v9 = vmul.f32 %v2252_v61, %v5196_v55  ;;  %v2462_v55 = vld [vmem:[%s6394_s1 + $0x688] sm:$0xff]  ;;  %v2606_v7 = vld [vmem:[%s6393_s0 + $0x680] sm:$0xff] }
 0x153   :  { %v1041_v49 = vadd.f32 %v1040_v47, %v895_v42  ;;  %v1311_v42 = vld [vmem:[%s6394_s1 + $0x370] sm:$0xff] }
 0x154   :  { %v1601_v4 = vadd.f32 %v1600_v32, %v1455_v58  ;;  %v1998_v17 = vadd.f32 %v1997_v10, %v1852_v16  ;;  %v2605_v58 = vld [vmem:[%s6393_s0 + $0x678] sm:$0xff]  ;;  %v1458_v47 = vmul.f32 %v5672_v13, %v1311_v42  ;;  %v1313_v16 = vld [vmem:[%s6394_s1 + $0x380] sm:$0xff] }
 0x155   :  { %v1042_v41 = vadd.f32 %v1041_v49, %v896_v53  ;;  %v1312_v53 = vld [vmem:[%s6394_s1 + $0x378] sm:$0xff]  ;;  %v1855_v2 = vmul.f32 %v2605_v58, %v2460_v44  ;;  %v2463_v49 = vld [vmem:[%s6394_s1 + $0x690] sm:$0xff]  ;;  %v5718_v44 = vld [vmem:[%s6393_s0 + $0x820] sm:$0xff]  ;;  %v1460_v42 = vmul.f32 %v5703_v23, %v1313_v16 }
 0x156   :  { %v1602_v48 = vadd.f32 %v1601_v4, %v1456_v1  ;;  %v1999_v11 = vadd.f32 %v1998_v17, %v1853_v37  ;;  %v1459_v30 = vmul.f32 %v5688_v50, %v1312_v53  ;;  %v2607_v37 = vld [vmem:[%s6393_s0 + $0x688] sm:$0xff]  ;;  %v1461_v53 = vmul.f32 %v5718_v44, %v1314_v14 }
 0x157   :  { %v1043_v52 = vadd.f32 %v1042_v41, %v897_v62  ;;  %v1856_v62 = vmul.f32 %v2606_v7, %v2461_v46  ;;  %v1857_v10 = vmul.f32 %v2607_v37, %v2462_v55  ;;  %v2464_v41 = vld [vmem:[%s6394_s1 + $0x698] sm:$0xff]  ;;  %v5733_v46 = vld [vmem:[%s6393_s0 + $0x828] sm:$0xff] }
 0x158   :  { %v1603_v61 = vadd.f32 %v1602_v48, %v1457_v36  ;;  %v2000_v32 = vadd.f32 %v1999_v11, %v1854_v6  ;;  %v2608_v6 = vld [vmem:[%s6393_s0 + $0x690] sm:$0xff]  ;;  %v1316_v48 = vld [vmem:[%s6394_s1 + $0x398] sm:$0xff]  ;;  %v1462_v7 = vmul.f32 %v5733_v46, %v1315_v19  ;;  %v2611_v19 = vld [vmem:[%s6393_s0 + $0x6a8] sm:$0xff] }
 0x159   :  { %v1044_v1 = vadd.f32 %v1043_v52, %v898_v54  ;;  %v1858_v17 = vmul.f32 %v2608_v6, %v2463_v49  ;;  %v2609_v55 = vld [vmem:[%s6393_s0 + $0x698] sm:$0xff]  ;;  %v1317_v49 = vld [vmem:[%s6394_s1 + $0x3a0] sm:$0xff] }
 0x15a   :  { %v1604_v36 = vadd.f32 %v1603_v61, %v1458_v47  ;;  %v2001_v4 = vadd.f32 %v2000_v32, %v1855_v2  ;;  %v2465_v2 = vld [vmem:[%s6394_s1 + $0x6a0] sm:$0xff]  ;;  %v5748_v47 = vld [vmem:[%s6393_s0 + $0x830] sm:$0xff]  ;;  %v1859_v11 = vmul.f32 %v2609_v55, %v2464_v41  ;;  %v5763_v61 = vld [vmem:[%s6393_s0 + $0x838] sm:$0xff] }
 0x15b   :  { %v1045_v54 = vadd.f32 %v1044_v1, %v899_v9  ;;  %v2610_v32 = vld [vmem:[%s6393_s0 + $0x6a0] sm:$0xff]  ;;  %v2612_v55 = vld [vmem:[%s6393_s0 + $0x6b0] sm:$0xff] }
 0x15c   :  { %v1605_v58 = vadd.f32 %v1604_v36, %v1459_v30  ;;  %v2002_v52 = vadd.f32 %v2001_v4, %v1856_v62  ;;  %v2466_v62 = vld [vmem:[%s6394_s1 + $0x6a8] sm:$0xff]  ;;  %v1860_v14 = vmul.f32 %v2610_v32, %v2465_v2  ;;  %v5778_v41 = vld [vmem:[%s6393_s0 + $0x840] sm:$0xff] }
 0x15d   :  { %v1046_v9 = vrot.slane %v1045_v54, 4  ;;  %v1318_v4 = vld [vmem:[%s6394_s1 + $0x3a8] sm:$0xff]  ;;  %v1861_v6 = vmul.f32 %v2611_v19, %v2466_v62  ;;  %v2469_v32 = vld [vmem:[%s6394_s1 + $0x6c0] sm:$0xff] }
 0x15e   :  { %v1606_v1 = vadd.f32 %v1605_v58, %v1460_v42  ;;  %v2003_v30 = vadd.f32 %v2002_v52, %v1857_v10  ;;  %v2467_v10 = vld [vmem:[%s6394_s1 + $0x6b0] sm:$0xff]  ;;  %v5793_v52 = vld [vmem:[%s6393_s0 + $0x848] sm:$0xff]  ;;  %v1321_v19 = vld [vmem:[%s6394_s1 + $0x3c0] sm:$0xff] }
 0x15f   :  { %v1047_v16 = vadd.f32 %v1046_v9, %v1045_v54  ;;  %v1463_v54 = vmul.f32 %v5748_v47, %v1316_v48  ;;  %v1319_v48 = vld [vmem:[%s6394_s1 + $0x3b0] sm:$0xff] }
 0x160   :  { %v1607_v42 = vadd.f32 %v1606_v1, %v1461_v53  ;;  %v2004_v36 = vadd.f32 %v2003_v30, %v1858_v17  ;;  %v1464_v53 = vmul.f32 %v5763_v61, %v1317_v49  ;;  %v2468_v17 = vld [vmem:[%s6394_s1 + $0x6b8] sm:$0xff]  ;;  %v1465_v1 = vmul.f32 %v5778_v41, %v1318_v4 }
 0x161   :  { %v1048_v37 = vrot.slane %v1047_v16, 2  ;;  %v1320_v49 = vld [vmem:[%s6394_s1 + $0x3b8] sm:$0xff] }
 0x162   :  { %v1608_v58 = vadd.f32 %v1607_v42, %v1462_v7  ;;  %v2005_v2 = vadd.f32 %v2004_v36, %v1859_v11  ;;  %v5805_v11 = vld [vmem:[%s6393_s0 + $0x850] sm:$0xff]  ;;  %v5820_v4 = vld [vmem:[%s6393_s0 + $0x858] sm:$0xff] }
 0x163   :  { %v1049_v9 = vadd.f32 %v1048_v37, %v1047_v16  ;;  %v1862_v16 = vmul.f32 %v2612_v55, %v2467_v10  ;;  %v2613_v37 = vld [vmem:[%s6393_s0 + $0x6b8] sm:$0xff]  ;;  %v1322_v55 = vld [vmem:[%s6394_s1 + $0x3c8] sm:$0xff] }
 0x164   :  { %v1609_v62 = vadd.f32 %v1608_v58, %v1463_v54  ;;  %v2006_v30 = vadd.f32 %v2005_v2, %v1860_v14  ;;  %v1863_v42 = vmul.f32 %v2613_v37, %v2468_v17  ;;  %v1466_v14 = vmul.f32 %v5793_v52, %v1319_v48  ;;  %v2470_v58 = vld [vmem:[%s6394_s1 + $0x6c8] sm:$0xff]  ;;  %v5835_v48 = vld [vmem:[%s6393_s0 + $0x860] sm:$0xff]  ;;  %v1323_v37 = vld [vmem:[%s6394_s1 + $0x3d0] sm:$0xff] }
 0x165   :  { %v1050_v7 = vrot.slane %v1049_v9, 1 }
 0x166   :  { %v1610_v10 = vadd.f32 %v1609_v62, %v1464_v53  ;;  %v2007_v36 = vadd.f32 %v2006_v30, %v1861_v6  ;;  %v2614_v6 = vld [vmem:[%s6393_s0 + $0x6c0] sm:$0xff] }
 0x167   :  { %v1051_v54 = vadd.f32 %v1050_v7, %v1049_v9  ;;  %v1467_v9 = vmul.f32 %v5805_v11, %v1320_v49  ;;  %v1864_v53 = vmul.f32 %v2614_v6, %v2469_v32  ;;  %v2471_v7 = vld [vmem:[%s6394_s1 + $0x6d0] sm:$0xff]  ;;  %v5850_v32 = vld [vmem:[%s6393_s0 + $0x868] sm:$0xff]  ;;  %v2473_v6 = vld [vmem:[%s6394_s1 + $0x6e0] sm:$0xff] }
 0x168   :  { %v1611_v17 = vadd.f32 %v1610_v10, %v1465_v1  ;;  %v2008_v2 = vadd.f32 %v2007_v36, %v1862_v16  ;;  %v1468_v1 = vmul.f32 %v5820_v4, %v1321_v19  ;;  %v2615_v16 = vld [vmem:[%s6393_s0 + $0x6c8] sm:$0xff] }
 0x169   :  { %1052 = vst [vmem:[#allocation2 + $0x1] sm:$0x1] %v1051_v54  ;;  %v1865_v30 = vmul.f32 %v2615_v16, %v2470_v58  ;;  %v2472_v54 = vld [vmem:[%s6394_s1 + $0x6d8] sm:$0xff]  ;;  %v5865_v58 = vld [vmem:[%s6393_s0 + $0x870] sm:$0xff]  ;;  %v1325_v16 = vld [vmem:[%s6394_s1 + $0x3e0] sm:$0xff] }
 0x16a   :  { %v1612_v62 = vadd.f32 %v1611_v17, %v1466_v14  ;;  %v2009_v49 = vadd.f32 %v2008_v2, %v1863_v42  ;;  %v1469_v14 = vmul.f32 %v5835_v48, %v1322_v55  ;;  %v2616_v42 = vld [vmem:[%s6393_s0 + $0x6d0] sm:$0xff]  ;;  %6405 = vst [vmem:[#allocation3_spill] sm:$0xff] %v5865_v58  ;;  %v1324_v17 = vld [vmem:[%s6394_s1 + $0x3d8] sm:$0xff] }
 0x16b   :  { %v1866_v36 = vmul.f32 %v2616_v42, %v2471_v7  ;;  %v5895_v42 = vld [vmem:[%s6393_s0 + $0x880] sm:$0xff] }
 0x16c   :  { %v1613_v10 = vadd.f32 %v1612_v62, %v1467_v9  ;;  %v2010_v19 = vadd.f32 %v2009_v49, %v1864_v53  ;;  %v1470_v9 = vmul.f32 %v5850_v32, %v1323_v37  ;;  %v2617_v53 = vld [vmem:[%s6393_s0 + $0x6d8] sm:$0xff]  ;;  %v2474_v49 = vld [vmem:[%s6394_s1 + $0x6e8] sm:$0xff]  ;;  %6407 = vst [vmem:[#allocation5_spill] sm:$0xff] %v5895_v42 }
 0x16d   :  { %v1867_v55 = vmul.f32 %v2617_v53, %v2472_v54  ;;  %v5880_v62 = vld [vmem:[%s6393_s0 + $0x878] sm:$0xff] }
 0x16e   :  { %v1614_v2 = vadd.f32 %v1613_v10, %v1468_v1  ;;  %v2011_v7 = vadd.f32 %v2010_v19, %v1865_v30  ;;  %6406 = vst [vmem:[#allocation4_spill] sm:$0xff] %v5880_v62  ;;  %v1471_v1 = vmul.f32 %v5865_v58, %v1324_v17  ;;  %v2618_v30 = vld [vmem:[%s6393_s0 + $0x6e0] sm:$0xff]  ;;  %v1326_v19 = vld [vmem:[%s6394_s1 + $0x3e8] sm:$0xff]  ;;  %v2475_v17 = vld [vmem:[%s6394_s1 + $0x6f0] sm:$0xff] }
 0x16f   :  { %v1868_v54 = vmul.f32 %v2618_v30, %v2473_v6  ;;  %v1327_v30 = vld [vmem:[%s6394_s1 + $0x3f0] sm:$0xff] }
 0x170   :  { %v1615_v37 = vadd.f32 %v1614_v2, %v1469_v14  ;;  %v2012_v10 = vadd.f32 %v2011_v7, %v1866_v36  ;;  %v1472_v14 = vmul.f32 %v5880_v62, %v1325_v16  ;;  %v2619_v36 = vld [vmem:[%s6393_s0 + $0x6e8] sm:$0xff]  ;;  %v2476_v16 = vld [vmem:[%s6394_s1 + $0x6f8] sm:$0xff] }
 0x171   :  { %v1869_v6 = vmul.f32 %v2619_v36, %v2474_v49  ;;  %v5910_v7 = vld [vmem:[%s6393_s0 + $0x888] sm:$0xff]  ;;  %v5925_v36 = vld [vmem:[%s6393_s0 + $0x890] sm:$0xff]  ;;  %v1328_v62 = vld [vmem:[%s6394_s1 + $0x3f8] sm:$0xff] }
 0x172   :  { %v1616_v2 = vadd.f32 %v1615_v37, %v1470_v9  ;;  %v2013_v53 = vadd.f32 %v2012_v10, %v1867_v55  ;;  %6408 = vst [vmem:[#allocation6_spill] sm:$0xff] %v5910_v7  ;;  %v1473_v9 = vmul.f32 %v5895_v42, %v1326_v19  ;;  %v2620_v55 = vld [vmem:[%s6393_s0 + $0x6f0] sm:$0xff]  ;;  %6409 = vst [vmem:[#allocation7_spill] sm:$0xff] %v5925_v36  ;;  %v2477_v19 = vld [vmem:[%s6394_s1 + $0x700] sm:$0xff] }
 0x173   :  { %v1870_v49 = vmul.f32 %v2620_v55, %v2475_v17  ;;  %v5940_v55 = vld [vmem:[%s6393_s0 + $0x898] sm:$0xff]  ;;  %v1329_v42 = vld [vmem:[%s6394_s1 + $0x400] sm:$0xff] }
 0x174   :  { %v1617_v37 = vadd.f32 %v1616_v2, %v1471_v1  ;;  %v2014_v10 = vadd.f32 %v2013_v53, %v1868_v54  ;;  %v1474_v1 = vmul.f32 %v5910_v7, %v1327_v30  ;;  %v2621_v54 = vld [vmem:[%s6393_s0 + $0x6f8] sm:$0xff]  ;;  %6410 = vst [vmem:[#allocation8_spill] sm:$0xff] %v5940_v55  ;;  %v2478_v30 = vld [vmem:[%s6394_s1 + $0x708] sm:$0xff] }
 0x175   :  { %v1871_v17 = vmul.f32 %v2621_v54, %v2476_v16  ;;  %v5955_v54 = vld [vmem:[%s6393_s0 + $0x8a0] sm:$0xff]  ;;  %v1330_v7 = vld [vmem:[%s6394_s1 + $0x408] sm:$0xff] }
 0x176   :  { %v1618_v2 = vadd.f32 %v1617_v37, %v1472_v14  ;;  %v2015_v53 = vadd.f32 %v2014_v10, %v1869_v6  ;;  %v1475_v14 = vmul.f32 %v5925_v36, %v1328_v62  ;;  %v2622_v6 = vld [vmem:[%s6393_s0 + $0x700] sm:$0xff]  ;;  %v2479_v62 = vld [vmem:[%s6394_s1 + $0x710] sm:$0xff] }
 0x177   :  { %v1872_v16 = vmul.f32 %v2622_v6, %v2477_v19  ;;  %v5970_v6 = vld [vmem:[%s6393_s0 + $0x8a8] sm:$0xff]  ;;  %v1331_v36 = vld [vmem:[%s6394_s1 + $0x410] sm:$0xff] }
 0x178   :  { %v1619_v37 = vadd.f32 %v1618_v2, %v1473_v9  ;;  %v2016_v10 = vadd.f32 %v2015_v53, %v1870_v49  ;;  %v1476_v9 = vmul.f32 %v5940_v55, %v1329_v42  ;;  %v2623_v49 = vld [vmem:[%s6393_s0 + $0x708] sm:$0xff]  ;;  %v2480_v42 = vld [vmem:[%s6394_s1 + $0x718] sm:$0xff]  ;;  %v1874_v55 = vmul.f32 %v2479_v62, %v5018_v29  ;;  %v1333_v62 = vld [vmem:[%s6394_s1 + $0x420] sm:$0xff] }
 0x179   :  { %v1873_v19 = vmul.f32 %v2623_v49, %v2478_v30  ;;  %v2481_v49 = vld [vmem:[%s6394_s1 + $0x720] sm:$0xff]  ;;  %v1478_v58 = vmul.f32 %v5970_v6, %v1331_v36 }
 0x17a   :  { %v1620_v2 = vadd.f32 %v1619_v37, %v1474_v1  ;;  %v2017_v53 = vadd.f32 %v2016_v10, %v1871_v17  ;;  %v1477_v1 = vmul.f32 %v5955_v54, %v1330_v7  ;;  %v5983_v17 = vld [vmem:[%s6393_s0 + $0x8b0] sm:$0xff]  ;;  %v1332_v10 = vld [vmem:[%s6394_s1 + $0x418] sm:$0xff] }
 0x17c   :  { %v1621_v37 = vadd.f32 %v1620_v2, %v1475_v14  ;;  %v2018_v30 = vadd.f32 %v2017_v53, %v1872_v16  ;;  %v1875_v14 = vmul.f32 %v2480_v42, %v5045_v18  ;;  %v5996_v16 = vld [vmem:[%s6393_s0 + $0x8b8] sm:$0xff]  ;;  %v2482_v2 = vld [vmem:[%s6394_s1 + $0x728] sm:$0xff]  ;;  %v1479_v53 = vmul.f32 %v5983_v17, %v1332_v10 }
 0x17d   :  { %v1334_v42 = vld [vmem:[%s6394_s1 + $0x428] sm:$0xff] }
 0x17e   :  { %v1622_v7 = vadd.f32 %v1621_v37, %v1476_v9  ;;  %v2019_v29 = vadd.f32 %v2018_v30, %v1873_v19  ;;  %v1876_v9 = vmul.f32 %v2481_v49, %v5073_v8  ;;  %v6009_v19 = vld [vmem:[%s6393_s0 + $0x8c0] sm:$0xff]  ;;  %v2483_v37 = vld [vmem:[%s6394_s1 + $0x730] sm:$0xff]  ;;  %v1480_v30 = vmul.f32 %v5996_v16, %v1333_v62 }
 0x17f   :  { %v1335_v49 = vld [vmem:[%s6394_s1 + $0x430] sm:$0xff] }
 0x180   :  { %v1623_v36 = vadd.f32 %v1622_v7, %v1477_v1  ;;  %v2020_v18 = vadd.f32 %v2019_v29, %v1874_v55  ;;  %v1877_v1 = vmul.f32 %v2482_v2, %v5101_v40  ;;  %v6022_v55 = vld [vmem:[%s6393_s0 + $0x8c8] sm:$0xff]  ;;  %v2484_v7 = vld [vmem:[%s6394_s1 + $0x738] sm:$0xff]  ;;  %v1481_v29 = vmul.f32 %v6009_v19, %v1334_v42 }
 0x181   :  { %v1336_v2 = vld [vmem:[%s6394_s1 + $0x438] sm:$0xff] }
 0x182   :  { %v1624_v10 = vadd.f32 %v1623_v36, %v1478_v58  ;;  %v2021_v8 = vadd.f32 %v2020_v18, %v1875_v14  ;;  %v1878_v58 = vmul.f32 %v2483_v37, %v5129_v38  ;;  %v6035_v14 = vld [vmem:[%s6393_s0 + $0x8d0] sm:$0xff]  ;;  %v2485_v36 = vld [vmem:[%s6394_s1 + $0x740] sm:$0xff]  ;;  %v1482_v18 = vmul.f32 %v6022_v55, %v1335_v49 }
 0x183   :  { %v1337_v37 = vld [vmem:[%s6394_s1 + $0x440] sm:$0xff] }
 0x184   :  { %v1625_v62 = vadd.f32 %v1624_v10, %v1479_v53  ;;  %v2022_v40 = vadd.f32 %v2021_v8, %v1876_v9  ;;  %v1879_v53 = vmul.f32 %v2484_v7, %v5157_v51  ;;  %v6048_v9 = vld [vmem:[%s6393_s0 + $0x8d8] sm:$0xff]  ;;  %v2486_v10 = vld [vmem:[%s6394_s1 + $0x748] sm:$0xff]  ;;  %v1483_v8 = vmul.f32 %v6035_v14, %v1336_v2 }
 0x185   :  { %v1338_v7 = vld [vmem:[%s6394_s1 + $0x448] sm:$0xff] }
 0x186   :  { %v1626_v42 = vadd.f32 %v1625_v62, %v1480_v30  ;;  %v2023_v38 = vadd.f32 %v2022_v40, %v1877_v1  ;;  %v1880_v30 = vmul.f32 %v2485_v36, %v5185_v20  ;;  %v6061_v1 = vld [vmem:[%s6393_s0 + $0x8e0] sm:$0xff]  ;;  %v2487_v62 = vld [vmem:[%s6394_s1 + $0x750] sm:$0xff]  ;;  %v1484_v40 = vmul.f32 %v6048_v9, %v1337_v37 }
 0x187   :  { %v1339_v36 = vld [vmem:[%s6394_s1 + $0x450] sm:$0xff] }
 0x188   :  { %v1627_v49 = vadd.f32 %v1626_v42, %v1481_v29  ;;  %v2024_v51 = vadd.f32 %v2023_v38, %v1878_v58  ;;  %v1881_v29 = vmul.f32 %v2486_v10, %v5213_v26  ;;  %v6074_v58 = vld [vmem:[%s6393_s0 + $0x8e8] sm:$0xff]  ;;  %v2488_v42 = vld [vmem:[%s6394_s1 + $0x758] sm:$0xff]  ;;  %v1485_v38 = vmul.f32 %v6061_v1, %v1338_v7 }
 0x189   :  { %v1340_v10 = vld [vmem:[%s6394_s1 + $0x458] sm:$0xff] }
 0x18a   :  { %v1628_v2 = vadd.f32 %v1627_v49, %v1482_v18  ;;  %v2025_v20 = vadd.f32 %v2024_v51, %v1879_v53  ;;  %v1882_v18 = vmul.f32 %v2487_v62, %v5233_v5  ;;  %v6087_v53 = vld [vmem:[%s6393_s0 + $0x8f0] sm:$0xff]  ;;  %v2489_v49 = vld [vmem:[%s6394_s1 + $0x760] sm:$0xff]  ;;  %v1486_v51 = vmul.f32 %v6074_v58, %v1339_v36 }
 0x18b   :  { %v1341_v62 = vld [vmem:[%s6394_s1 + $0x460] sm:$0xff] }
 0x18c   :  { %v1629_v37 = vadd.f32 %v1628_v2, %v1483_v8  ;;  %v2026_v26 = vadd.f32 %v2025_v20, %v1880_v30  ;;  %v1883_v8 = vmul.f32 %v2488_v42, %v5253_v15  ;;  %v6100_v30 = vld [vmem:[%s6393_s0 + $0x8f8] sm:$0xff]  ;;  %v2490_v2 = vld [vmem:[%s6394_s1 + $0x768] sm:$0xff]  ;;  %v1487_v20 = vmul.f32 %v6087_v53, %v1340_v10 }
 0x18d   :  { %v1342_v42 = vld [vmem:[%s6394_s1 + $0x468] sm:$0xff] }
 0x18e   :  { %v1630_v7 = vadd.f32 %v1629_v37, %v1484_v40  ;;  %v2027_v5 = vadd.f32 %v2026_v26, %v1881_v29  ;;  %v1884_v40 = vmul.f32 %v2489_v49, %v5272_v63  ;;  %v6113_v29 = vld [vmem:[%s6393_s0 + $0x900] sm:$0xff]  ;;  %v2491_v37 = vld [vmem:[%s6394_s1 + $0x770] sm:$0xff]  ;;  %v1488_v26 = vmul.f32 %v6100_v30, %v1341_v62 }
 0x18f   :  { %v1343_v49 = vld [vmem:[%s6394_s1 + $0x470] sm:$0xff] }
 0x190   :  { %v1631_v36 = vadd.f32 %v1630_v7, %v1485_v38  ;;  %v2028_v15 = vadd.f32 %v2027_v5, %v1882_v18  ;;  %v1885_v38 = vmul.f32 %v2490_v2, %v5288_v21  ;;  %v6126_v18 = vld [vmem:[%s6393_s0 + $0x908] sm:$0xff]  ;;  %v2492_v7 = vld [vmem:[%s6394_s1 + $0x778] sm:$0xff]  ;;  %v1489_v5 = vmul.f32 %v6113_v29, %v1342_v42 }
 0x191   :  { %6411 = vst [vmem:[#allocation9_spill] sm:$0xff] %v6126_v18  ;;  %v1344_v2 = vld [vmem:[%s6394_s1 + $0x478] sm:$0xff] }
 0x192   :  { %v1632_v10 = vadd.f32 %v1631_v36, %v1486_v51  ;;  %v2029_v63 = vadd.f32 %v2028_v15, %v1883_v8  ;;  %v1886_v51 = vmul.f32 %v2491_v37, %v5307_v56  ;;  %v6139_v8 = vld [vmem:[%s6393_s0 + $0x910] sm:$0xff]  ;;  %v2493_v36 = vld [vmem:[%s6394_s1 + $0x780] sm:$0xff]  ;;  %v1490_v15 = vmul.f32 %v6126_v18, %v1343_v49 }
 0x193   :  { %6412 = vst [vmem:[#allocation10_spill] sm:$0xff] %v6139_v8  ;;  %v1345_v37 = vld [vmem:[%s6394_s1 + $0x480] sm:$0xff] }
 0x194   :  { %v1633_v62 = vadd.f32 %v1632_v10, %v1487_v20  ;;  %v2030_v21 = vadd.f32 %v2029_v63, %v1884_v40  ;;  %v1887_v20 = vmul.f32 %v2492_v7, %v5323_v59  ;;  %v6152_v40 = vld [vmem:[%s6393_s0 + $0x918] sm:$0xff]  ;;  %v2494_v10 = vld [vmem:[%s6394_s1 + $0x788] sm:$0xff]  ;;  %v1491_v63 = vmul.f32 %v6139_v8, %v1344_v2 }
 0x195   :  { %6413 = vst [vmem:[#allocation11_spill] sm:$0xff] %v6152_v40  ;;  %v1346_v7 = vld [vmem:[%s6394_s1 + $0x488] sm:$0xff] }
 0x196   :  { %v1634_v42 = vadd.f32 %v1633_v62, %v1488_v26  ;;  %v2031_v56 = vadd.f32 %v2030_v21, %v1885_v38  ;;  %v1888_v26 = vmul.f32 %v2493_v36, %v5342_v43  ;;  %v6165_v38 = vld [vmem:[%s6393_s0 + $0x920] sm:$0xff]  ;;  %v2495_v62 = vld [vmem:[%s6394_s1 + $0x790] sm:$0xff]  ;;  %v1492_v21 = vmul.f32 %v6152_v40, %v1345_v37  ;;  %v2498_v8 = vld [vmem:[%s6394_s1 + $0x7a8] sm:$0xff] }
 0x197   :  { %v1347_v36 = vld [vmem:[%s6394_s1 + $0x490] sm:$0xff] }
 0x198   :  { %v1635_v49 = vadd.f32 %v1634_v42, %v1489_v5  ;;  %v2032_v59 = vadd.f32 %v2031_v56, %v1886_v51  ;;  %v1889_v5 = vmul.f32 %v2494_v10, %v5361_v0  ;;  %v6178_v51 = vld [vmem:[%s6393_s0 + $0x928] sm:$0xff]  ;;  %v2496_v42 = vld [vmem:[%s6394_s1 + $0x798] sm:$0xff]  ;;  %v1493_v56 = vmul.f32 %v6165_v38, %v1346_v7 }
 0x199   :  { %v1494_v10 = vmul.f32 %v6178_v51, %v1347_v36 }
 0x19a   :  { %v1636_v2 = vadd.f32 %v1635_v49, %v1490_v15  ;;  %v2033_v43 = vadd.f32 %v2032_v59, %v1887_v20  ;;  %v1890_v15 = vmul.f32 %v2495_v62, %v5380_v24  ;;  %v2497_v20 = vld [vmem:[%s6394_s1 + $0x7a0] sm:$0xff]  ;;  %v1891_v59 = vmul.f32 %v2496_v42, %v5399_v34  ;;  %v2499_v24 = vld [vmem:[%s6394_s1 + $0x7b0] sm:$0xff]  ;;  %v2500_v34 = vld [vmem:[%s6394_s1 + $0x7b8] sm:$0xff] }
 0x19b   :  { %v1893_v62 = vmul.f32 %v2498_v8, %v5437_v60  ;;  %v1895_v36 = vmul.f32 %v2500_v34, %v5475_v31  ;;  %v2502_v60 = vld [vmem:[%s6394_s1 + $0x7c8] sm:$0xff]  ;;  %v2504_v31 = vld [vmem:[%s6394_s1 + $0x7d8] sm:$0xff] }
 0x19c   :  { %v1637_v37 = vadd.f32 %v1636_v2, %v1491_v63  ;;  %v2034_v0 = vadd.f32 %v2033_v43, %v1888_v26  ;;  %v1892_v63 = vmul.f32 %v2497_v20, %v5418_v45  ;;  %v2501_v45 = vld [vmem:[%s6394_s1 + $0x7c0] sm:$0xff] }
 0x19d   :  { %v1896_v8 = vmul.f32 %v2501_v45, %v5494_v12  ;;  %v2505_v12 = vld [vmem:[%s6394_s1 + $0x7e0] sm:$0xff]  ;;  %v2510_v45 = vld [vmem:[%s6394_s1 + $0x808] sm:$0xff] }
 0x19e   :  { %v1638_v49 = vadd.f32 %v1637_v37, %v1492_v21  ;;  %v2035_v40 = vadd.f32 %v2034_v0, %v1889_v5  ;;  %v1894_v5 = vmul.f32 %v2499_v24, %v5456_v33  ;;  %v2503_v33 = vld [vmem:[%s6394_s1 + $0x7d0] sm:$0xff]  ;;  %v1900_v24 = vmul.f32 %v2505_v12, %v5570_v28  ;;  %v2518_v12 = vld [vmem:[%s6394_s1 + $0x848] sm:$0xff] }
 0x1a0   :  { %v1639_v18 = vadd.f32 %v1638_v49, %v1493_v56  ;;  %v2036_v7 = vadd.f32 %v2035_v40, %v1890_v15  ;;  %v1897_v15 = vmul.f32 %v2502_v60, %v5513_v3  ;;  %v2506_v3 = vld [vmem:[%s6394_s1 + $0x7e8] sm:$0xff]  ;;  %v2512_v60 = vld [vmem:[%s6394_s1 + $0x818] sm:$0xff] }
 0x1a2   :  { %v1640_v26 = vadd.f32 %v1639_v18, %v1494_v10  ;;  %v2037_v2 = vadd.f32 %v2036_v7, %v1891_v59  ;;  %v1898_v10 = vmul.f32 %v2503_v33, %v5532_v57  ;;  %v2507_v57 = vld [vmem:[%s6394_s1 + $0x7f0] sm:$0xff]  ;;  %v2514_v33 = vld [vmem:[%s6394_s1 + $0x828] sm:$0xff] }
 0x1a3   :  { %v1902_v34 = vmul.f32 %v2507_v57, %v5608_v22  ;;  %v1905_v22 = vmul.f32 %v2510_v45, %v5672_v13 }
 0x1a4   :  { %v1641_v21 = vrot.slane %v1640_v26, 4  ;;  %v2038_v43 = vadd.f32 %v2037_v2, %v1892_v63  ;;  %v1899_v63 = vmul.f32 %v2504_v31, %v5551_v25  ;;  %v2508_v25 = vld [vmem:[%s6394_s1 + $0x7f8] sm:$0xff] }
 0x1a5   :  { %v1903_v28 = vmul.f32 %v2508_v25, %v5627_v27  ;;  %v2516_v31 = vld [vmem:[%s6394_s1 + $0x838] sm:$0xff]  ;;  %v2523_v25 = vld [vmem:[%s6394_s1 + $0x870] sm:$0xff] }
 0x1a6   :  { %v1642_v40 = vadd.f32 %v1641_v21, %v1640_v26  ;;  %v2039_v42 = vadd.f32 %v2038_v43, %v1893_v62  ;;  %v1901_v62 = vmul.f32 %v2506_v3, %v5589_v39  ;;  %v2520_v3 = vld [vmem:[%s6394_s1 + $0x858] sm:$0xff] }
 0x1a8   :  { %v1643_v18 = vrot.slane %v1642_v40, 2  ;;  %v2040_v56 = vadd.f32 %v2039_v42, %v1894_v5  ;;  %v2509_v5 = vld [vmem:[%s6394_s1 + $0x800] sm:$0xff] }
 0x1a9   :  { %v1904_v39 = vmul.f32 %v2509_v5, %v5646_v35  ;;  %v1907_v35 = vmul.f32 %v2512_v60, %v5703_v23  ;;  %v6417_v60 = vld [vmem:[#allocation6_spill] sm:$0xff] }
 0x1aa   :  { %v1644_v37 = vadd.f32 %v1643_v18, %v1642_v40  ;;  %v2041_v0 = vadd.f32 %v2040_v56, %v1895_v36  ;;  %v2511_v36 = vld [vmem:[%s6394_s1 + $0x810] sm:$0xff] }
 0x1ab   :  { %v1906_v27 = vmul.f32 %v2511_v36, %v5688_v50  ;;  %v1909_v50 = vmul.f32 %v2514_v33, %v5733_v46 }
 0x1ac   :  { %v1645_v20 = vrot.slane %v1644_v37, 1  ;;  %v2042_v49 = vadd.f32 %v2041_v0, %v1896_v8  ;;  %v2513_v8 = vld [vmem:[%s6394_s1 + $0x820] sm:$0xff] }
 0x1ad   :  { %v1908_v13 = vmul.f32 %v2513_v8, %v5718_v44  ;;  %v1911_v44 = vmul.f32 %v2516_v31, %v5763_v61  ;;  %v2528_v8 = vld [vmem:[%s6394_s1 + $0x898] sm:$0xff] }
 0x1ae   :  { %v1646_v59 = vadd.f32 %v1645_v20, %v1644_v37  ;;  %v2043_v7 = vadd.f32 %v2042_v49, %v1897_v15  ;;  %v2515_v15 = vld [vmem:[%s6394_s1 + $0x830] sm:$0xff] }
 0x1af   :  { %v1910_v23 = vmul.f32 %v2515_v15, %v5748_v47  ;;  %v1913_v47 = vmul.f32 %v2518_v12, %v5793_v52 }
 0x1b0   :  { %1647 = vst [vmem:[#allocation2 + $0x2] sm:$0x1] %v1646_v59  ;;  %v2044_v26 = vadd.f32 %v2043_v7, %v1898_v10  ;;  %v2517_v10 = vld [vmem:[%s6394_s1 + $0x840] sm:$0xff] }
 0x1b1   :  { %v1912_v46 = vmul.f32 %v2517_v10, %v5778_v41  ;;  %v1915_v41 = vmul.f32 %v2520_v3, %v5820_v4  ;;  %v6414_v4 = vld [vmem:[#allocation3_spill] sm:$0xff]  ;;  %v2535_v3 = vld [vmem:[%s6394_s1 + $0x8d0] sm:$0xff] }
 0x1b2   :  { %v2045_v2 = vadd.f32 %v2044_v26, %v1899_v63  ;;  %v2519_v63 = vld [vmem:[%s6394_s1 + $0x850] sm:$0xff]  ;;  %v2521_v26 = vld [vmem:[%s6394_s1 + $0x860] sm:$0xff]  ;;  %v1918_v5 = vmul.f32 %v2523_v25, %v6414_v4 }
 0x1b3   :  { %v1914_v61 = vmul.f32 %v2519_v63, %v5805_v11  ;;  %v1916_v52 = vmul.f32 %v2521_v26, %v5835_v48  ;;  %v6415_v48 = vld [vmem:[#allocation4_spill] sm:$0xff] }
 0x1b4   :  { %v2046_v21 = vadd.f32 %v2045_v2, %v1900_v24 }
 0x1b6   :  { %v2047_v43 = vadd.f32 %v2046_v21, %v1901_v62  ;;  %v2522_v62 = vld [vmem:[%s6394_s1 + $0x868] sm:$0xff]  ;;  %v2524_v21 = vld [vmem:[%s6394_s1 + $0x878] sm:$0xff] }
 0x1b7   :  { %v1917_v11 = vmul.f32 %v2522_v62, %v5850_v32  ;;  %v1919_v45 = vmul.f32 %v2524_v21, %v6415_v48  ;;  %v6416_v32 = vld [vmem:[#allocation5_spill] sm:$0xff]  ;;  %v2538_v62 = vld [vmem:[%s6394_s1 + $0x8e8] sm:$0xff]  ;;  %v2541_v21 = vld [vmem:[%s6394_s1 + $0x900] sm:$0xff] }
 0x1b8   :  { %v2048_v40 = vadd.f32 %v2047_v43, %v1902_v34  ;;  %v2525_v43 = vld [vmem:[%s6394_s1 + $0x880] sm:$0xff] }
 0x1b9   :  { %v1920_v36 = vmul.f32 %v2525_v43, %v6416_v32  ;;  %v2543_v43 = vld [vmem:[%s6394_s1 + $0x910] sm:$0xff] }
 0x1ba   :  { %v2049_v42 = vadd.f32 %v2048_v40, %v1903_v28  ;;  %v2526_v40 = vld [vmem:[%s6394_s1 + $0x888] sm:$0xff] }
 0x1bc   :  { %v2050_v18 = vadd.f32 %v2049_v42, %v1904_v39  ;;  %v2527_v42 = vld [vmem:[%s6394_s1 + $0x890] sm:$0xff] }
 0x1be   :  { %v2051_v56 = vadd.f32 %v2050_v18, %v1905_v22 }
 0x1c0   :  { %v2052_v37 = vadd.f32 %v2051_v56, %v1906_v27  ;;  %v1921_v27 = vmul.f32 %v2526_v40, %v6417_v60  ;;  %v2546_v60 = vld [vmem:[%s6394_s1 + $0x928] sm:$0xff] }
 0x1c2   :  { %v2053_v0 = vadd.f32 %v2052_v37, %v1907_v35  ;;  %v6418_v35 = vld [vmem:[#allocation7_spill] sm:$0xff]  ;;  %v6419_v37 = vld [vmem:[#allocation8_spill] sm:$0xff] }
 0x1c3   :  { %v1922_v56 = vmul.f32 %v2527_v42, %v6418_v35  ;;  %v1923_v15 = vmul.f32 %v2528_v8, %v6419_v37  ;;  %v1941_v8 = vmul.f32 %v2546_v60, %v6178_v51 }
 0x1c4   :  { %v2054_v20 = vadd.f32 %v2053_v0, %v1908_v13  ;;  %v2529_v13 = vld [vmem:[%s6394_s1 + $0x8a0] sm:$0xff]  ;;  %v2530_v0 = vld [vmem:[%s6394_s1 + $0x8a8] sm:$0xff] }
 0x1c5   :  { %v1924_v31 = vmul.f32 %v2529_v13, %v5955_v54  ;;  %v1925_v10 = vmul.f32 %v2530_v0, %v5970_v6 }
 0x1c6   :  { %v2055_v49 = vadd.f32 %v2054_v20, %v1909_v50  ;;  %v2531_v20 = vld [vmem:[%s6394_s1 + $0x8b0] sm:$0xff] }
 0x1c7   :  { %v1926_v12 = vmul.f32 %v2531_v20, %v5983_v17 }
 0x1c8   :  { %v2056_v59 = vadd.f32 %v2055_v49, %v1910_v23  ;;  %v2532_v49 = vld [vmem:[%s6394_s1 + $0x8b8] sm:$0xff] }
 0x1c9   :  { %v1927_v54 = vmul.f32 %v2532_v49, %v5996_v16  ;;  %v1930_v16 = vmul.f32 %v2535_v3, %v6035_v14  ;;  %v1933_v14 = vmul.f32 %v2538_v62, %v6074_v58  ;;  %v1936_v58 = vmul.f32 %v2541_v21, %v6113_v29  ;;  %v6422_v29 = vld [vmem:[#allocation11_spill] sm:$0xff] }
 0x1ca   :  { %v2057_v7 = vadd.f32 %v2056_v59, %v1911_v44  ;;  %v2533_v59 = vld [vmem:[%s6394_s1 + $0x8c0] sm:$0xff] }
 0x1cb   :  { %v1928_v6 = vmul.f32 %v2533_v59, %v6009_v19 }
 0x1cc   :  { %v2058_v24 = vadd.f32 %v2057_v7, %v1912_v46 }
 0x1ce   :  { %v2059_v57 = vadd.f32 %v2058_v24, %v1913_v47  ;;  %v2534_v47 = vld [vmem:[%s6394_s1 + $0x8c8] sm:$0xff]  ;;  %v2536_v24 = vld [vmem:[%s6394_s1 + $0x8d8] sm:$0xff] }
 0x1cf   :  { %v1929_v17 = vmul.f32 %v2534_v47, %v6022_v55  ;;  %v1931_v19 = vmul.f32 %v2536_v24, %v6048_v9 }
 0x1d0   :  { %v2060_v2 = vadd.f32 %v2059_v57, %v1914_v61 }
 0x1d2   :  { %v2061_v34 = vadd.f32 %v2060_v2, %v1915_v41  ;;  %v2537_v41 = vld [vmem:[%s6394_s1 + $0x8e0] sm:$0xff]  ;;  %v2539_v2 = vld [vmem:[%s6394_s1 + $0x8f0] sm:$0xff] }
 0x1d3   :  { %v1932_v55 = vmul.f32 %v2537_v41, %v6061_v1  ;;  %v1934_v9 = vmul.f32 %v2539_v2, %v6087_v53  ;;  %v6420_v53 = vld [vmem:[#allocation9_spill] sm:$0xff] }
 0x1d4   :  { %v2062_v28 = vadd.f32 %v2061_v34, %v1916_v52 }
 0x1d6   :  { %v2063_v39 = vadd.f32 %v2062_v28, %v1917_v11  ;;  %v2540_v11 = vld [vmem:[%s6394_s1 + $0x8f8] sm:$0xff] }
 0x1d7   :  { %v1935_v1 = vmul.f32 %v2540_v11, %v6100_v30  ;;  %v6421_v30 = vld [vmem:[#allocation10_spill] sm:$0xff] }
 0x1d8   :  { %v2064_v22 = vadd.f32 %v2063_v39, %v1918_v5  ;;  %v2542_v5 = vld [vmem:[%s6394_s1 + $0x908] sm:$0xff]  ;;  %v2544_v39 = vld [vmem:[%s6394_s1 + $0x918] sm:$0xff]  ;;  %v1938_v40 = vmul.f32 %v2543_v43, %v6421_v30 }
 0x1d9   :  { %v1937_v48 = vmul.f32 %v2542_v5, %v6420_v53 }
 0x1da   :  { %v2065_v18 = vadd.f32 %v2064_v22, %v1919_v45  ;;  %v1939_v22 = vmul.f32 %v2544_v39, %v6422_v29 }
 0x1dc   :  { %v2066_v33 = vadd.f32 %v2065_v18, %v1920_v36  ;;  %v2545_v36 = vld [vmem:[%s6394_s1 + $0x920] sm:$0xff] }
 0x1de   :  { %v2067_v50 = vadd.f32 %v2066_v33, %v1921_v27  ;;  %v1940_v27 = vmul.f32 %v2545_v36, %v6165_v38 }
 0x1e0   :  { %v2068_v23 = vadd.f32 %v2067_v50, %v1922_v56 }
 0x1e2   :  { %v2069_v44 = vadd.f32 %v2068_v23, %v1923_v15 }
 0x1e4   :  { %v2070_v46 = vadd.f32 %v2069_v44, %v1924_v31 }
 0x1e6   :  { %v2071_v63 = vadd.f32 %v2070_v46, %v1925_v10 }
 0x1e8   :  { %v2072_v7 = vadd.f32 %v2071_v63, %v1926_v12 }
 0x1ea   :  { %v2073_v61 = vadd.f32 %v2072_v7, %v1927_v54 }
 0x1ec   :  { %v2074_v26 = vadd.f32 %v2073_v61, %v1928_v6 }
 0x1ee   :  { %v2075_v57 = vadd.f32 %v2074_v26, %v1929_v17 }
 0x1f0   :  { %v2076_v52 = vadd.f32 %v2075_v57, %v1930_v16 }
 0x1f2   :  { %v2077_v25 = vadd.f32 %v2076_v52, %v1931_v19 }
 0x1f4   :  { %v2078_v34 = vadd.f32 %v2077_v25, %v1932_v55 }
 0x1f6   :  { %v2079_v4 = vadd.f32 %v2078_v34, %v1933_v14 }
 0x1f8   :  { %v2080_v28 = vadd.f32 %v2079_v4, %v1934_v9 }
 0x1fa   :  { %v2081_v45 = vadd.f32 %v2080_v28, %v1935_v1 }
 0x1fc   :  { %v2082_v32 = vadd.f32 %v2081_v45, %v1936_v58 }
 0x1fe   :  { %v2083_v42 = vadd.f32 %v2082_v32, %v1937_v48 }
 0x200   :  { %v2084_v18 = vadd.f32 %v2083_v42, %v1938_v40 }
 0x202   :  { %v2085_v35 = vadd.f32 %v2084_v18, %v1939_v22 }
 0x204   :  { %v2086_v56 = vadd.f32 %v2085_v35, %v1940_v27 }
 0x206   :  { %v2087_v33 = vadd.f32 %v2086_v56, %v1941_v8 }
 0x208   :  { %v2088_v13 = vrot.slane %v2087_v33, 4 }
 0x20a   :  { %v2089_v37 = vadd.f32 %v2088_v13, %v2087_v33 }
 0x20c   :  { %v2090_v15 = vrot.slane %v2089_v37, 2 }
 0x20e   :  { %v2091_v50 = vadd.f32 %v2090_v15, %v2089_v37 }
 0x210   :  { %v2092_v0 = vrot.slane %v2091_v50, 1 }
 0x212   :  { %v2093_v31 = vadd.f32 %v2092_v0, %v2091_v50 }
 0x214   :  { %2094 = vst [vmem:[#allocation2 + $0x3] sm:$0x1] %v2093_v31 }
 0x21b   :  { %v2095_v23 = vld [vmem:[#allocation2] sm:$0xf] }
 0x21c   :  { %v2097_v20 = vsel %vm2096_vm0, %v2095_v23, 0.0 }
 0x21d   :  { %2098 = vadd.xlane.f32.xlu0 %v2097_v20 }
 0x2a6   :  { %v2099_v10 = vpop.xlane.xlu0 %2098 }
 0x2a7   :  { %2101 = vst.msk [vmem:[%s6395_s2] sm:$0xf] %vm2100_vm1, %v2099_v10 }

</bundles_post_ra>
